<compile_context>
chip_gen: v5e
topology: v5e:2x2
jax: 0.10.0
libtpu: 0.0.40
codegen_flags: <defaults>
</compile_context>

<pallas_src>
import numpy as np
import jax
import jax.numpy as jnp
from jax.experimental import pallas as pl
from jax.experimental.pallas import tpu as pltpu


def _round_up(x, m):
    return (x + m - 1) // m * m


def _build_valid_masks(H, W):
    """V[k, p] = 1 iff 3x3 tap k=(dy,dx) at output position p=h*W+w lands inside
    the image (padding=1).  Tap order: dy outer, dx inner, each in (-1,0,1)."""
    V = np.zeros((9, H * W), np.float32)
    kk = 0
    for dy in (-1, 0, 1):
        for dx in (-1, 0, 1):
            for h in range(H):
                hh = h + dy
                if 0 <= hh < H:
                    for w in range(W):
                        ww = w + dx
                        if 0 <= ww < W:
                            V[kk, h * W + w] = 1.0
            kk += 1
    return V


def _group_mat(C, G):
    """(C, C) group-membership matrix for contiguous GroupNorm groups."""
    cpg = C // G
    ch = np.arange(C)
    return jnp.asarray((ch[:, None] // cpg == ch[None, :] // cpg).astype(np.float32))


def _conv_operands(w, b):
    """w: (O, Cin+1, 3, 3) ConcatConv2d weight (input channel 0 = time channel).
    Returns wx (O, 9*(Cin+1)) whose column kk*(Cin+1)+i matches im2col stack row i
    of tap kk (aug channel order: [t, x_0 .. x_{Cin-1}]), and the bias column."""
    O, Cin1 = w.shape[0], w.shape[1]
    wx = jnp.transpose(w, (0, 2, 3, 1)).reshape(O, 9 * Cin1)
    return wx.astype(jnp.float32), b.reshape(O, 1).astype(jnp.float32)


def _make_kernel(C, C2, Nl, W, inv_n1, inv_n2):
    eps = 1e-5
    offs = [dy * W + dx for dy in (-1, 0, 1) for dx in (-1, 0, 1)]

    def kernel(t_ref, x_ref, gm1_ref, gm2_ref, seg_ref, segT_ref, v_ref,
               g1_ref, be1_ref, wx1_ref, cb1_ref,
               g2_ref, be2_ref, wx2_ref, cb2_ref,
               g3_ref, be3_ref, wx3_ref, cb3_ref,
               g4_ref, be4_ref,
               o_ref):
        tv = t_ref[0, 0]                                  # scalar t from SMEM
        seg = seg_ref[...]                                # (Nl, bb) sample membership
        segT = segT_ref[...]                              # (bb, Nl)
        t_row = jnp.full((1, Nl), tv, jnp.float32)        # ConcatConv2d time channel

        def group_norm(a, gm_ref, inv_n, gamma_ref, beta_ref):
            # One-pass per-(sample, group) statistics: lane-segmented reduce via a
            # 0/1 matmul, group-sum of the tiny (C, bb) stats, then one fused
            # a*scale + shift pass.  Padded lanes have zero seg columns, so they
            # neither contribute to the stats nor survive the broadcast.
            s1 = jnp.dot(a, seg, preferred_element_type=jnp.float32)        # (C, bb)
            s2 = jnp.dot(a * a, seg, preferred_element_type=jnp.float32)    # (C, bb)
            mean = jnp.dot(gm_ref[...], s1, preferred_element_type=jnp.float32) * inv_n
            ex2 = jnp.dot(gm_ref[...], s2, preferred_element_type=jnp.float32) * inv_n
            var = jnp.maximum(ex2 - mean * mean, 0.0)
            scale = gamma_ref[...] * jax.lax.rsqrt(var + eps)               # (C, bb)
            shift = beta_ref[...] - mean * scale                            # (C, bb)
            return (a * jnp.dot(scale, segT, preferred_element_type=jnp.float32)
                    + jnp.dot(shift, segT, preferred_element_type=jnp.float32))

        def conv3x3(a, wx_ref, cb_ref):
            # im2col via 9 XLU lane-rolls + validity masks (padding=1), stacked in
            # vector registers (no VMEM staging), then one MXU matmul.  The time
            # channel rides along as aug row 0, so its taps/masking come for free.
            aug = jnp.concatenate([t_row, a], axis=0)                       # (cin+1, Nl)
            taps = []
            for kk in range(9):
                off = offs[kk]
                if off == 0:
                    taps.append(aug)                       # center tap, always valid
                else:
                    taps.append(pltpu.roll(aug, shift=(-off) % Nl, axis=1) * v_ref[kk])
            stack = jnp.concatenate(taps, axis=0)                           # (9*(cin+1), Nl)
            return jnp.dot(wx_ref[...], stack,
                           preferred_element_type=jnp.float32) + cb_ref[...]

        out = group_norm(x_ref[...], gm1_ref, inv_n1, g1_ref, be1_ref)
        out = jnp.maximum(out, 0.0)
        out = conv3x3(out, wx1_ref, cb1_ref)               # (C2, Nl)
        out = group_norm(out, gm2_ref, inv_n2, g2_ref, be2_ref)
        out = jnp.maximum(out, 0.0)
        out = conv3x3(out, wx2_ref, cb2_ref)               # (C2, Nl)
        out = group_norm(out, gm2_ref, inv_n2, g3_ref, be3_ref)
        out = jnp.maximum(out, 0.0)
        out = conv3x3(out, wx3_ref, cb3_ref)               # (C, Nl)
        out = group_norm(out, gm1_ref, inv_n1, g4_ref, be4_ref)
        o_ref[...] = out

    return kernel


def lodefunc_forward(t, x, params, bb=None):
    """Pallas implementation of LODEfunc.forward(t, x). x: (B, C, H, W) NCHW."""
    B, C, H, W = x.shape
    HW = H * W
    HWp = _round_up(HW, 128)                  # lane-align the spatial axis
    C2 = params["w1"].shape[0]                # = 2 * dim
    G1, G2 = min(32, C), min(32, C2)
    inv_n1 = 1.0 / float((C // G1) * HW)
    inv_n2 = 1.0 / float((C2 // G2) * HW)

    # Fold bb samples into the lane axis of each grid step (wide matmul N,
    # amortized per-step overhead).
    if bb is None:
        bb = max(1, min(B, 4096 // HWp))
    n_chunks = -(-B // bb)
    Bp = n_chunks * bb
    Nl = bb * HWp

    x3 = x.reshape(B, C, HW).astype(jnp.float32)
    x3 = jnp.pad(x3, ((0, Bp - B), (0, 0), (0, HWp - HW)))
    xf = x3.reshape(n_chunks, bb, C, HWp).transpose(0, 2, 1, 3).reshape(n_chunks, C, Nl)

    t2 = jnp.asarray(t, jnp.float32).reshape(1, 1)

    gmat1 = _group_mat(C, G1)
    gmat2 = _group_mat(C2, G2)

    # 3x3 validity masks, zero-extended over lane padding, tiled per folded sample.
    vnp = np.zeros((9, HWp), np.float32)
    vnp[:, :HW] = _build_valid_masks(H, W)
    vmask = jnp.asarray(np.tile(vnp, (1, bb)).reshape(9, 1, Nl))

    # Per-sample segment matrix (zero over padding) for GroupNorm statistics and
    # scale/shift broadcast.
    segn = np.zeros((Nl, bb), np.float32)
    for b_ in range(bb):
        segn[b_ * HWp:b_ * HWp + HW, b_] = 1.0
    seg = jnp.asarray(segn)
    segT = jnp.asarray(segn.T)

    wx1, cb1 = _conv_operands(params["w1"], params["b1"])
    wx2, cb2 = _conv_operands(params["w2"], params["b2"])
    wx3, cb3 = _conv_operands(params["w3"], params["b3"])

    g1, be1 = params["g1"].reshape(C, 1), params["be1"].reshape(C, 1)
    g2, be2 = params["g2"].reshape(C2, 1), params["be2"].reshape(C2, 1)
    g3, be3 = params["g3"].reshape(C2, 1), params["be3"].reshape(C2, 1)
    g4, be4 = params["g4"].reshape(C, 1), params["be4"].reshape(C, 1)

    def full(shape):
        return pl.BlockSpec(shape, lambda i, _n=len(shape): (0,) * _n)

    in_specs = [
        pl.BlockSpec(memory_space=pltpu.MemorySpace.SMEM),      # t (scalar)
        pl.BlockSpec((None, C, Nl), lambda i: (i, 0, 0)),       # folded x chunk
        full((C, C)), full((C2, C2)),                           # gmat1, gmat2
        full((Nl, bb)), full((bb, Nl)),                         # seg, segT
        full((9, 1, Nl)),                                       # validity masks
        full((C, 1)), full((C, 1)),                             # g1, be1
        full((C2, 9 * (C + 1))), full((C2, 1)),                 # wx1, cb1
        full((C2, 1)), full((C2, 1)),                           # g2, be2
        full((C2, 9 * (C2 + 1))), full((C2, 1)),                # wx2, cb2
        full((C2, 1)), full((C2, 1)),                           # g3, be3
        full((C, 9 * (C2 + 1))), full((C, 1)),                  # wx3, cb3
        full((C, 1)), full((C, 1)),                             # g4, be4
    ]
    out_spec = pl.BlockSpec((None, C, Nl), lambda i: (i, 0, 0))

    kernel = _make_kernel(C, C2, Nl, W, inv_n1, inv_n2)
    of = pl.pallas_call(
        kernel,
        out_shape=jax.ShapeDtypeStruct((n_chunks, C, Nl), jnp.float32),
        grid=(n_chunks,),
        in_specs=in_specs,
        out_specs=out_spec,
        compiler_params=pltpu.CompilerParams(
            dimension_semantics=("parallel",),
        ),
    )(t2, xf, gmat1, gmat2, seg, segT, vmask,
      g1, be1, wx1, cb1,
      g2, be2, wx2, cb2,
      g3, be3, wx3, cb3,
      g4, be4)

    out = of.reshape(n_chunks, C, bb, HWp).transpose(0, 2, 1, 3)
    out = out.reshape(Bp, C, HWp)[:B, :, :HW].reshape(B, C, H, W)
    return out


def lodefunc_reference(t, x, params):
    """Pure-JAX reference matching the PyTorch LODEfunc module."""

    def gn(a, gamma, beta):
        B, C_, H, W = a.shape
        G = min(32, C_)
        ag = a.reshape(B, G, (C_ // G) * H * W)
        mu = ag.mean(axis=2, keepdims=True)
        var = ag.var(axis=2, keepdims=True)
        y = ((ag - mu) / jnp.sqrt(var + 1e-5)).reshape(B, C_, H, W)
        return y * gamma.reshape(1, C_, 1, 1) + beta.reshape(1, C_, 1, 1)

    def cc(a, w, b):
        B, _, H, W = a.shape
        tt = jnp.full((B, 1, H, W), t, a.dtype)
        xx = jnp.concatenate([tt, a], axis=1)
        y = jax.lax.conv_general_dilated(
            xx, w, (1, 1), ((1, 1), (1, 1)),
            dimension_numbers=("NCHW", "OIHW", "NCHW"),
            precision=jax.lax.Precision.HIGHEST)
        return y + b.reshape(1, -1, 1, 1)

    out = gn(x, params["g1"], params["be1"]); out = jnp.maximum(out, 0.0)
    out = cc(out, params["w1"], params["b1"])
    out = gn(out, params["g2"], params["be2"]); out = jnp.maximum(out, 0.0)
    out = cc(out, params["w2"], params["b2"])
    out = gn(out, params["g3"], params["be3"]); out = jnp.maximum(out, 0.0)
    out = cc(out, params["w3"], params["b3"])
    out = gn(out, params["g4"], params["be4"])
    return out


if __name__ == "__main__":
    # TODO(synk): self.nfe (Python-side call counter) is host state, not numeric compute.
    B, dim, H, W = 2, 4, 16, 16
    key = jax.random.PRNGKey(0)
    ks = jax.random.split(key, 16)

    x = jax.random.normal(ks[0], (B, dim, H, W), jnp.float32)
    t = jnp.float32(0.5)

    params = {
        # ConcatConv2d weights: (dim_out, dim_in + 1, 3, 3), bias (dim_out,)
        "w1": 0.1 * jax.random.normal(ks[1], (2 * dim, dim + 1, 3, 3), jnp.float32),
        "b1": 0.1 * jax.random.normal(ks[2], (2 * dim,), jnp.float32),
        "w2": 0.1 * jax.random.normal(ks[3], (2 * dim, 2 * dim + 1, 3, 3), jnp.float32),
        "b2": 0.1 * jax.random.normal(ks[4], (2 * dim,), jnp.float32),
        "w3": 0.1 * jax.random.normal(ks[5], (dim, 2 * dim + 1, 3, 3), jnp.float32),
        "b3": 0.1 * jax.random.normal(ks[6], (dim,), jnp.float32),
        # GroupNorm affine params (PyTorch default is ones/zeros; randomized to
        # exercise the affine path deterministically).
        "g1": 1.0 + 0.1 * jax.random.normal(ks[7], (dim,), jnp.float32),
        "be1": 0.1 * jax.random.normal(ks[8], (dim,), jnp.float32),
        "g2": 1.0 + 0.1 * jax.random.normal(ks[9], (2 * dim,), jnp.float32),
        "be2": 0.1 * jax.random.normal(ks[10], (2 * dim,), jnp.float32),
        "g3": 1.0 + 0.1 * jax.random.normal(ks[11], (2 * dim,), jnp.float32),
        "be3": 0.1 * jax.random.normal(ks[12], (2 * dim,), jnp.float32),
        "g4": 1.0 + 0.1 * jax.random.normal(ks[13], (dim,), jnp.float32),
        "be4": 0.1 * jax.random.normal(ks[14], (dim,), jnp.float32),
    }

    out = lodefunc_forward(t, x, params)
    out = jax.block_until_ready(out)

    ref = lodefunc_reference(t, x, params)
    assert out.shape == x.shape
    if not bool(jnp.allclose(out, ref, atol=1e-3, rtol=1e-3)):
        err = float(jnp.max(jnp.abs(out - ref)))
        raise AssertionError(f"Pallas kernel mismatch vs reference, max abs err={err}")

    print("KERNEL_OK")
</pallas_src>

<mosaic_0001>
module attributes {stable_mosaic.version = 11 : i64} {
  func.func @kernel(%arg0: i32, %arg1: memref<1x1xf32, #tpu.memory_space<smem>>, %arg2: memref<1x4x512xf32, #tpu.memory_space<vmem>>, %arg3: memref<4x4xf32, #tpu.memory_space<vmem>>, %arg4: memref<8x8xf32, #tpu.memory_space<vmem>>, %arg5: memref<512x2xf32, #tpu.memory_space<vmem>>, %arg6: memref<2x512xf32, #tpu.memory_space<vmem>>, %arg7: memref<9x1x512xf32, #tpu.memory_space<vmem>>, %arg8: memref<4x1xf32, #tpu.memory_space<vmem>>, %arg9: memref<4x1xf32, #tpu.memory_space<vmem>>, %arg10: memref<8x45xf32, #tpu.memory_space<vmem>>, %arg11: memref<8x1xf32, #tpu.memory_space<vmem>>, %arg12: memref<8x1xf32, #tpu.memory_space<vmem>>, %arg13: memref<8x1xf32, #tpu.memory_space<vmem>>, %arg14: memref<8x81xf32, #tpu.memory_space<vmem>>, %arg15: memref<8x1xf32, #tpu.memory_space<vmem>>, %arg16: memref<8x1xf32, #tpu.memory_space<vmem>>, %arg17: memref<8x1xf32, #tpu.memory_space<vmem>>, %arg18: memref<4x81xf32, #tpu.memory_space<vmem>>, %arg19: memref<4x1xf32, #tpu.memory_space<vmem>>, %arg20: memref<4x1xf32, #tpu.memory_space<vmem>>, %arg21: memref<4x1xf32, #tpu.memory_space<vmem>>, %arg22: memref<1x4x512xf32, #tpu.memory_space<vmem>>) attributes {dimension_semantics = [#tpu.dimension_semantics<parallel>], iteration_bounds = array<i64: 1>, scalar_prefetch = 0 : i64, scratch_operands = 0 : i64, tpu.core_type = #tpu.core_type<tc>, window_params = [{transform_indices = @transform_0, window_bounds = array<i64: 1, 1>}, {transform_indices = @transform_1, window_bounds = array<i64: 1, 4, 512>}, {pipeline_mode = #tpu.pipeline_mode<synchronous>, transform_indices = @transform_2, window_bounds = array<i64: 4, 4>}, {pipeline_mode = #tpu.pipeline_mode<synchronous>, transform_indices = @transform_3, window_bounds = array<i64: 8, 8>}, {pipeline_mode = #tpu.pipeline_mode<synchronous>, transform_indices = @transform_4, window_bounds = array<i64: 512, 2>}, {pipeline_mode = #tpu.pipeline_mode<synchronous>, transform_indices = @transform_5, window_bounds = array<i64: 2, 512>}, {pipeline_mode = #tpu.pipeline_mode<synchronous>, transform_indices = @transform_6, window_bounds = array<i64: 9, 1, 512>}, {pipeline_mode = #tpu.pipeline_mode<synchronous>, transform_indices = @transform_7, window_bounds = array<i64: 4, 1>}, {pipeline_mode = #tpu.pipeline_mode<synchronous>, transform_indices = @transform_8, window_bounds = array<i64: 4, 1>}, {pipeline_mode = #tpu.pipeline_mode<synchronous>, transform_indices = @transform_9, window_bounds = array<i64: 8, 45>}, {pipeline_mode = #tpu.pipeline_mode<synchronous>, transform_indices = @transform_10, window_bounds = array<i64: 8, 1>}, {pipeline_mode = #tpu.pipeline_mode<synchronous>, transform_indices = @transform_11, window_bounds = array<i64: 8, 1>}, {pipeline_mode = #tpu.pipeline_mode<synchronous>, transform_indices = @transform_12, window_bounds = array<i64: 8, 1>}, {pipeline_mode = #tpu.pipeline_mode<synchronous>, transform_indices = @transform_13, window_bounds = array<i64: 8, 81>}, {pipeline_mode = #tpu.pipeline_mode<synchronous>, transform_indices = @transform_14, window_bounds = array<i64: 8, 1>}, {pipeline_mode = #tpu.pipeline_mode<synchronous>, transform_indices = @transform_15, window_bounds = array<i64: 8, 1>}, {pipeline_mode = #tpu.pipeline_mode<synchronous>, transform_indices = @transform_16, window_bounds = array<i64: 8, 1>}, {pipeline_mode = #tpu.pipeline_mode<synchronous>, transform_indices = @transform_17, window_bounds = array<i64: 4, 81>}, {pipeline_mode = #tpu.pipeline_mode<synchronous>, transform_indices = @transform_18, window_bounds = array<i64: 4, 1>}, {pipeline_mode = #tpu.pipeline_mode<synchronous>, transform_indices = @transform_19, window_bounds = array<i64: 4, 1>}, {pipeline_mode = #tpu.pipeline_mode<synchronous>, transform_indices = @transform_20, window_bounds = array<i64: 4, 1>}, {transform_indices = @transform_21, window_bounds = array<i64: 1, 4, 512>}]} {
    %c0 = arith.constant 0 : index
    %c0_0 = arith.constant 0 : index
    %0 = memref.load %arg1[%c0, %c0_0] : memref<1x1xf32, #tpu.memory_space<smem>>
    %c0_1 = arith.constant 0 : index
    %c0_2 = arith.constant 0 : index
    %1 = vector.load %arg5[%c0_1, %c0_2] : memref<512x2xf32, #tpu.memory_space<vmem>>, vector<512x2xf32>
    %c0_3 = arith.constant 0 : index
    %c0_4 = arith.constant 0 : index
    %2 = vector.load %arg6[%c0_3, %c0_4] : memref<2x512xf32, #tpu.memory_space<vmem>>, vector<2x512xf32>
    %3 = vector.broadcast %0 : f32 to vector<1x512xf32>
    %c0_5 = arith.constant 0 : index
    %c0_6 = arith.constant 0 : index
    %c0_7 = arith.constant 0 : index
    %4 = vector.load %arg2[%c0_5, %c0_6, %c0_7] : memref<1x4x512xf32, #tpu.memory_space<vmem>>, vector<1x4x512xf32>
    %5 = vector.shape_cast %4 : vector<1x4x512xf32> to vector<4x512xf32>
    %cst = arith.constant dense<0.000000e+00> : vector<4x2xf32>
    %6 = tpu.matmul %5, %1, %cst {dimension_numbers = #tpu.dot_dimension_numbers<[1], [0], [0], [1], [0, 0, 1, 1], [], []>} : vector<4x512xf32>, vector<512x2xf32>, vector<4x2xf32> -> vector<4x2xf32>
    %7 = arith.mulf %5, %5 : vector<4x512xf32>
    %cst_8 = arith.constant dense<0.000000e+00> : vector<4x2xf32>
    %8 = tpu.matmul %7, %1, %cst_8 {dimension_numbers = #tpu.dot_dimension_numbers<[1], [0], [0], [1], [0, 0, 1, 1], [], []>} : vector<4x512xf32>, vector<512x2xf32>, vector<4x2xf32> -> vector<4x2xf32>
    %c0_9 = arith.constant 0 : index
    %c0_10 = arith.constant 0 : index
    %9 = vector.load %arg3[%c0_9, %c0_10] : memref<4x4xf32, #tpu.memory_space<vmem>>, vector<4x4xf32>
    %cst_11 = arith.constant dense<0.000000e+00> : vector<4x2xf32>
    %10 = tpu.matmul %9, %6, %cst_11 {dimension_numbers = #tpu.dot_dimension_numbers<[1], [0], [0], [1], [0, 0, 1, 1], [], []>} : vector<4x4xf32>, vector<4x2xf32>, vector<4x2xf32> -> vector<4x2xf32>
    %cst_12 = arith.constant 3.906250e-03 : f32
    %11 = vector.broadcast %cst_12 : f32 to vector<4x2xf32>
    %12 = arith.mulf %10, %11 : vector<4x2xf32>
    %c0_13 = arith.constant 0 : index
    %c0_14 = arith.constant 0 : index
    %13 = vector.load %arg3[%c0_13, %c0_14] : memref<4x4xf32, #tpu.memory_space<vmem>>, vector<4x4xf32>
    %cst_15 = arith.constant dense<0.000000e+00> : vector<4x2xf32>
    %14 = tpu.matmul %13, %8, %cst_15 {dimension_numbers = #tpu.dot_dimension_numbers<[1], [0], [0], [1], [0, 0, 1, 1], [], []>} : vector<4x4xf32>, vector<4x2xf32>, vector<4x2xf32> -> vector<4x2xf32>
    %cst_16 = arith.constant 3.906250e-03 : f32
    %15 = vector.broadcast %cst_16 : f32 to vector<4x2xf32>
    %16 = arith.mulf %14, %15 : vector<4x2xf32>
    %17 = arith.mulf %12, %12 : vector<4x2xf32>
    %18 = arith.subf %16, %17 : vector<4x2xf32>
    %cst_17 = arith.constant 0.000000e+00 : f32
    %19 = vector.broadcast %cst_17 : f32 to vector<4x2xf32>
    %20 = arith.maximumf %18, %19 : vector<4x2xf32>
    %c0_18 = arith.constant 0 : index
    %c0_19 = arith.constant 0 : index
    %21 = vector.load %arg8[%c0_18, %c0_19] : memref<4x1xf32, #tpu.memory_space<vmem>>, vector<4x1xf32>
    %cst_20 = arith.constant 9.99999974E-6 : f32
    %22 = vector.broadcast %cst_20 : f32 to vector<4x2xf32>
    %23 = arith.addf %20, %22 : vector<4x2xf32>
    %24 = math.rsqrt %23 : vector<4x2xf32>
    %25 = vector.broadcast %21 : vector<4x1xf32> to vector<4x2xf32>
    %26 = arith.mulf %25, %24 : vector<4x2xf32>
    %c0_21 = arith.constant 0 : index
    %c0_22 = arith.constant 0 : index
    %27 = vector.load %arg9[%c0_21, %c0_22] : memref<4x1xf32, #tpu.memory_space<vmem>>, vector<4x1xf32>
    %28 = arith.mulf %12, %26 : vector<4x2xf32>
    %29 = vector.broadcast %27 : vector<4x1xf32> to vector<4x2xf32>
    %30 = arith.subf %29, %28 : vector<4x2xf32>
    %cst_23 = arith.constant dense<0.000000e+00> : vector<4x512xf32>
    %31 = tpu.matmul %26, %2, %cst_23 {dimension_numbers = #tpu.dot_dimension_numbers<[1], [0], [0], [1], [0, 0, 1, 1], [], []>} : vector<4x2xf32>, vector<2x512xf32>, vector<4x512xf32> -> vector<4x512xf32>
    %32 = arith.mulf %5, %31 : vector<4x512xf32>
    %cst_24 = arith.constant dense<0.000000e+00> : vector<4x512xf32>
    %33 = tpu.matmul %30, %2, %cst_24 {dimension_numbers = #tpu.dot_dimension_numbers<[1], [0], [0], [1], [0, 0, 1, 1], [], []>} : vector<4x2xf32>, vector<2x512xf32>, vector<4x512xf32> -> vector<4x512xf32>
    %34 = arith.addf %32, %33 : vector<4x512xf32>
    %cst_25 = arith.constant 0.000000e+00 : f32
    %35 = vector.broadcast %cst_25 : f32 to vector<4x512xf32>
    %36 = arith.maximumf %34, %35 : vector<4x512xf32>
    %37 = tpu.concatenate %3, %36 in 0 : vector<1x512xf32>, vector<4x512xf32> -> vector<5x512xf32>
    %c17_i32 = arith.constant 17 : i32
    %38 = tpu.dynamic_rotate %37 by %c17_i32 dim 1 : vector<5x512xf32>, i32 -> vector<5x512xf32>
    %c0_26 = arith.constant 0 : index
    %c0_27 = arith.constant 0 : index
    %c0_28 = arith.constant 0 : index
    %39 = vector.load %arg7[%c0_26, %c0_27, %c0_28] : memref<9x1x512xf32, #tpu.memory_space<vmem>>, vector<1x1x512xf32>
    %40 = vector.shape_cast %39 : vector<1x1x512xf32> to vector<1x512xf32>
    %41 = vector.broadcast %40 : vector<1x512xf32> to vector<5x512xf32>
    %42 = arith.mulf %38, %41 : vector<5x512xf32>
    %c16_i32 = arith.constant 16 : i32
    %43 = tpu.dynamic_rotate %37 by %c16_i32 dim 1 : vector<5x512xf32>, i32 -> vector<5x512xf32>
    %c1 = arith.constant 1 : index
    %c0_29 = arith.constant 0 : index
    %c0_30 = arith.constant 0 : index
    %44 = vector.load %arg7[%c1, %c0_29, %c0_30] : memref<9x1x512xf32, #tpu.memory_space<vmem>>, vector<1x1x512xf32>
    %45 = vector.shape_cast %44 : vector<1x1x512xf32> to vector<1x512xf32>
    %46 = vector.broadcast %45 : vector<1x512xf32> to vector<5x512xf32>
    %47 = arith.mulf %43, %46 : vector<5x512xf32>
    %c15_i32 = arith.constant 15 : i32
    %48 = tpu.dynamic_rotate %37 by %c15_i32 dim 1 : vector<5x512xf32>, i32 -> vector<5x512xf32>
    %c2 = arith.constant 2 : index
    %c0_31 = arith.constant 0 : index
    %c0_32 = arith.constant 0 : index
    %49 = vector.load %arg7[%c2, %c0_31, %c0_32] : memref<9x1x512xf32, #tpu.memory_space<vmem>>, vector<1x1x512xf32>
    %50 = vector.shape_cast %49 : vector<1x1x512xf32> to vector<1x512xf32>
    %51 = vector.broadcast %50 : vector<1x512xf32> to vector<5x512xf32>
    %52 = arith.mulf %48, %51 : vector<5x512xf32>
    %c1_i32 = arith.constant 1 : i32
    %53 = tpu.dynamic_rotate %37 by %c1_i32 dim 1 : vector<5x512xf32>, i32 -> vector<5x512xf32>
    %c3 = arith.constant 3 : index
    %c0_33 = arith.constant 0 : index
    %c0_34 = arith.constant 0 : index
    %54 = vector.load %arg7[%c3, %c0_33, %c0_34] : memref<9x1x512xf32, #tpu.memory_space<vmem>>, vector<1x1x512xf32>
    %55 = vector.shape_cast %54 : vector<1x1x512xf32> to vector<1x512xf32>
    %56 = vector.broadcast %55 : vector<1x512xf32> to vector<5x512xf32>
    %57 = arith.mulf %53, %56 : vector<5x512xf32>
    %c511_i32 = arith.constant 511 : i32
    %58 = tpu.dynamic_rotate %37 by %c511_i32 dim 1 : vector<5x512xf32>, i32 -> vector<5x512xf32>
    %c5 = arith.constant 5 : index
    %c0_35 = arith.constant 0 : index
    %c0_36 = arith.constant 0 : index
    %59 = vector.load %arg7[%c5, %c0_35, %c0_36] : memref<9x1x512xf32, #tpu.memory_space<vmem>>, vector<1x1x512xf32>
    %60 = vector.shape_cast %59 : vector<1x1x512xf32> to vector<1x512xf32>
    %61 = vector.broadcast %60 : vector<1x512xf32> to vector<5x512xf32>
    %62 = arith.mulf %58, %61 : vector<5x512xf32>
    %c497_i32 = arith.constant 497 : i32
    %63 = tpu.dynamic_rotate %37 by %c497_i32 dim 1 : vector<5x512xf32>, i32 -> vector<5x512xf32>
    %c6 = arith.constant 6 : index
    %c0_37 = arith.constant 0 : index
    %c0_38 = arith.constant 0 : index
    %64 = vector.load %arg7[%c6, %c0_37, %c0_38] : memref<9x1x512xf32, #tpu.memory_space<vmem>>, vector<1x1x512xf32>
    %65 = vector.shape_cast %64 : vector<1x1x512xf32> to vector<1x512xf32>
    %66 = vector.broadcast %65 : vector<1x512xf32> to vector<5x512xf32>
    %67 = arith.mulf %63, %66 : vector<5x512xf32>
    %c496_i32 = arith.constant 496 : i32
    %68 = tpu.dynamic_rotate %37 by %c496_i32 dim 1 : vector<5x512xf32>, i32 -> vector<5x512xf32>
    %c7 = arith.constant 7 : index
    %c0_39 = arith.constant 0 : index
    %c0_40 = arith.constant 0 : index
    %69 = vector.load %arg7[%c7, %c0_39, %c0_40] : memref<9x1x512xf32, #tpu.memory_space<vmem>>, vector<1x1x512xf32>
    %70 = vector.shape_cast %69 : vector<1x1x512xf32> to vector<1x512xf32>
    %71 = vector.broadcast %70 : vector<1x512xf32> to vector<5x512xf32>
    %72 = arith.mulf %68, %71 : vector<5x512xf32>
    %c495_i32 = arith.constant 495 : i32
    %73 = tpu.dynamic_rotate %37 by %c495_i32 dim 1 : vector<5x512xf32>, i32 -> vector<5x512xf32>
    %c8 = arith.constant 8 : index
    %c0_41 = arith.constant 0 : index
    %c0_42 = arith.constant 0 : index
    %74 = vector.load %arg7[%c8, %c0_41, %c0_42] : memref<9x1x512xf32, #tpu.memory_space<vmem>>, vector<1x1x512xf32>
    %75 = vector.shape_cast %74 : vector<1x1x512xf32> to vector<1x512xf32>
    %76 = vector.broadcast %75 : vector<1x512xf32> to vector<5x512xf32>
    %77 = arith.mulf %73, %76 : vector<5x512xf32>
    %78 = tpu.concatenate %42, %47, %52, %57, %37, %62, %67, %72, %77 in 0 : vector<5x512xf32>, vector<5x512xf32>, vector<5x512xf32>, vector<5x512xf32>, vector<5x512xf32>, vector<5x512xf32>, vector<5x512xf32>, vector<5x512xf32>, vector<5x512xf32> -> vector<45x512xf32>
    %c0_43 = arith.constant 0 : index
    %c0_44 = arith.constant 0 : index
    %79 = vector.load %arg10[%c0_43, %c0_44] : memref<8x45xf32, #tpu.memory_space<vmem>>, vector<8x45xf32>
    %cst_45 = arith.constant dense<0.000000e+00> : vector<8x512xf32>
    %80 = tpu.matmul %79, %78, %cst_45 {dimension_numbers = #tpu.dot_dimension_numbers<[1], [0], [0], [1], [0, 0, 1, 1], [], []>} : vector<8x45xf32>, vector<45x512xf32>, vector<8x512xf32> -> vector<8x512xf32>
    %c0_46 = arith.constant 0 : index
    %c0_47 = arith.constant 0 : index
    %81 = vector.load %arg11[%c0_46, %c0_47] : memref<8x1xf32, #tpu.memory_space<vmem>>, vector<8x1xf32>
    %82 = vector.broadcast %81 : vector<8x1xf32> to vector<8x512xf32>
    %83 = arith.addf %80, %82 : vector<8x512xf32>
    %cst_48 = arith.constant dense<0.000000e+00> : vector<8x2xf32>
    %84 = tpu.matmul %83, %1, %cst_48 {dimension_numbers = #tpu.dot_dimension_numbers<[1], [0], [0], [1], [0, 0, 1, 1], [], []>} : vector<8x512xf32>, vector<512x2xf32>, vector<8x2xf32> -> vector<8x2xf32>
    %85 = arith.mulf %83, %83 : vector<8x512xf32>
    %cst_49 = arith.constant dense<0.000000e+00> : vector<8x2xf32>
    %86 = tpu.matmul %85, %1, %cst_49 {dimension_numbers = #tpu.dot_dimension_numbers<[1], [0], [0], [1], [0, 0, 1, 1], [], []>} : vector<8x512xf32>, vector<512x2xf32>, vector<8x2xf32> -> vector<8x2xf32>
    %c0_50 = arith.constant 0 : index
    %c0_51 = arith.constant 0 : index
    %87 = vector.load %arg4[%c0_50, %c0_51] : memref<8x8xf32, #tpu.memory_space<vmem>>, vector<8x8xf32>
    %cst_52 = arith.constant dense<0.000000e+00> : vector<8x2xf32>
    %88 = tpu.matmul %87, %84, %cst_52 {dimension_numbers = #tpu.dot_dimension_numbers<[1], [0], [0], [1], [0, 0, 1, 1], [], []>} : vector<8x8xf32>, vector<8x2xf32>, vector<8x2xf32> -> vector<8x2xf32>
    %cst_53 = arith.constant 3.906250e-03 : f32
    %89 = vector.broadcast %cst_53 : f32 to vector<8x2xf32>
    %90 = arith.mulf %88, %89 : vector<8x2xf32>
    %c0_54 = arith.constant 0 : index
    %c0_55 = arith.constant 0 : index
    %91 = vector.load %arg4[%c0_54, %c0_55] : memref<8x8xf32, #tpu.memory_space<vmem>>, vector<8x8xf32>
    %cst_56 = arith.constant dense<0.000000e+00> : vector<8x2xf32>
    %92 = tpu.matmul %91, %86, %cst_56 {dimension_numbers = #tpu.dot_dimension_numbers<[1], [0], [0], [1], [0, 0, 1, 1], [], []>} : vector<8x8xf32>, vector<8x2xf32>, vector<8x2xf32> -> vector<8x2xf32>
    %cst_57 = arith.constant 3.906250e-03 : f32
    %93 = vector.broadcast %cst_57 : f32 to vector<8x2xf32>
    %94 = arith.mulf %92, %93 : vector<8x2xf32>
    %95 = arith.mulf %90, %90 : vector<8x2xf32>
    %96 = arith.subf %94, %95 : vector<8x2xf32>
    %cst_58 = arith.constant 0.000000e+00 : f32
    %97 = vector.broadcast %cst_58 : f32 to vector<8x2xf32>
    %98 = arith.maximumf %96, %97 : vector<8x2xf32>
    %c0_59 = arith.constant 0 : index
    %c0_60 = arith.constant 0 : index
    %99 = vector.load %arg12[%c0_59, %c0_60] : memref<8x1xf32, #tpu.memory_space<vmem>>, vector<8x1xf32>
    %cst_61 = arith.constant 9.99999974E-6 : f32
    %100 = vector.broadcast %cst_61 : f32 to vector<8x2xf32>
    %101 = arith.addf %98, %100 : vector<8x2xf32>
    %102 = math.rsqrt %101 : vector<8x2xf32>
    %103 = vector.broadcast %99 : vector<8x1xf32> to vector<8x2xf32>
    %104 = arith.mulf %103, %102 : vector<8x2xf32>
    %c0_62 = arith.constant 0 : index
    %c0_63 = arith.constant 0 : index
    %105 = vector.load %arg13[%c0_62, %c0_63] : memref<8x1xf32, #tpu.memory_space<vmem>>, vector<8x1xf32>
    %106 = arith.mulf %90, %104 : vector<8x2xf32>
    %107 = vector.broadcast %105 : vector<8x1xf32> to vector<8x2xf32>
    %108 = arith.subf %107, %106 : vector<8x2xf32>
    %cst_64 = arith.constant dense<0.000000e+00> : vector<8x512xf32>
    %109 = tpu.matmul %104, %2, %cst_64 {dimension_numbers = #tpu.dot_dimension_numbers<[1], [0], [0], [1], [0, 0, 1, 1], [], []>} : vector<8x2xf32>, vector<2x512xf32>, vector<8x512xf32> -> vector<8x512xf32>
    %110 = arith.mulf %83, %109 : vector<8x512xf32>
    %cst_65 = arith.constant dense<0.000000e+00> : vector<8x512xf32>
    %111 = tpu.matmul %108, %2, %cst_65 {dimension_numbers = #tpu.dot_dimension_numbers<[1], [0], [0], [1], [0, 0, 1, 1], [], []>} : vector<8x2xf32>, vector<2x512xf32>, vector<8x512xf32> -> vector<8x512xf32>
    %112 = arith.addf %110, %111 : vector<8x512xf32>
    %cst_66 = arith.constant 0.000000e+00 : f32
    %113 = vector.broadcast %cst_66 : f32 to vector<8x512xf32>
    %114 = arith.maximumf %112, %113 : vector<8x512xf32>
    %115 = tpu.concatenate %3, %114 in 0 : vector<1x512xf32>, vector<8x512xf32> -> vector<9x512xf32>
    %c17_i32_67 = arith.constant 17 : i32
    %116 = tpu.dynamic_rotate %115 by %c17_i32_67 dim 1 : vector<9x512xf32>, i32 -> vector<9x512xf32>
    %c0_68 = arith.constant 0 : index
    %c0_69 = arith.constant 0 : index
    %c0_70 = arith.constant 0 : index
    %117 = vector.load %arg7[%c0_68, %c0_69, %c0_70] : memref<9x1x512xf32, #tpu.memory_space<vmem>>, vector<1x1x512xf32>
    %118 = vector.shape_cast %117 : vector<1x1x512xf32> to vector<1x512xf32>
    %119 = vector.broadcast %118 : vector<1x512xf32> to vector<9x512xf32>
    %120 = arith.mulf %116, %119 : vector<9x512xf32>
    %c16_i32_71 = arith.constant 16 : i32
    %121 = tpu.dynamic_rotate %115 by %c16_i32_71 dim 1 : vector<9x512xf32>, i32 -> vector<9x512xf32>
    %c1_72 = arith.constant 1 : index
    %c0_73 = arith.constant 0 : index
    %c0_74 = arith.constant 0 : index
    %122 = vector.load %arg7[%c1_72, %c0_73, %c0_74] : memref<9x1x512xf32, #tpu.memory_space<vmem>>, vector<1x1x512xf32>
    %123 = vector.shape_cast %122 : vector<1x1x512xf32> to vector<1x512xf32>
    %124 = vector.broadcast %123 : vector<1x512xf32> to vector<9x512xf32>
    %125 = arith.mulf %121, %124 : vector<9x512xf32>
    %c15_i32_75 = arith.constant 15 : i32
    %126 = tpu.dynamic_rotate %115 by %c15_i32_75 dim 1 : vector<9x512xf32>, i32 -> vector<9x512xf32>
    %c2_76 = arith.constant 2 : index
    %c0_77 = arith.constant 0 : index
    %c0_78 = arith.constant 0 : index
    %127 = vector.load %arg7[%c2_76, %c0_77, %c0_78] : memref<9x1x512xf32, #tpu.memory_space<vmem>>, vector<1x1x512xf32>
    %128 = vector.shape_cast %127 : vector<1x1x512xf32> to vector<1x512xf32>
    %129 = vector.broadcast %128 : vector<1x512xf32> to vector<9x512xf32>
    %130 = arith.mulf %126, %129 : vector<9x512xf32>
    %c1_i32_79 = arith.constant 1 : i32
    %131 = tpu.dynamic_rotate %115 by %c1_i32_79 dim 1 : vector<9x512xf32>, i32 -> vector<9x512xf32>
    %c3_80 = arith.constant 3 : index
    %c0_81 = arith.constant 0 : index
    %c0_82 = arith.constant 0 : index
    %132 = vector.load %arg7[%c3_80, %c0_81, %c0_82] : memref<9x1x512xf32, #tpu.memory_space<vmem>>, vector<1x1x512xf32>
    %133 = vector.shape_cast %132 : vector<1x1x512xf32> to vector<1x512xf32>
    %134 = vector.broadcast %133 : vector<1x512xf32> to vector<9x512xf32>
    %135 = arith.mulf %131, %134 : vector<9x512xf32>
    %c511_i32_83 = arith.constant 511 : i32
    %136 = tpu.dynamic_rotate %115 by %c511_i32_83 dim 1 : vector<9x512xf32>, i32 -> vector<9x512xf32>
    %c5_84 = arith.constant 5 : index
    %c0_85 = arith.constant 0 : index
    %c0_86 = arith.constant 0 : index
    %137 = vector.load %arg7[%c5_84, %c0_85, %c0_86] : memref<9x1x512xf32, #tpu.memory_space<vmem>>, vector<1x1x512xf32>
    %138 = vector.shape_cast %137 : vector<1x1x512xf32> to vector<1x512xf32>
    %139 = vector.broadcast %138 : vector<1x512xf32> to vector<9x512xf32>
    %140 = arith.mulf %136, %139 : vector<9x512xf32>
    %c497_i32_87 = arith.constant 497 : i32
    %141 = tpu.dynamic_rotate %115 by %c497_i32_87 dim 1 : vector<9x512xf32>, i32 -> vector<9x512xf32>
    %c6_88 = arith.constant 6 : index
    %c0_89 = arith.constant 0 : index
    %c0_90 = arith.constant 0 : index
    %142 = vector.load %arg7[%c6_88, %c0_89, %c0_90] : memref<9x1x512xf32, #tpu.memory_space<vmem>>, vector<1x1x512xf32>
    %143 = vector.shape_cast %142 : vector<1x1x512xf32> to vector<1x512xf32>
    %144 = vector.broadcast %143 : vector<1x512xf32> to vector<9x512xf32>
    %145 = arith.mulf %141, %144 : vector<9x512xf32>
    %c496_i32_91 = arith.constant 496 : i32
    %146 = tpu.dynamic_rotate %115 by %c496_i32_91 dim 1 : vector<9x512xf32>, i32 -> vector<9x512xf32>
    %c7_92 = arith.constant 7 : index
    %c0_93 = arith.constant 0 : index
    %c0_94 = arith.constant 0 : index
    %147 = vector.load %arg7[%c7_92, %c0_93, %c0_94] : memref<9x1x512xf32, #tpu.memory_space<vmem>>, vector<1x1x512xf32>
    %148 = vector.shape_cast %147 : vector<1x1x512xf32> to vector<1x512xf32>
    %149 = vector.broadcast %148 : vector<1x512xf32> to vector<9x512xf32>
    %150 = arith.mulf %146, %149 : vector<9x512xf32>
    %c495_i32_95 = arith.constant 495 : i32
    %151 = tpu.dynamic_rotate %115 by %c495_i32_95 dim 1 : vector<9x512xf32>, i32 -> vector<9x512xf32>
    %c8_96 = arith.constant 8 : index
    %c0_97 = arith.constant 0 : index
    %c0_98 = arith.constant 0 : index
    %152 = vector.load %arg7[%c8_96, %c0_97, %c0_98] : memref<9x1x512xf32, #tpu.memory_space<vmem>>, vector<1x1x512xf32>
    %153 = vector.shape_cast %152 : vector<1x1x512xf32> to vector<1x512xf32>
    %154 = vector.broadcast %153 : vector<1x512xf32> to vector<9x512xf32>
    %155 = arith.mulf %151, %154 : vector<9x512xf32>
    %156 = tpu.concatenate %120, %125, %130, %135, %115, %140, %145, %150, %155 in 0 : vector<9x512xf32>, vector<9x512xf32>, vector<9x512xf32>, vector<9x512xf32>, vector<9x512xf32>, vector<9x512xf32>, vector<9x512xf32>, vector<9x512xf32>, vector<9x512xf32> -> vector<81x512xf32>
    %c0_99 = arith.constant 0 : index
    %c0_100 = arith.constant 0 : index
    %157 = vector.load %arg14[%c0_99, %c0_100] : memref<8x81xf32, #tpu.memory_space<vmem>>, vector<8x81xf32>
    %cst_101 = arith.constant dense<0.000000e+00> : vector<8x512xf32>
    %158 = tpu.matmul %157, %156, %cst_101 {dimension_numbers = #tpu.dot_dimension_numbers<[1], [0], [0], [1], [0, 0, 1, 1], [], []>} : vector<8x81xf32>, vector<81x512xf32>, vector<8x512xf32> -> vector<8x512xf32>
    %c0_102 = arith.constant 0 : index
    %c0_103 = arith.constant 0 : index
    %159 = vector.load %arg15[%c0_102, %c0_103] : memref<8x1xf32, #tpu.memory_space<vmem>>, vector<8x1xf32>
    %160 = vector.broadcast %159 : vector<8x1xf32> to vector<8x512xf32>
    %161 = arith.addf %158, %160 : vector<8x512xf32>
    %cst_104 = arith.constant dense<0.000000e+00> : vector<8x2xf32>
    %162 = tpu.matmul %161, %1, %cst_104 {dimension_numbers = #tpu.dot_dimension_numbers<[1], [0], [0], [1], [0, 0, 1, 1], [], []>} : vector<8x512xf32>, vector<512x2xf32>, vector<8x2xf32> -> vector<8x2xf32>
    %163 = arith.mulf %161, %161 : vector<8x512xf32>
    %cst_105 = arith.constant dense<0.000000e+00> : vector<8x2xf32>
    %164 = tpu.matmul %163, %1, %cst_105 {dimension_numbers = #tpu.dot_dimension_numbers<[1], [0], [0], [1], [0, 0, 1, 1], [], []>} : vector<8x512xf32>, vector<512x2xf32>, vector<8x2xf32> -> vector<8x2xf32>
    %c0_106 = arith.constant 0 : index
    %c0_107 = arith.constant 0 : index
    %165 = vector.load %arg4[%c0_106, %c0_107] : memref<8x8xf32, #tpu.memory_space<vmem>>, vector<8x8xf32>
    %cst_108 = arith.constant dense<0.000000e+00> : vector<8x2xf32>
    %166 = tpu.matmul %165, %162, %cst_108 {dimension_numbers = #tpu.dot_dimension_numbers<[1], [0], [0], [1], [0, 0, 1, 1], [], []>} : vector<8x8xf32>, vector<8x2xf32>, vector<8x2xf32> -> vector<8x2xf32>
    %cst_109 = arith.constant 3.906250e-03 : f32
    %167 = vector.broadcast %cst_109 : f32 to vector<8x2xf32>
    %168 = arith.mulf %166, %167 : vector<8x2xf32>
    %c0_110 = arith.constant 0 : index
    %c0_111 = arith.constant 0 : index
    %169 = vector.load %arg4[%c0_110, %c0_111] : memref<8x8xf32, #tpu.memory_space<vmem>>, vector<8x8xf32>
    %cst_112 = arith.constant dense<0.000000e+00> : vector<8x2xf32>
    %170 = tpu.matmul %169, %164, %cst_112 {dimension_numbers = #tpu.dot_dimension_numbers<[1], [0], [0], [1], [0, 0, 1, 1], [], []>} : vector<8x8xf32>, vector<8x2xf32>, vector<8x2xf32> -> vector<8x2xf32>
    %cst_113 = arith.constant 3.906250e-03 : f32
    %171 = vector.broadcast %cst_113 : f32 to vector<8x2xf32>
    %172 = arith.mulf %170, %171 : vector<8x2xf32>
    %173 = arith.mulf %168, %168 : vector<8x2xf32>
    %174 = arith.subf %172, %173 : vector<8x2xf32>
    %cst_114 = arith.constant 0.000000e+00 : f32
    %175 = vector.broadcast %cst_114 : f32 to vector<8x2xf32>
    %176 = arith.maximumf %174, %175 : vector<8x2xf32>
    %c0_115 = arith.constant 0 : index
    %c0_116 = arith.constant 0 : index
    %177 = vector.load %arg16[%c0_115, %c0_116] : memref<8x1xf32, #tpu.memory_space<vmem>>, vector<8x1xf32>
    %cst_117 = arith.constant 9.99999974E-6 : f32
    %178 = vector.broadcast %cst_117 : f32 to vector<8x2xf32>
    %179 = arith.addf %176, %178 : vector<8x2xf32>
    %180 = math.rsqrt %179 : vector<8x2xf32>
    %181 = vector.broadcast %177 : vector<8x1xf32> to vector<8x2xf32>
    %182 = arith.mulf %181, %180 : vector<8x2xf32>
    %c0_118 = arith.constant 0 : index
    %c0_119 = arith.constant 0 : index
    %183 = vector.load %arg17[%c0_118, %c0_119] : memref<8x1xf32, #tpu.memory_space<vmem>>, vector<8x1xf32>
    %184 = arith.mulf %168, %182 : vector<8x2xf32>
    %185 = vector.broadcast %183 : vector<8x1xf32> to vector<8x2xf32>
    %186 = arith.subf %185, %184 : vector<8x2xf32>
    %cst_120 = arith.constant dense<0.000000e+00> : vector<8x512xf32>
    %187 = tpu.matmul %182, %2, %cst_120 {dimension_numbers = #tpu.dot_dimension_numbers<[1], [0], [0], [1], [0, 0, 1, 1], [], []>} : vector<8x2xf32>, vector<2x512xf32>, vector<8x512xf32> -> vector<8x512xf32>
    %188 = arith.mulf %161, %187 : vector<8x512xf32>
    %cst_121 = arith.constant dense<0.000000e+00> : vector<8x512xf32>
    %189 = tpu.matmul %186, %2, %cst_121 {dimension_numbers = #tpu.dot_dimension_numbers<[1], [0], [0], [1], [0, 0, 1, 1], [], []>} : vector<8x2xf32>, vector<2x512xf32>, vector<8x512xf32> -> vector<8x512xf32>
    %190 = arith.addf %188, %189 : vector<8x512xf32>
    %cst_122 = arith.constant 0.000000e+00 : f32
    %191 = vector.broadcast %cst_122 : f32 to vector<8x512xf32>
    %192 = arith.maximumf %190, %191 : vector<8x512xf32>
    %193 = tpu.concatenate %3, %192 in 0 : vector<1x512xf32>, vector<8x512xf32> -> vector<9x512xf32>
    %c17_i32_123 = arith.constant 17 : i32
    %194 = tpu.dynamic_rotate %193 by %c17_i32_123 dim 1 : vector<9x512xf32>, i32 -> vector<9x512xf32>
    %c0_124 = arith.constant 0 : index
    %c0_125 = arith.constant 0 : index
    %c0_126 = arith.constant 0 : index
    %195 = vector.load %arg7[%c0_124, %c0_125, %c0_126] : memref<9x1x512xf32, #tpu.memory_space<vmem>>, vector<1x1x512xf32>
    %196 = vector.shape_cast %195 : vector<1x1x512xf32> to vector<1x512xf32>
    %197 = vector.broadcast %196 : vector<1x512xf32> to vector<9x512xf32>
    %198 = arith.mulf %194, %197 : vector<9x512xf32>
    %c16_i32_127 = arith.constant 16 : i32
    %199 = tpu.dynamic_rotate %193 by %c16_i32_127 dim 1 : vector<9x512xf32>, i32 -> vector<9x512xf32>
    %c1_128 = arith.constant 1 : index
    %c0_129 = arith.constant 0 : index
    %c0_130 = arith.constant 0 : index
    %200 = vector.load %arg7[%c1_128, %c0_129, %c0_130] : memref<9x1x512xf32, #tpu.memory_space<vmem>>, vector<1x1x512xf32>
    %201 = vector.shape_cast %200 : vector<1x1x512xf32> to vector<1x512xf32>
    %202 = vector.broadcast %201 : vector<1x512xf32> to vector<9x512xf32>
    %203 = arith.mulf %199, %202 : vector<9x512xf32>
    %c15_i32_131 = arith.constant 15 : i32
    %204 = tpu.dynamic_rotate %193 by %c15_i32_131 dim 1 : vector<9x512xf32>, i32 -> vector<9x512xf32>
    %c2_132 = arith.constant 2 : index
    %c0_133 = arith.constant 0 : index
    %c0_134 = arith.constant 0 : index
    %205 = vector.load %arg7[%c2_132, %c0_133, %c0_134] : memref<9x1x512xf32, #tpu.memory_space<vmem>>, vector<1x1x512xf32>
    %206 = vector.shape_cast %205 : vector<1x1x512xf32> to vector<1x512xf32>
    %207 = vector.broadcast %206 : vector<1x512xf32> to vector<9x512xf32>
    %208 = arith.mulf %204, %207 : vector<9x512xf32>
    %c1_i32_135 = arith.constant 1 : i32
    %209 = tpu.dynamic_rotate %193 by %c1_i32_135 dim 1 : vector<9x512xf32>, i32 -> vector<9x512xf32>
    %c3_136 = arith.constant 3 : index
    %c0_137 = arith.constant 0 : index
    %c0_138 = arith.constant 0 : index
    %210 = vector.load %arg7[%c3_136, %c0_137, %c0_138] : memref<9x1x512xf32, #tpu.memory_space<vmem>>, vector<1x1x512xf32>
    %211 = vector.shape_cast %210 : vector<1x1x512xf32> to vector<1x512xf32>
    %212 = vector.broadcast %211 : vector<1x512xf32> to vector<9x512xf32>
    %213 = arith.mulf %209, %212 : vector<9x512xf32>
    %c511_i32_139 = arith.constant 511 : i32
    %214 = tpu.dynamic_rotate %193 by %c511_i32_139 dim 1 : vector<9x512xf32>, i32 -> vector<9x512xf32>
    %c5_140 = arith.constant 5 : index
    %c0_141 = arith.constant 0 : index
    %c0_142 = arith.constant 0 : index
    %215 = vector.load %arg7[%c5_140, %c0_141, %c0_142] : memref<9x1x512xf32, #tpu.memory_space<vmem>>, vector<1x1x512xf32>
    %216 = vector.shape_cast %215 : vector<1x1x512xf32> to vector<1x512xf32>
    %217 = vector.broadcast %216 : vector<1x512xf32> to vector<9x512xf32>
    %218 = arith.mulf %214, %217 : vector<9x512xf32>
    %c497_i32_143 = arith.constant 497 : i32
    %219 = tpu.dynamic_rotate %193 by %c497_i32_143 dim 1 : vector<9x512xf32>, i32 -> vector<9x512xf32>
    %c6_144 = arith.constant 6 : index
    %c0_145 = arith.constant 0 : index
    %c0_146 = arith.constant 0 : index
    %220 = vector.load %arg7[%c6_144, %c0_145, %c0_146] : memref<9x1x512xf32, #tpu.memory_space<vmem>>, vector<1x1x512xf32>
    %221 = vector.shape_cast %220 : vector<1x1x512xf32> to vector<1x512xf32>
    %222 = vector.broadcast %221 : vector<1x512xf32> to vector<9x512xf32>
    %223 = arith.mulf %219, %222 : vector<9x512xf32>
    %c496_i32_147 = arith.constant 496 : i32
    %224 = tpu.dynamic_rotate %193 by %c496_i32_147 dim 1 : vector<9x512xf32>, i32 -> vector<9x512xf32>
    %c7_148 = arith.constant 7 : index
    %c0_149 = arith.constant 0 : index
    %c0_150 = arith.constant 0 : index
    %225 = vector.load %arg7[%c7_148, %c0_149, %c0_150] : memref<9x1x512xf32, #tpu.memory_space<vmem>>, vector<1x1x512xf32>
    %226 = vector.shape_cast %225 : vector<1x1x512xf32> to vector<1x512xf32>
    %227 = vector.broadcast %226 : vector<1x512xf32> to vector<9x512xf32>
    %228 = arith.mulf %224, %227 : vector<9x512xf32>
    %c495_i32_151 = arith.constant 495 : i32
    %229 = tpu.dynamic_rotate %193 by %c495_i32_151 dim 1 : vector<9x512xf32>, i32 -> vector<9x512xf32>
    %c8_152 = arith.constant 8 : index
    %c0_153 = arith.constant 0 : index
    %c0_154 = arith.constant 0 : index
    %230 = vector.load %arg7[%c8_152, %c0_153, %c0_154] : memref<9x1x512xf32, #tpu.memory_space<vmem>>, vector<1x1x512xf32>
    %231 = vector.shape_cast %230 : vector<1x1x512xf32> to vector<1x512xf32>
    %232 = vector.broadcast %231 : vector<1x512xf32> to vector<9x512xf32>
    %233 = arith.mulf %229, %232 : vector<9x512xf32>
    %234 = tpu.concatenate %198, %203, %208, %213, %193, %218, %223, %228, %233 in 0 : vector<9x512xf32>, vector<9x512xf32>, vector<9x512xf32>, vector<9x512xf32>, vector<9x512xf32>, vector<9x512xf32>, vector<9x512xf32>, vector<9x512xf32>, vector<9x512xf32> -> vector<81x512xf32>
    %c0_155 = arith.constant 0 : index
    %c0_156 = arith.constant 0 : index
    %235 = vector.load %arg18[%c0_155, %c0_156] : memref<4x81xf32, #tpu.memory_space<vmem>>, vector<4x81xf32>
    %cst_157 = arith.constant dense<0.000000e+00> : vector<4x512xf32>
    %236 = tpu.matmul %235, %234, %cst_157 {dimension_numbers = #tpu.dot_dimension_numbers<[1], [0], [0], [1], [0, 0, 1, 1], [], []>} : vector<4x81xf32>, vector<81x512xf32>, vector<4x512xf32> -> vector<4x512xf32>
    %c0_158 = arith.constant 0 : index
    %c0_159 = arith.constant 0 : index
    %237 = vector.load %arg19[%c0_158, %c0_159] : memref<4x1xf32, #tpu.memory_space<vmem>>, vector<4x1xf32>
    %238 = vector.broadcast %237 : vector<4x1xf32> to vector<4x512xf32>
    %239 = arith.addf %236, %238 : vector<4x512xf32>
    %cst_160 = arith.constant dense<0.000000e+00> : vector<4x2xf32>
    %240 = tpu.matmul %239, %1, %cst_160 {dimension_numbers = #tpu.dot_dimension_numbers<[1], [0], [0], [1], [0, 0, 1, 1], [], []>} : vector<4x512xf32>, vector<512x2xf32>, vector<4x2xf32> -> vector<4x2xf32>
    %241 = arith.mulf %239, %239 : vector<4x512xf32>
    %cst_161 = arith.constant dense<0.000000e+00> : vector<4x2xf32>
    %242 = tpu.matmul %241, %1, %cst_161 {dimension_numbers = #tpu.dot_dimension_numbers<[1], [0], [0], [1], [0, 0, 1, 1], [], []>} : vector<4x512xf32>, vector<512x2xf32>, vector<4x2xf32> -> vector<4x2xf32>
    %c0_162 = arith.constant 0 : index
    %c0_163 = arith.constant 0 : index
    %243 = vector.load %arg3[%c0_162, %c0_163] : memref<4x4xf32, #tpu.memory_space<vmem>>, vector<4x4xf32>
    %cst_164 = arith.constant dense<0.000000e+00> : vector<4x2xf32>
    %244 = tpu.matmul %243, %240, %cst_164 {dimension_numbers = #tpu.dot_dimension_numbers<[1], [0], [0], [1], [0, 0, 1, 1], [], []>} : vector<4x4xf32>, vector<4x2xf32>, vector<4x2xf32> -> vector<4x2xf32>
    %cst_165 = arith.constant 3.906250e-03 : f32
    %245 = vector.broadcast %cst_165 : f32 to vector<4x2xf32>
    %246 = arith.mulf %244, %245 : vector<4x2xf32>
    %c0_166 = arith.constant 0 : index
    %c0_167 = arith.constant 0 : index
    %247 = vector.load %arg3[%c0_166, %c0_167] : memref<4x4xf32, #tpu.memory_space<vmem>>, vector<4x4xf32>
    %cst_168 = arith.constant dense<0.000000e+00> : vector<4x2xf32>
    %248 = tpu.matmul %247, %242, %cst_168 {dimension_numbers = #tpu.dot_dimension_numbers<[1], [0], [0], [1], [0, 0, 1, 1], [], []>} : vector<4x4xf32>, vector<4x2xf32>, vector<4x2xf32> -> vector<4x2xf32>
    %cst_169 = arith.constant 3.906250e-03 : f32
    %249 = vector.broadcast %cst_169 : f32 to vector<4x2xf32>
    %250 = arith.mulf %248, %249 : vector<4x2xf32>
    %251 = arith.mulf %246, %246 : vector<4x2xf32>
    %252 = arith.subf %250, %251 : vector<4x2xf32>
    %cst_170 = arith.constant 0.000000e+00 : f32
    %253 = vector.broadcast %cst_170 : f32 to vector<4x2xf32>
    %254 = arith.maximumf %252, %253 : vector<4x2xf32>
    %c0_171 = arith.constant 0 : index
    %c0_172 = arith.constant 0 : index
    %255 = vector.load %arg20[%c0_171, %c0_172] : memref<4x1xf32, #tpu.memory_space<vmem>>, vector<4x1xf32>
    %cst_173 = arith.constant 9.99999974E-6 : f32
    %256 = vector.broadcast %cst_173 : f32 to vector<4x2xf32>
    %257 = arith.addf %254, %256 : vector<4x2xf32>
    %258 = math.rsqrt %257 : vector<4x2xf32>
    %259 = vector.broadcast %255 : vector<4x1xf32> to vector<4x2xf32>
    %260 = arith.mulf %259, %258 : vector<4x2xf32>
    %c0_174 = arith.constant 0 : index
    %c0_175 = arith.constant 0 : index
    %261 = vector.load %arg21[%c0_174, %c0_175] : memref<4x1xf32, #tpu.memory_space<vmem>>, vector<4x1xf32>
    %262 = arith.mulf %246, %260 : vector<4x2xf32>
    %263 = vector.broadcast %261 : vector<4x1xf32> to vector<4x2xf32>
    %264 = arith.subf %263, %262 : vector<4x2xf32>
    %cst_176 = arith.constant dense<0.000000e+00> : vector<4x512xf32>
    %265 = tpu.matmul %260, %2, %cst_176 {dimension_numbers = #tpu.dot_dimension_numbers<[1], [0], [0], [1], [0, 0, 1, 1], [], []>} : vector<4x2xf32>, vector<2x512xf32>, vector<4x512xf32> -> vector<4x512xf32>
    %266 = arith.mulf %239, %265 : vector<4x512xf32>
    %cst_177 = arith.constant dense<0.000000e+00> : vector<4x512xf32>
    %267 = tpu.matmul %264, %2, %cst_177 {dimension_numbers = #tpu.dot_dimension_numbers<[1], [0], [0], [1], [0, 0, 1, 1], [], []>} : vector<4x2xf32>, vector<2x512xf32>, vector<4x512xf32> -> vector<4x512xf32>
    %268 = arith.addf %266, %267 : vector<4x512xf32>
    %c0_178 = arith.constant 0 : index
    %c0_179 = arith.constant 0 : index
    %c0_180 = arith.constant 0 : index
    %269 = vector.load %arg22[%c0_178, %c0_179, %c0_180] : memref<1x4x512xf32, #tpu.memory_space<vmem>>, vector<1x4x512xf32>
    %270 = vector.shape_cast %269 : vector<1x4x512xf32> to vector<4x512xf32>
    %271 = vector.shape_cast %268 : vector<4x512xf32> to vector<1x4x512xf32>
    tpu.vector_store %arg22[%c0_178, %c0_179, %c0_180], %271 {strides = array<i32>} : memref<1x4x512xf32, #tpu.memory_space<vmem>>, vector<1x4x512xf32>,
    return
  }
  func.func @transform_0(%arg0: i32) -> (i32, i32) {
    %c0_i32 = arith.constant 0 : i32
    %c0_i32_0 = arith.constant 0 : i32
    %c0_i32_1 = arith.constant 0 : i32
    return %c0_i32, %c0_i32_0 : i32, i32
  }
  func.func @transform_1(%arg0: i32) -> (i32, i32, i32) {
    %c0_i32 = arith.constant 0 : i32
    %c0_i32_0 = arith.constant 0 : i32
    %c0_i32_1 = arith.constant 0 : i32
    return %arg0, %c0_i32, %c0_i32_0 : i32, i32, i32
  }
  func.func @transform_2(%arg0: i32) -> (i32, i32) {
    %c0_i32 = arith.constant 0 : i32
    %c0_i32_0 = arith.constant 0 : i32
    %c0_i32_1 = arith.constant 0 : i32
    return %c0_i32, %c0_i32_0 : i32, i32
  }
  func.func @transform_3(%arg0: i32) -> (i32, i32) {
    %c0_i32 = arith.constant 0 : i32
    %c0_i32_0 = arith.constant 0 : i32
    %c0_i32_1 = arith.constant 0 : i32
    return %c0_i32, %c0_i32_0 : i32, i32
  }
  func.func @transform_4(%arg0: i32) -> (i32, i32) {
    %c0_i32 = arith.constant 0 : i32
    %c0_i32_0 = arith.constant 0 : i32
    %c0_i32_1 = arith.constant 0 : i32
    return %c0_i32, %c0_i32_0 : i32, i32
  }
  func.func @transform_5(%arg0: i32) -> (i32, i32) {
    %c0_i32 = arith.constant 0 : i32
    %c0_i32_0 = arith.constant 0 : i32
    %c0_i32_1 = arith.constant 0 : i32
    return %c0_i32, %c0_i32_0 : i32, i32
  }
  func.func @transform_6(%arg0: i32) -> (i32, i32, i32) {
    %c0_i32 = arith.constant 0 : i32
    %c0_i32_0 = arith.constant 0 : i32
    %c0_i32_1 = arith.constant 0 : i32
    %c0_i32_2 = arith.constant 0 : i32
    return %c0_i32, %c0_i32_0, %c0_i32_1 : i32, i32, i32
  }
  func.func @transform_7(%arg0: i32) -> (i32, i32) {
    %c0_i32 = arith.constant 0 : i32
    %c0_i32_0 = arith.constant 0 : i32
    %c0_i32_1 = arith.constant 0 : i32
    return %c0_i32, %c0_i32_0 : i32, i32
  }
  func.func @transform_8(%arg0: i32) -> (i32, i32) {
    %c0_i32 = arith.constant 0 : i32
    %c0_i32_0 = arith.constant 0 : i32
    %c0_i32_1 = arith.constant 0 : i32
    return %c0_i32, %c0_i32_0 : i32, i32
  }
  func.func @transform_9(%arg0: i32) -> (i32, i32) {
    %c0_i32 = arith.constant 0 : i32
    %c0_i32_0 = arith.constant 0 : i32
    %c0_i32_1 = arith.constant 0 : i32
    return %c0_i32, %c0_i32_0 : i32, i32
  }
  func.func @transform_10(%arg0: i32) -> (i32, i32) {
    %c0_i32 = arith.constant 0 : i32
    %c0_i32_0 = arith.constant 0 : i32
    %c0_i32_1 = arith.constant 0 : i32
    return %c0_i32, %c0_i32_0 : i32, i32
  }
  func.func @transform_11(%arg0: i32) -> (i32, i32) {
    %c0_i32 = arith.constant 0 : i32
    %c0_i32_0 = arith.constant 0 : i32
    %c0_i32_1 = arith.constant 0 : i32
    return %c0_i32, %c0_i32_0 : i32, i32
  }
  func.func @transform_12(%arg0: i32) -> (i32, i32) {
    %c0_i32 = arith.constant 0 : i32
    %c0_i32_0 = arith.constant 0 : i32
    %c0_i32_1 = arith.constant 0 : i32
    return %c0_i32, %c0_i32_0 : i32, i32
  }
  func.func @transform_13(%arg0: i32) -> (i32, i32) {
    %c0_i32 = arith.constant 0 : i32
    %c0_i32_0 = arith.constant 0 : i32
    %c0_i32_1 = arith.constant 0 : i32
    return %c0_i32, %c0_i32_0 : i32, i32
  }
  func.func @transform_14(%arg0: i32) -> (i32, i32) {
    %c0_i32 = arith.constant 0 : i32
    %c0_i32_0 = arith.constant 0 : i32
    %c0_i32_1 = arith.constant 0 : i32
    return %c0_i32, %c0_i32_0 : i32, i32
  }
  func.func @transform_15(%arg0: i32) -> (i32, i32) {
    %c0_i32 = arith.constant 0 : i32
    %c0_i32_0 = arith.constant 0 : i32
    %c0_i32_1 = arith.constant 0 : i32
    return %c0_i32, %c0_i32_0 : i32, i32
  }
  func.func @transform_16(%arg0: i32) -> (i32, i32) {
    %c0_i32 = arith.constant 0 : i32
    %c0_i32_0 = arith.constant 0 : i32
    %c0_i32_1 = arith.constant 0 : i32
    return %c0_i32, %c0_i32_0 : i32, i32
  }
  func.func @transform_17(%arg0: i32) -> (i32, i32) {
    %c0_i32 = arith.constant 0 : i32
    %c0_i32_0 = arith.constant 0 : i32
    %c0_i32_1 = arith.constant 0 : i32
    return %c0_i32, %c0_i32_0 : i32, i32
  }
  func.func @transform_18(%arg0: i32) -> (i32, i32) {
    %c0_i32 = arith.constant 0 : i32
    %c0_i32_0 = arith.constant 0 : i32
    %c0_i32_1 = arith.constant 0 : i32
    return %c0_i32, %c0_i32_0 : i32, i32
  }
  func.func @transform_19(%arg0: i32) -> (i32, i32) {
    %c0_i32 = arith.constant 0 : i32
    %c0_i32_0 = arith.constant 0 : i32
    %c0_i32_1 = arith.constant 0 : i32
    return %c0_i32, %c0_i32_0 : i32, i32
  }
  func.func @transform_20(%arg0: i32) -> (i32, i32) {
    %c0_i32 = arith.constant 0 : i32
    %c0_i32_0 = arith.constant 0 : i32
    %c0_i32_1 = arith.constant 0 : i32
    return %c0_i32, %c0_i32_0 : i32, i32
  }
  func.func @transform_21(%arg0: i32) -> (i32, i32, i32) {
    %c0_i32 = arith.constant 0 : i32
    %c0_i32_0 = arith.constant 0 : i32
    %c0_i32_1 = arith.constant 0 : i32
    return %arg0, %c0_i32, %c0_i32_0 : i32, i32, i32
  }
}

</mosaic_0001>

<bundles_post_ra>
// kernel: tpu_custom_call.1
= control target key start
LH: loop header
LB: loop body
LE: loop exit
PB: predicated region body
PF: predicated region fallthrough
CT: control target
= control target key end

     0   :  { %s7927_s0 = inlined_call_operand.<no memory space> [shape: f32[1,1], index: 0, kind: input, shape index: {}]   ;;  %s7928_s1 = inlined_call_operand.vmem [shape: f32[1,4,512], index: 1, kind: input, shape index: {}]   ;;  %s7929_s2 = inlined_call_operand.vmem [shape: f32[4,4], index: 2, kind: input, shape index: {}]   ;;  %s7930_s3 = inlined_call_operand.vmem [shape: f32[8,8], index: 3, kind: input, shape index: {}]   ;;  %s7931_s4 = inlined_call_operand.vmem [shape: f32[512,2], index: 4, kind: input, shape index: {}]   ;;  %s7932_s5 = inlined_call_operand.vmem [shape: f32[2,512], index: 5, kind: input, shape index: {}]   ;;  %s7933_s6 = inlined_call_operand.vmem [shape: f32[9,1,512], index: 6, kind: input, shape index: {}]   ;;  %s7934_s7 = inlined_call_operand.vmem [shape: f32[4,1], index: 7, kind: input, shape index: {}]   ;;  %s7935_s8 = inlined_call_operand.vmem [shape: f32[4,1], index: 8, kind: input, shape index: {}]   ;;  %s7936_s9 = inlined_call_operand.vmem [shape: f32[8,45], index: 9, kind: input, shape index: {}]   ;;  %s7937_s10 = inlined_call_operand.vmem [shape: f32[8,1], index: 10, kind: input, shape index: {}]   ;;  %s7938_s11 = inlined_call_operand.vmem [shape: f32[8,1], index: 11, kind: input, shape index: {}]   ;;  %s7939_s12 = inlined_call_operand.vmem [shape: f32[8,1], index: 12, kind: input, shape index: {}]   ;;  %s7940_s13 = inlined_call_operand.vmem [shape: f32[8,81], index: 13, kind: input, shape index: {}]   ;;  %s7941_s14 = inlined_call_operand.vmem [shape: f32[8,1], index: 14, kind: input, shape index: {}]   ;;  %s7942_s15 = inlined_call_operand.vmem [shape: f32[8,1], index: 15, kind: input, shape index: {}]   ;;  %s7943_s16 = inlined_call_operand.vmem [shape: f32[8,1], index: 16, kind: input, shape index: {}]   ;;  %s7944_s17 = inlined_call_operand.vmem [shape: f32[4,81], index: 17, kind: input, shape index: {}]   ;;  %s7945_s18 = inlined_call_operand.vmem [shape: f32[4,1], index: 18, kind: input, shape index: {}]   ;;  %s7946_s19 = inlined_call_operand.vmem [shape: f32[4,1], index: 19, kind: input, shape index: {}]   ;;  %s7947_s20 = inlined_call_operand.vmem [shape: f32[4,1], index: 20, kind: input, shape index: {}]   ;;  %s7948_s21 = inlined_call_operand.hbm [shape: f32[1,4,512], index: 21, kind: output, shape index: {}]  }
   0x1   :  { %8062 = sst [smem:[#allocation52_spill]] %s7927_s0 }
   0x2   :  { %8063 = sst [smem:[#allocation53_spill]] %s7928_s1 }
   0x3   :  { %8064 = sst [smem:[#allocation54_spill]] %s7929_s2 }
   0x4   :  { %8065 = sst [smem:[#allocation55_spill]] %s7930_s3 }
   0x5   :  { %8066 = sst [smem:[#allocation56_spill]] %s7931_s4 }
   0x6   :  { %8067 = sst [smem:[#allocation57_spill]] %s7932_s5 }
   0x7   :  { %s8068_s26 = sld [smem:[#allocation56_spill]] }
   0x8   :  { %s8069_s2 = sld [smem:[#allocation53_spill]] }
   0xd   :  { %v4109_v0 = vld [vmem:[%s8068_s26 + $0x178] sm:$0xff]  ;;  %v4114_v1 = vld [vmem:[%s8068_s26 + $0x170] sm:$0xff]  ;;  %v4136_v5 = vld [vmem:[%s8068_s26 + $0x168] sm:$0xff] }
   0xe   :  { %v4119_v2 = vld [vmem:[%s8068_s26 + $0x1f8] sm:$0xff]  ;;  %192 = vmatpush.msra.mxu2 %v4109_v0  ;;  %v4143_v6 = vld [vmem:[%s8068_s26 + $0x1f0] sm:$0xff]  ;;  %v4160_v9 = vld [vmem:[%s8068_s26 + $0x1e8] sm:$0xff] }
   0xf   :  { %212 = vmatpush.msra.mxu3 %v4119_v2  ;;  %v4126_v3 = vld [vmem:[%s8068_s26 + $0x78] sm:$0xff]  ;;  %v4148_v7 = vld [vmem:[%s8068_s26 + $0x70] sm:$0xff]  ;;  %v4165_v10 = vld [vmem:[%s8068_s26 + $0x68] sm:$0xff] }
  0x10   :  { %v4131_v4 = vld [vmem:[%s8068_s26 + $0xf8] sm:$0xff]  ;;  %152 = vmatpush.msra.mxu0 %v4126_v3  ;;  %v4153_v8 = vld [vmem:[%s8068_s26 + $0xf0] sm:$0xff]  ;;  %193 = vmatpush.msra.mxu2 %v4114_v1  ;;  %v4172_v11 = vld [vmem:[%s8068_s26 + $0x160] sm:$0xff] }
  0x11   :  { %172 = vmatpush.msra.mxu1 %v4131_v4  ;;  %213 = vmatpush.msra.mxu3 %v4143_v6  ;;  %v4177_v12 = vld [vmem:[%s8068_s26 + $0xe8] sm:$0xff]  ;;  %v4182_v13 = vld [vmem:[%s8068_s26 + $0x1e0] sm:$0xff]  ;;  %v4201_v16 = vld [vmem:[%s8068_s26 + $0x158] sm:$0xff] }
  0x12   :  { %153 = vmatpush.msra.mxu0 %v4148_v7  ;;  %194 = vmatpush.msra.mxu2 %v4136_v5  ;;  %v4189_v14 = vld [vmem:[%s8068_s26 + $0x60] sm:$0xff]  ;;  %v4206_v17 = vld [vmem:[%s8068_s26 + $0x1d8] sm:$0xff]  ;;  %v4225_v20 = vld [vmem:[%s8068_s26 + $0x150] sm:$0xff] }
  0x13   :  { %173 = vmatpush.msra.mxu1 %v4153_v8  ;;  %214 = vmatpush.msra.mxu3 %v4160_v9  ;;  %v4194_v15 = vld [vmem:[%s8068_s26 + $0xe0] sm:$0xff]  ;;  %v4213_v18 = vld [vmem:[%s8068_s26 + $0x58] sm:$0xff]  ;;  %v4230_v21 = vld [vmem:[%s8068_s26 + $0x1d0] sm:$0xff] }
  0x14   :  { %154 = vmatpush.msra.mxu0 %v4165_v10  ;;  %195 = vmatpush.msra.mxu2 %v4172_v11  ;;  %v4218_v19 = vld [vmem:[%s8068_s26 + $0xd8] sm:$0xff]  ;;  %v4237_v22 = vld [vmem:[%s8068_s26 + $0x50] sm:$0xff]  ;;  %v4249_v24 = vld [vmem:[%s8068_s26 + $0x148] sm:$0xff] }
  0x15   :  { %174 = vmatpush.msra.mxu1 %v4177_v12  ;;  %215 = vmatpush.msra.mxu3 %v4182_v13  ;;  %v4242_v23 = vld [vmem:[%s8068_s26 + $0xd0] sm:$0xff]  ;;  %v4254_v25 = vld [vmem:[%s8068_s26 + $0x1c8] sm:$0xff]  ;;  %v4273_v28 = vld [vmem:[%s8068_s26 + $0x140] sm:$0xff] }
  0x16   :  { %155 = vmatpush.msra.mxu0 %v4189_v14  ;;  %196 = vmatpush.msra.mxu2 %v4201_v16  ;;  %v4261_v26 = vld [vmem:[%s8068_s26 + $0x48] sm:$0xff]  ;;  %v4278_v29 = vld [vmem:[%s8068_s26 + $0x1c0] sm:$0xff]  ;;  %v4297_v32 = vld [vmem:[%s8068_s26 + $0x138] sm:$0xff] }
  0x17   :  { %175 = vmatpush.msra.mxu1 %v4194_v15  ;;  %216 = vmatpush.msra.mxu3 %v4206_v17  ;;  %v4266_v27 = vld [vmem:[%s8068_s26 + $0xc8] sm:$0xff]  ;;  %v4285_v30 = vld [vmem:[%s8068_s26 + $0x40] sm:$0xff]  ;;  %v4302_v33 = vld [vmem:[%s8068_s26 + $0x1b8] sm:$0xff] }
  0x18   :  { %156 = vmatpush.msra.mxu0 %v4213_v18  ;;  %197 = vmatpush.msra.mxu2 %v4225_v20  ;;  %v4290_v31 = vld [vmem:[%s8068_s26 + $0xc0] sm:$0xff]  ;;  %v4309_v34 = vld [vmem:[%s8068_s26 + $0x38] sm:$0xff]  ;;  %v4321_v36 = vld [vmem:[%s8068_s26 + $0x130] sm:$0xff] }
  0x19   :  { %176 = vmatpush.msra.mxu1 %v4218_v19  ;;  %217 = vmatpush.msra.mxu3 %v4230_v21  ;;  %v4314_v35 = vld [vmem:[%s8068_s26 + $0xb8] sm:$0xff]  ;;  %v4326_v37 = vld [vmem:[%s8068_s26 + $0x1b0] sm:$0xff]  ;;  %v4345_v40 = vld [vmem:[%s8068_s26 + $0x128] sm:$0xff] }
  0x1a   :  { %157 = vmatpush.msra.mxu0 %v4237_v22  ;;  %198 = vmatpush.msra.mxu2 %v4249_v24  ;;  %v4333_v38 = vld [vmem:[%s8068_s26 + $0x30] sm:$0xff]  ;;  %v4350_v41 = vld [vmem:[%s8068_s26 + $0x1a8] sm:$0xff]  ;;  %v4369_v44 = vld [vmem:[%s8068_s26 + $0x120] sm:$0xff] }
  0x1b   :  { %177 = vmatpush.msra.mxu1 %v4242_v23  ;;  %218 = vmatpush.msra.mxu3 %v4254_v25  ;;  %v4338_v39 = vld [vmem:[%s8068_s26 + $0xb0] sm:$0xff]  ;;  %v4357_v42 = vld [vmem:[%s8068_s26 + $0x28] sm:$0xff]  ;;  %v4374_v45 = vld [vmem:[%s8068_s26 + $0x1a0] sm:$0xff] }
  0x1c   :  { %158 = vmatpush.msra.mxu0 %v4261_v26  ;;  %199 = vmatpush.msra.mxu2 %v4273_v28  ;;  %v4362_v43 = vld [vmem:[%s8068_s26 + $0xa8] sm:$0xff]  ;;  %v4379_v46 = vld [vmem:[%s8068_s26 + $0x20] sm:$0xff]  ;;  %v4403_v50 = vld [vmem:[%s8068_s26 + $0x118] sm:$0xff] }
  0x1d   :  { %178 = vmatpush.msra.mxu1 %v4266_v27  ;;  %219 = vmatpush.msra.mxu3 %v4278_v29  ;;  %v4386_v47 = vld [vmem:[%s8068_s26 + $0xa0] sm:$0xff]  ;;  %v4391_v48 = vld [vmem:[%s8069_s2 + $0x8] sm:$0xff]  ;;  %v4408_v51 = vld [vmem:[%s8068_s26 + $0x198] sm:$0xff] }
  0x1e   :  { %159 = vmatpush.msra.mxu0 %v4285_v30  ;;  %200 = vmatpush.msra.mxu2 %v4297_v32  ;;  %8070 = vst [vmem:[#allocation6_spill] sm:$0xff] %v4391_v48  ;;  %v4396_v49 = vld [vmem:[%s8069_s2] sm:$0xff] }
  0x1f   :  { %179 = vmatpush.msra.mxu1 %v4290_v31  ;;  %220 = vmatpush.msra.mxu3 %v4302_v33  ;;  %8071 = vst [vmem:[#allocation7_spill] sm:$0xff] %v4408_v51 }
  0x20   :  { %160 = vmatpush.msra.mxu0 %v4309_v34  ;;  %201 = vmatpush.msra.mxu2 %v4321_v36  ;;  %143 = vst [vmem:[#allocation1 + $0x10] ss:$2 sm:$0xff] %v4391_v48 }
  0x21   :  { %180 = vmatpush.msra.mxu1 %v4314_v35  ;;  %221 = vmatpush.msra.mxu3 %v4326_v37 }
  0x22   :  { %161 = vmatpush.msra.mxu0 %v4333_v38  ;;  %202 = vmatpush.msra.mxu2 %v4345_v40 }
  0x23   :  { %181 = vmatpush.msra.mxu1 %v4338_v39  ;;  %222 = vmatpush.msra.mxu3 %v4350_v41 }
  0x24   :  { %162 = vmatpush.msra.mxu0 %v4357_v42 }
  0x25   :  { %182 = vmatpush.msra.mxu1 %v4362_v43 }
  0x26   :  { %27 = vsyncpa [#allocation4], 0  ;;  %203 = vmatpush.msra.mxu2 %v4369_v44  ;;  %223 = vmatpush.msra.mxu3 %v4374_v45  ;;  %v4416_v52 = vld [vmem:[%s8068_s26 + $0x18] sm:$0xff]  ;;  %141 = vst [vmem:[#allocation1] ss:$2 sm:$0xff] %v4396_v49  ;;  %v4429_v54 = vld [vmem:[%s8068_s26 + $0x110] sm:$0xff]  ;;  %v233_v63 = vmul.f32 %v4391_v48, %v4391_v48  ;;  %v232_v48 = vmul.f32 %v4396_v49, %v4396_v49 }
  0x27   :  { %8072 = vst [vmem:[#allocation8_spill] sm:$0xff] %v4416_v52  ;;  %v4421_v53 = vld [vmem:[%s8068_s26 + $0x98] sm:$0xff]  ;;  %163 = vmatpush.msra.mxu0 %v4379_v46  ;;  %183 = vmatpush.msra.mxu1 %v4386_v47  ;;  %v4434_v55 = vld [vmem:[%s8068_s26 + $0x190] sm:$0xff]  ;;  %v4453_v58 = vld [vmem:[%s8068_s26 + $0x108] sm:$0xff]  ;;  %vm332_vm0 = vcmask 1043456   ;;  %s8085_s1 = sld [smem:[#allocation54_spill]] }
  0x28   :  { %8073 = vst [vmem:[#allocation9_spill] sm:$0xff] %v4421_v53  ;;  %204 = vmatpush.msra.mxu2 %v4403_v50  ;;  %224 = vmatpush.msra.mxu3 %v4408_v51  ;;  %v4441_v56 = vld [vmem:[%s8068_s26 + $0x10] sm:$0xff]  ;;  %v4458_v59 = vld [vmem:[%s8068_s26 + $0x188] sm:$0xff]  ;;  %v4465_v60 = vld [vmem:[%s8068_s26 + $0x100] sm:$0xff]  ;;  %vm7984_vm1 = vcmask 31744   ;;  %s8086_s2 = sld [smem:[#allocation57_spill]] }
  0x29   :  { %8074 = vst [vmem:[#allocation10_spill] sm:$0xff] %v4429_v54  ;;  %v4446_v57 = vld [vmem:[%s8068_s26 + $0x90] sm:$0xff]  ;;  %164 = vmatpush.msra.mxu0 %v4416_v52  ;;  %184 = vmatpush.msra.mxu1 %v4421_v53  ;;  %v4470_v61 = vld [vmem:[%s8068_s26 + $0x8] sm:$0xff]  ;;  %v4489_v53 = vld [vmem:[%s8068_s26] sm:$0xff]  ;;  %vm420_vm2 = vcmask 1041408   ;;  %vm416_vm6 = vcmask 15360  }
  0x2a   :  { %8075 = vst [vmem:[#allocation11_spill] sm:$0xff] %v4434_v55  ;;  %205 = vmatpush.msra.mxu2 %v4429_v54  ;;  %225 = vmatpush.msra.mxu3 %v4434_v55  ;;  %v4475_v62 = vld [vmem:[%s8068_s26 + $0x88] sm:$0xff]  ;;  %v4484_v55 = vld [vmem:[%s8068_s26 + $0x180] sm:$0xff]  ;;  %vm648_vm7 = vcmask 1040384   ;;  %s8088_s3 = sld [smem:[#allocation52_spill]]  ;;  %s3987_s28 = smov 112  }
  0x2b   :  { %8076 = vst [vmem:[#allocation12_spill] sm:$0xff] %v4441_v56  ;;  %165 = vmatpush.msra.mxu0 %v4441_v56  ;;  %185 = vmatpush.msra.mxu1 %v4446_v57  ;;  %v4494_v52 = vld [vmem:[%s8068_s26 + $0x80] sm:$0xff]  ;;  %v147_v56 = vld.sshfl [vmem:[#allocation1 + $0x18] sm:$0xff pattern:$0x75316420]  ;;  %s3988_s29 = smov 113  }
  0x2c   :  { %8077 = vst [vmem:[#allocation13_spill] sm:$0xff] %v4446_v57  ;;  %206 = vmatpush.msra.mxu2 %v4453_v58  ;;  %226 = vmatpush.msra.mxu3 %v4458_v59  ;;  %v146_v57 = vld.sshfl [vmem:[#allocation1 + $0x10] sm:$0xff pattern:$0x75316420]  ;;  %s3989_s0 = smov 127   ;;  %s3990_s4 = smov 111  }
  0x2d   :  { %166 = vmatpush.msra.mxu0 %v4470_v61  ;;  %186 = vmatpush.msra.mxu1 %v4475_v62  ;;  %v144_v51 = vld.sshfl [vmem:[#allocation1] sm:$0xff pattern:$0x75316420]  ;;  %v145_v54 = vld.sshfl [vmem:[#allocation1 + $0x8] sm:$0xff pattern:$0x75316420] }
  0x2e   :  { %207 = vmatpush.msra.mxu2 %v4465_v60  ;;  %227 = vmatpush.msra.mxu3 %v4484_v55  ;;  %238 = vst [vmem:[#allocation1 + $0x10] ss:$2 sm:$0xff] %v233_v63  ;;  %s3991_s30 = smov 1   ;;  %s3992_s5 = smov 16   ;;  %vm962_vm9 = vcmask 1044480   ;;  %vm7985_vm12 = vcmask 1042432  }
  0x2f   :  { %236 = vst [vmem:[#allocation1] ss:$2 sm:$0xff] %v232_v48  ;;  %167 = vmatpush.msra.mxu0 %v4489_v53  ;;  %187 = vmatpush.msra.mxu1 %v4494_v52  ;;  %s3993_s22 = smov 15   ;;  %s3994_s23 = smov 17  }
  0x30   :  { %287 = vmatpush.msrb.mxu2 %v4109_v0  ;;  %307 = vmatpush.msrb.mxu3 %v4119_v2  ;;  %v8078_v0 = vld [vmem:[#allocation10_spill] sm:$0xff]  ;;  %v8080_v2 = vld [vmem:[#allocation8_spill] sm:$0xff] }
  0x31   :  { %247 = vmatpush.msrb.mxu0 %v4126_v3  ;;  %267 = vmatpush.msrb.mxu1 %v4131_v4  ;;  %v8081_v3 = vld [vmem:[#allocation9_spill] sm:$0xff] }
  0x32   :  { %288 = vmatpush.msrb.mxu2 %v4114_v1  ;;  %308 = vmatpush.msrb.mxu3 %v4143_v6  ;;  %v8079_v1 = vld [vmem:[#allocation7_spill] sm:$0xff]  ;;  %v8083_v6 = vld [vmem:[#allocation12_spill] sm:$0xff] }
  0x33   :  { %248 = vmatpush.msrb.mxu0 %v4148_v7  ;;  %268 = vmatpush.msrb.mxu1 %v4153_v8  ;;  %v8084_v7 = vld [vmem:[#allocation13_spill] sm:$0xff] }
  0x34   :  { %289 = vmatpush.msrb.mxu2 %v4136_v5  ;;  %309 = vmatpush.msrb.mxu3 %v4160_v9  ;;  %v8082_v5 = vld [vmem:[#allocation11_spill] sm:$0xff] }
  0x35   :  { %249 = vmatpush.msrb.mxu0 %v4165_v10  ;;  %269 = vmatpush.msrb.mxu1 %v4177_v12  ;;  %v241_v4 = vld.sshfl [vmem:[#allocation1 + $0x10] sm:$0xff pattern:$0x75316420]  ;;  %v242_v8 = vld.sshfl [vmem:[#allocation1 + $0x18] sm:$0xff pattern:$0x75316420] }
  0x36   :  { %290 = vmatpush.msrb.mxu2 %v4172_v11  ;;  %310 = vmatpush.msrb.mxu3 %v4182_v13  ;;  %v239_v9 = vld.sshfl [vmem:[#allocation1] sm:$0xff pattern:$0x75316420]  ;;  %v240_v10 = vld.sshfl [vmem:[#allocation1 + $0x8] sm:$0xff pattern:$0x75316420] }
  0x37   :  { %250 = vmatpush.msrb.mxu0 %v4189_v14  ;;  %270 = vmatpush.msrb.mxu1 %v4194_v15  ;;  %v384_v11 = vld [vmem:[%s7934_s7] sm:$0xf]  ;;  %v3986_v12 = vmov 0  }
  0x38   :  { %291 = vmatpush.msrb.mxu2 %v4201_v16  ;;  %311 = vmatpush.msrb.mxu3 %v4206_v17  ;;  %v402_v13 = vld [vmem:[%s7935_s8] sm:$0xf] }
  0x39   :  { %251 = vmatpush.msrb.mxu0 %v4213_v18  ;;  %271 = vmatpush.msrb.mxu1 %v4218_v19 }
  0x3a   :  { %292 = vmatpush.msrb.mxu2 %v4225_v20  ;;  %312 = vmatpush.msrb.mxu3 %v4230_v21  ;;  %v327_v21 = vld [vmem:[%s8085_s1] sm:$0xf] }
  0x3b   :  { %252 = vmatpush.msrb.mxu0 %v4237_v22  ;;  %272 = vmatpush.msrb.mxu1 %v4242_v23 }
  0x3c   :  { %293 = vmatpush.msrb.mxu2 %v4249_v24  ;;  %313 = vmatpush.msrb.mxu3 %v4254_v25 }
  0x3d   :  { %253 = vmatpush.msrb.mxu0 %v4261_v26  ;;  %273 = vmatpush.msrb.mxu1 %v4266_v27 }
  0x3e   :  { %294 = vmatpush.msrb.mxu2 %v4273_v28  ;;  %314 = vmatpush.msrb.mxu3 %v4278_v29  ;;  %v4586_v29 = vld [vmem:[%s8086_s2] sm:$0xff] }
  0x3f   :  { %254 = vmatpush.msrb.mxu0 %v4285_v30  ;;  %274 = vmatpush.msrb.mxu1 %v4290_v31  ;;  %411 = vst [vmem:[#allocation1] ss:$4 sm:$0xff] %v4586_v29 }
  0x40   :  { %295 = vmatpush.msrb.mxu2 %v4297_v32  ;;  %315 = vmatpush.msrb.mxu3 %v4302_v33 }
  0x41   :  { %255 = vmatpush.msrb.mxu0 %v4309_v34  ;;  %275 = vmatpush.msrb.mxu1 %v4314_v35 }
  0x42   :  { %296 = vmatpush.msrb.mxu2 %v4321_v36  ;;  %316 = vmatpush.msrb.mxu3 %v4326_v37 }
  0x43   :  { %256 = vmatpush.msrb.mxu0 %v4333_v38  ;;  %276 = vmatpush.msrb.mxu1 %v4338_v39 }
  0x44   :  { %297 = vmatpush.msrb.mxu2 %v4345_v40  ;;  %317 = vmatpush.msrb.mxu3 %v4350_v41 }
  0x45   :  { %257 = vmatpush.msrb.mxu0 %v4357_v42  ;;  %208 = vmatmul.f32.vlgmr.msra.gmra.mxu2 %v146_v57 }
  0x46   :  { %298 = vmatpush.msrb.mxu2 %v4369_v44  ;;  %277 = vmatpush.msrb.mxu1 %v4362_v43  ;;  %v412_v32 = vld.sshfl [vmem:[#allocation1] sm:$0xff pattern:$0x73625140]  ;;  %v413_v33 = vld.sshfl [vmem:[#allocation1 + $0x8] sm:$0xff pattern:$0x73625140] }
  0x47   :  { %318 = vmatpush.msrb.mxu3 %v4374_v45  ;;  %258 = vmatpush.msrb.mxu0 %v4379_v46  ;;  %v414_v34 = vld.sshfl [vmem:[#allocation1 + $0x10] sm:$0xff pattern:$0x73625140]  ;;  %v415_v35 = vld.sshfl [vmem:[#allocation1 + $0x18] sm:$0xff pattern:$0x73625140] }
  0x48   :  { %299 = vmatpush.msrb.mxu2 %v4403_v50  ;;  %228 = vmatmul.f32.vlgmr.msra.gmra.mxu3 %v147_v56  ;;  %521 = vst [vmem:[#allocation1] ss:$4 sm:$0xff] %v4586_v29 }
  0x49   :  { %278 = vmatpush.msrb.mxu1 %v4386_v47  ;;  %319 = vmatpush.msrb.mxu3 %v8079_v1 }
  0x4a   :  { %300 = vmatpush.msrb.mxu2 %v8078_v0  ;;  %168 = vmatmul.f32.vlgmr.msra.gmra.mxu0 %v144_v51 }
  0x4b   :  { %188 = vmatmul.f32.vlgmr.msra.gmra.mxu1 %v145_v54  ;;  %259 = vmatpush.msrb.mxu0 %v8080_v2 }
  0x4c   :  { %279 = vmatpush.msrb.mxu1 %v8081_v3  ;;  %301 = vmatpush.msrb.mxu2 %v4453_v58 }
  0x4d   :  { %320 = vmatpush.msrb.mxu3 %v8082_v5  ;;  %260 = vmatpush.msrb.mxu0 %v8083_v6 }
  0x4e   :  { %280 = vmatpush.msrb.mxu1 %v8084_v7  ;;  %302 = vmatpush.msrb.mxu2 %v4465_v60 }
  0x4f   :  { %321 = vmatpush.msrb.mxu3 %v4458_v59  ;;  %303 = vmatmul.f32.vlgmr.msrb.gmra.mxu2 %v241_v4  ;;  %v522_v41 = vld.sshfl [vmem:[#allocation1] sm:$0xff pattern:$0x73625140]  ;;  %v523_v42 = vld.sshfl [vmem:[#allocation1 + $0x8] sm:$0xff pattern:$0x73625140] }
  0x50   :  { %261 = vmatpush.msrb.mxu0 %v4470_v61  ;;  %281 = vmatpush.msrb.mxu1 %v4475_v62  ;;  %v524_v43 = vld.sshfl [vmem:[#allocation1 + $0x10] sm:$0xff pattern:$0x73625140]  ;;  %v525_v45 = vld.sshfl [vmem:[#allocation1 + $0x18] sm:$0xff pattern:$0x73625140] }
  0x51   :  { %322 = vmatpush.msrb.mxu3 %v4484_v55  ;;  %3755 = vset.pattern.permute.xlu0 %v3986_v12  ;;  %v8087_v4 = vld [vmem:[#allocation6_spill] sm:$0xff] }
  0x52   :  { %323 = vmatmul.f32.vlgmr.msrb.gmra.mxu3 %v242_v8  ;;  %262 = vmatpush.msrb.mxu0 %v4489_v53 }
  0x53   :  { %282 = vmatpush.msrb.mxu1 %v4494_v52  ;;  %263 = vmatmul.f32.vlgmr.msrb.gmra.mxu0 %v239_v9 }
  0x54   :  { %283 = vmatmul.f32.vlgmr.msrb.gmra.mxu1 %v240_v10  ;;  %3756 = vset.pattern.permute.xlu1 %v3986_v12 }
  0x55   :  { %398 = vperm.xlu0 %3755, %v384_v11   ;;  %3757 = vset.pattern.permute.xlu2 %v3986_v12 }
  0x56   :  { %3642 = vmatpush.msk.msra.mxu2 %vm420_vm2, %v412_v32  ;;  %3644 = vmatpush.msk.msra.mxu3 %vm420_vm2, %v413_v33 }
  0x58   :  { %3650 = vmatpush.msk.msrb.mxu2 %vm420_vm2, %v522_v41  ;;  %3652 = vmatpush.msk.msrb.mxu3 %vm420_vm2, %v523_v42 }
  0x5d   :  { %406 = vperm.xlu0 %3755, %v402_v13  }
  0xc7   :  { %v169_v14 = vpop.f32.mrf.mxu0  ;;  %v399_v52 = vpop.permute.xlu0 %398 }
  0xc8   :  { %v189_v15 = vpop.f32.mrf.mxu1  ;;  %v209_v17 = vpop.f32.mrf.mxu2 }
  0xc9   :  { %v190_v16 = vadd.f32 %v189_v15, %v169_v14 }
  0xcb   :  { %v210_v18 = vadd.f32 %v209_v17, %v190_v16  ;;  %v229_v19 = vpop.f32.mrf.mxu3 }
  0xcd   :  { %v230_v20 = vadd.f32 %v229_v19, %v210_v18  ;;  %v4615_v18 = vstv %s8088_s3 }
  0xce   :  { %8089 = vst [vmem:[#allocation10_spill] sm:$0xff] %v4615_v18 }
  0xcf   :  { %3638 = vmatpush.msk.msra.mxu0 %vm332_vm0, %v230_v20  ;;  %v407_v57 = vpop.permute.xlu0 %406 }
  0xd0   :  { %v264_v22 = vpop.f32.mrf.mxu0  ;;  %3639 = vmatmul.msk.f32.vlgmr.msra.gmra.mxu0 %vm7984_vm1, %v327_v21 }
  0xd1   :  { %v284_v23 = vpop.f32.mrf.mxu1  ;;  %3646 = vmatpush.msk.msrb.mxu0 %vm420_vm2, %v414_v34 }
  0xd2   :  { %v285_v24 = vadd.f32 %v284_v23, %v264_v22  ;;  %v304_v25 = vpop.f32.mrf.mxu2 }
  0xd3   :  { %3654 = vmatpush.msk.msra.mxu0 %vm420_vm2, %v524_v43 }
  0xd4   :  { %v305_v26 = vadd.f32 %v304_v25, %v285_v24 }
  0xd5   :  { %v324_v27 = vpop.f32.mrf.mxu3 }
  0xd6   :  { %v325_v28 = vadd.f32 %v324_v27, %v305_v26 }
  0xd8   :  { %3640 = vmatpush.msk.msra.mxu1 %vm332_vm0, %v325_v28 }
  0xd9   :  { %3641 = vmatmul.msk.f32.vlgmr.msra.gmra.mxu1 %vm7984_vm1, %v327_v21  ;;  %vm971_vm1 = vcmask 1046528  }
  0xda   :  { %3648 = vmatpush.msk.msrb.mxu1 %vm420_vm2, %v415_v35 }
  0xdc   :  { %3656 = vmatpush.msk.msra.mxu1 %vm420_vm2, %v525_v45 }
 0x14d   :  { %v353_v30 = vpop.f32.mrf.mxu0 }
 0x14e   :  { %v356_v31 = vmul.f32 0.00390625, %v353_v30 }
 0x150   :  { %v381_v36 = vmul.f32 %v356_v31, %v356_v31 }
 0x156   :  { %v377_v37 = vpop.f32.mrf.mxu1 }
 0x157   :  { %v380_v38 = vmul.f32 0.00390625, %v377_v37 }
 0x159   :  { %v382_v39 = vsub.f32 %v380_v38, %v381_v36 }
 0x15b   :  { %v383_v40 = vmax.f32 %v382_v39, 0.0 }
 0x15d   :  { %v385_v44 = vadd.f32 1e-05, %v383_v40 }
 0x15f   :  { %3758 = vrsqrt.f32 %v385_v44  ;;  %vm392_vm4 = vweird.f32 %v385_v44 }
 0x165   :  { %v3759_v46 = vpop.eup %3758 }
 0x166   :  { %v387_v47 = vmul.f32 %v3759_v46, %v385_v44  ;;  %vm393_vm3 = vweird.f32 %v3759_v46 }
 0x167   :  { %vm394_vm5 = vmor %vm392_vm4, %vm393_vm3 }
 0x168   :  { %v388_v48 = vmul.f32 %v3759_v46, %v387_v47 }
 0x16a   :  { %v389_v50 = vmul.f32 0.5, %v388_v48 }
 0x16c   :  { %v390_v51 = vsub.f32 1.5, %v389_v50 }
 0x16e   :  { %v391_v53 = vmul.f32 %v3759_v46, %v390_v51 }
 0x170   :  { %v395_v54 = vsel %vm394_vm5, %v3759_v46, %v391_v53  ;;  %vm984_vm5 = vcmask 1045504  }
 0x171   :  { %v401_v55 = vmul.f32 %v399_v52, %v395_v54 }
 0x173   :  { %3643 = vmatmul.msk.f32.vlgmr.msra.gmra.mxu2 %vm416_vm6, %v401_v55  ;;  %3645 = vmatmul.msk.f32.vlgmr.msra.gmra.mxu3 %vm416_vm6, %v401_v55  ;;  %v403_v56 = vmul.f32 %v401_v55, %v356_v31 }
 0x174   :  { %3647 = vmatmul.msk.f32.vlgmr.msrb.gmra.mxu0 %vm416_vm6, %v401_v55  ;;  %3649 = vmatmul.msk.f32.vlgmr.msrb.gmra.mxu1 %vm416_vm6, %v401_v55 }
 0x175   :  { %v409_v58 = vsub.f32 %v407_v57, %v403_v56 }
 0x17b   :  { %3651 = vmatmul.msk.f32.vlgmr.msrb.gmra.mxu2 %vm416_vm6, %v409_v58  ;;  %3653 = vmatmul.msk.f32.vlgmr.msrb.gmra.mxu3 %vm416_vm6, %v409_v58 }
 0x17c   :  { %3655 = vmatmul.msk.f32.vlgmr.msra.gmra.mxu0 %vm416_vm6, %v409_v58  ;;  %3657 = vmatmul.msk.f32.vlgmr.msra.gmra.mxu1 %vm416_vm6, %v409_v58 }
 0x1f1   :  { %v486_v59 = vpop.f32.mrf.mxu0  ;;  %v506_v60 = vpop.f32.mrf.mxu1 }
 0x1f2   :  { %v514_v61 = vrot.slane %v506_v60, 4 }
 0x1f4   :  { %v516_v0 = vsel %vm332_vm0, %v486_v59, %v514_v61  ;;  %v661_v61 = vlaneseq }
 0x1f5   :  { %v520_v5 = vmul.f32 %v516_v0, %v8087_v4 }
 0x1f6   :  { %v446_v62 = vpop.f32.mrf.mxu2  ;;  %v466_v63 = vpop.f32.mrf.mxu3 }
 0x1f7   :  { %v513_v1 = vrot.slane %v466_v63, 4 }
 0x1f9   :  { %v614_v2 = vpop.f32.mrf.mxu1  ;;  %v594_v6 = vpop.f32.mrf.mxu0  ;;  %v515_v8 = vsel %vm332_vm0, %v446_v62, %v513_v1  ;;  %v3664_v1 = vld [vmem:[%s7933_s6 + $0x20] sm:$0xf] }
 0x1fa   :  { %v622_v3 = vrot.slane %v614_v2, 4  ;;  %v519_v13 = vmul.f32 %v515_v8, %v4396_v49  ;;  %v4771_v2 = vand.u32 127, %v661_v61  ;;  %v4776_v4 = vperm.slane %v3664_v1, 1 }
 0x1fc   :  { %v624_v7 = vsel %vm332_vm0, %v594_v6, %v622_v3  ;;  %vm858_vm8 = vcmp.lt.s32.totalorder %v4771_v2, 111  ;;  %v4774_v3 = vperm.slane %v3664_v1, 0  ;;  %8103 = vst [vmem:[#allocation20_spill] sm:$0xff] %v4776_v4  ;;  %vm802_vm10 = vcmp.lt.s32.totalorder %v4771_v2, 113 }
 0x1fd   :  { %v628_v9 = vadd.f32 %v624_v7, %v520_v5  ;;  %vm830_vm11 = vcmp.lt.s32.totalorder %v4771_v2, 112  ;;  %vm774_vm13 = vcmp.lt.s32.totalorder %v4771_v2, 127  ;;  %vm8044_vm14 = vcmp.lt.s32.totalorder %v4771_v2, 1 }
 0x1fe   :  { %v574_v10 = vpop.f32.mrf.mxu3  ;;  %v554_v14 = vpop.f32.mrf.mxu2  ;;  %8102 = vst [vmem:[#allocation19_spill] sm:$0xff] %v4774_v3  ;;  %vm8026_vm15 = vcmp.lt.s32.totalorder %v4771_v2, 16  ;;  %vm8045_vm3 = vcmp.lt.s32.totalorder %v4771_v2, 15  ;;  %vm8025_vm4 = vcmp.lt.s32.totalorder %v4771_v2, 17 }
 0x1ff   :  { %v630_v11 = vmax.f32 %v628_v9, 0.0  ;;  %v621_v12 = vrot.slane %v574_v10, 4 }
 0x201   :  { %635 = vst [vmem:[#allocation1 + $0x10] ss:$2 sm:$0xff] %v630_v11  ;;  %v623_v15 = vsel %vm332_vm0, %v554_v14, %v621_v12 }
 0x202   :  { %v627_v16 = vadd.f32 %v623_v15, %v519_v13  ;;  %v4801_v15 = vld [vmem:[%s7933_s6 + $0x18] sm:$0xf] }
 0x204   :  { %v629_v17 = vmax.f32 %v627_v16, 0.0  ;;  %v3663_v16 = vld [vmem:[%s7933_s6 + $0x1c] sm:$0xf] }
 0x206   :  { %633 = vst [vmem:[#allocation1] ss:$2 sm:$0xff] %v629_v17  ;;  %v4809_v17 = vperm.slane %v4801_v15, 2 }
 0x208   :  { %v639_v19 = vld.sshfl [vmem:[#allocation1 + $0x18] sm:$0xff pattern:$0x75316420]  ;;  %v638_v20 = vld.sshfl [vmem:[#allocation1 + $0x10] sm:$0xff pattern:$0x75316420] }
 0x209   :  { %v643_v21 = vrot.slane %v639_v19, 7  ;;  %v642_v22 = vrot.slane %v638_v20, 7  ;;  %8104 = vst [vmem:[#allocation21_spill] sm:$0xff] %v4809_v17 }
 0x20b   :  { %v4619_v49 = vsel %vm648_vm7, %v4615_v18, %v643_v21  ;;  %v4623_v23 = vsel %vm648_vm7, %v4615_v18, %v642_v22  ;;  %v4819_v22 = vperm.slane %v3663_v16, 2 }
 0x20c   :  { %828 = vrot.lane.b32.xlu0 %v4619_v49, %s3987_s28  ;;  %826 = vrot.lane.b32.xlu1 %v4623_v23, %s3987_s28 }
 0x20d   :  { %798 = vrot.lane.b32.xlu2 %v4623_v23, %s3988_s29  ;;  %v637_v24 = vld.sshfl [vmem:[#allocation1 + $0x8] sm:$0xff pattern:$0x75316420]  ;;  %v636_v25 = vld.sshfl [vmem:[#allocation1] sm:$0xff pattern:$0x75316420] }
 0x20e   :  { %1337 = vst [vmem:[#allocation1] ss:$4 sm:$0xff] %v4586_v29  ;;  %v641_v26 = vrot.slane %v637_v24, 7  ;;  %v640_v33 = vrot.slane %v636_v25, 7 }
 0x20f   :  { %8105 = vst [vmem:[#allocation22_spill] sm:$0xff] %v4819_v22 }
 0x210   :  { %v4634_v27 = vsel %vm648_vm7, %v4615_v18, %v641_v26  ;;  %v4657_v34 = vsel %vm648_vm7, %v4615_v18, %v640_v33  ;;  %v4826_v26 = vperm.slane %v3663_v16, 3  ;;  %v4831_v33 = vld [vmem:[%s7933_s6 + $0x14] sm:$0xf] }
 0x212   :  { %8106 = vst [vmem:[#allocation23_spill] sm:$0xff] %v4826_v26 }
 0x214   :  { %770 = vrot.lane.b32.xlu1 %v4623_v23, %s3989_s0  ;;  %824 = vrot.lane.b32.xlu0 %v4634_v27, %s3987_s28 }
 0x215   :  { %800 = vrot.lane.b32.xlu2 %v4619_v49, %s3988_s29  ;;  %v4642_v28 = vld.sshfl [vmem:[#allocation1 + $0x10] sm:$0xff pattern:$0x73625140]  ;;  %v4644_v30 = vld.sshfl [vmem:[#allocation1 + $0x18] sm:$0xff pattern:$0x73625140] }
 0x216   :  { %v4646_v31 = vld.sshfl [vmem:[#allocation1] sm:$0xff pattern:$0x73625140]  ;;  %v4648_v32 = vld.sshfl [vmem:[#allocation1 + $0x8] sm:$0xff pattern:$0x73625140] }
 0x217   :  { %1437 = vst [vmem:[#allocation1] ss:$4 sm:$0xff] %v4586_v29 }
 0x21c   :  { %854 = vrot.lane.b32.xlu1 %v4623_v23, %s3990_s4  ;;  %768 = vrot.lane.b32.xlu0 %v4634_v27, %s3989_s0 }
 0x21d   :  { %822 = vrot.lane.b32.xlu2 %v4657_v34, %s3987_s28 }
 0x21e   :  { %v4661_v35 = vld.sshfl [vmem:[#allocation1] sm:$0xff pattern:$0x73625140]  ;;  %v4663_v36 = vld.sshfl [vmem:[#allocation1 + $0x8] sm:$0xff pattern:$0x73625140] }
 0x21f   :  { %v4665_v37 = vld.sshfl [vmem:[#allocation1 + $0x10] sm:$0xff pattern:$0x73625140]  ;;  %v4667_v38 = vld.sshfl [vmem:[#allocation1 + $0x18] sm:$0xff pattern:$0x73625140] }
 0x220   :  { %2371 = vst [vmem:[#allocation1] ss:$4 sm:$0xff] %v4586_v29 }
 0x224   :  { %744 = vrot.lane.b32.xlu1 %v4619_v49, %s3991_s30  ;;  %852 = vrot.lane.b32.xlu0 %v4634_v27, %s3990_s4 }
 0x225   :  { %766 = vrot.lane.b32.xlu2 %v4657_v34, %s3989_s0 }
 0x227   :  { %v4676_v39 = vld.sshfl [vmem:[#allocation1 + $0x10] sm:$0xff pattern:$0x73625140]  ;;  %v4678_v40 = vld.sshfl [vmem:[#allocation1 + $0x18] sm:$0xff pattern:$0x73625140] }
 0x228   :  { %8090 = vst [vmem:[#allocation7_spill] sm:$0xff] %v4676_v39  ;;  %v4680_v41 = vld.sshfl [vmem:[#allocation1] sm:$0xff pattern:$0x73625140] }
 0x229   :  { %8091 = vst [vmem:[#allocation8_spill] sm:$0xff] %v4678_v40  ;;  %v4682_v42 = vld.sshfl [vmem:[#allocation1 + $0x8] sm:$0xff pattern:$0x73625140] }
 0x22a   :  { %8092 = vst [vmem:[#allocation9_spill] sm:$0xff] %v4680_v41 }
 0x22b   :  { %8093 = vst [vmem:[#allocation11_spill] sm:$0xff] %v4682_v42 }
 0x22c   :  { %2471 = vst [vmem:[#allocation1] ss:$4 sm:$0xff] %v4586_v29  ;;  %688 = vrot.lane.b32.xlu1 %v4619_v49, %s3992_s5  ;;  %740 = vrot.lane.b32.xlu0 %v4634_v27, %s3991_s30 }
 0x22d   :  { %850 = vrot.lane.b32.xlu2 %v4657_v34, %s3990_s4 }
 0x233   :  { %v4691_v43 = vld.sshfl [vmem:[#allocation1] sm:$0xff pattern:$0x73625140]  ;;  %v4693_v44 = vld.sshfl [vmem:[#allocation1 + $0x8] sm:$0xff pattern:$0x73625140] }
 0x234   :  { %8094 = vst [vmem:[#allocation12_spill] sm:$0xff] %v4691_v43  ;;  %v4695_v45 = vld.sshfl [vmem:[#allocation1 + $0x10] sm:$0xff pattern:$0x73625140]  ;;  %716 = vrot.lane.b32.xlu1 %v4619_v49, %s3993_s22  ;;  %684 = vrot.lane.b32.xlu0 %v4634_v27, %s3992_s5 }
 0x235   :  { %8095 = vst [vmem:[#allocation13_spill] sm:$0xff] %v4693_v44  ;;  %v4697_v46 = vld.sshfl [vmem:[#allocation1 + $0x18] sm:$0xff pattern:$0x73625140]  ;;  %738 = vrot.lane.b32.xlu2 %v4657_v34, %s3991_s30 }
 0x236   :  { %8096 = vst [vmem:[#allocation6_spill] sm:$0xff] %v4695_v45 }
 0x237   :  { %8097 = vst [vmem:[#allocation14_spill] sm:$0xff] %v4697_v46 }
 0x238   :  { %3410 = vst [vmem:[#allocation1] ss:$4 sm:$0xff] %v4586_v29 }
 0x23c   :  { %712 = vrot.lane.b32.xlu0 %v4634_v27, %s3993_s22  ;;  %794 = vrot.lane.b32.xlu1 %v4657_v34, %s3988_s29 }
 0x23d   :  { %682 = vrot.lane.b32.xlu2 %v4657_v34, %s3992_s5 }
 0x23f   :  { %v4706_v47 = vld.sshfl [vmem:[#allocation1 + $0x10] sm:$0xff pattern:$0x73625140]  ;;  %v4708_v48 = vld.sshfl [vmem:[#allocation1 + $0x18] sm:$0xff pattern:$0x73625140] }
 0x240   :  { %8098 = vst [vmem:[#allocation15_spill] sm:$0xff] %v4706_v47  ;;  %v4710_v50 = vld.sshfl [vmem:[#allocation1] sm:$0xff pattern:$0x73625140]  ;;  %v4870_v47 = vperm.slane %v3664_v1, 3 }
 0x241   :  { %8099 = vst [vmem:[#allocation16_spill] sm:$0xff] %v4708_v48  ;;  %v4712_v51 = vld.sshfl [vmem:[#allocation1 + $0x8] sm:$0xff pattern:$0x73625140]  ;;  %v4868_v48 = vperm.slane %v3664_v1, 2 }
 0x242   :  { %8100 = vst [vmem:[#allocation17_spill] sm:$0xff] %v4710_v50 }
 0x243   :  { %8101 = vst [vmem:[#allocation18_spill] sm:$0xff] %v4712_v51  ;;  %v4892_v51 = vld [vmem:[%s7933_s6 + $0x8] sm:$0xf] }
 0x244   :  { %3510 = vst [vmem:[#allocation1] ss:$4 sm:$0xff] %v4586_v29  ;;  %655 = vrot.lane.b32.xlu0 %v4634_v27, %s3994_s23  ;;  %796 = vrot.lane.b32.xlu1 %v4634_v27, %s3988_s29  ;;  %v1329_v29 = vld [vmem:[%s7939_s12] sm:$0xff] }
 0x245   :  { %710 = vrot.lane.b32.xlu2 %v4657_v34, %s3993_s22  ;;  %8112 = vst [vmem:[#allocation29_spill] sm:$0xff] %v4868_v48 }
 0x246   :  { %8113 = vst [vmem:[#allocation30_spill] sm:$0xff] %v4870_v47 }
 0x24c   :  { %742 = vrot.lane.b32.xlu0 %v4623_v23, %s3991_s30  ;;  %659 = vrot.lane.b32.xlu1 %v4619_v49, %s3994_s23 }
 0x24d   :  { %653 = vrot.lane.b32.xlu2 %v4657_v34, %s3994_s23 }
 0x254   :  { %657 = vrot.lane.b32.xlu0 %v4623_v23, %s3994_s23  ;;  %772 = vrot.lane.b32.xlu1 %v4619_v49, %s3989_s0 }
 0x255   :  { %856 = vrot.lane.b32.xlu2 %v4619_v49, %s3990_s4 }
 0x25c   :  { %1333 = vperm.xlu0 %3755, %v1329_v29   ;;  %686 = vrot.lane.b32.xlu1 %v4623_v23, %s3992_s5  ;;  %v4849_v29 = vld [vmem:[%s7933_s6 + $0xc] sm:$0xf] }
 0x25d   :  { %714 = vrot.lane.b32.xlu2 %v4623_v23, %s3993_s22  ;;  %v4874_v50 = vperm.slane %v4849_v29, 0  ;;  %v4887_v39 = vperm.slane %v4849_v29, 1 }
 0x25f   :  { %8114 = vst [vmem:[#allocation31_spill] sm:$0xff] %v4874_v50 }
 0x260   :  { %8116 = vst [vmem:[#allocation33_spill] sm:$0xff] %v4887_v39 }
 0x267   :  { %v4746_v52 = vpop.permute.xlu2 %798 }
 0x26f   :  { %v4748_v53 = vpop.permute.xlu2 %800 }
 0x270   :  { %v803_v21 = vsel %vm802_vm10, %v4746_v52, %v4748_v53 }
 0x271   :  { %v4835_v61 = vmul.f32 %v4809_v17, %v803_v21  ;;  %v4854_v21 = vld [vmem:[%s7933_s6 + $0x4] sm:$0xf] }
 0x272   :  { %v4878_v46 = vperm.slane %v4854_v21, 0 }
 0x274   :  { %8115 = vst [vmem:[#allocation32_spill] sm:$0xff] %v4878_v46 }
 0x277   :  { %v4750_v54 = vpop.permute.xlu2 %822 }
 0x27e   :  { %v829_v55 = vpop.permute.xlu0 %828  ;;  %v4752_v56 = vpop.permute.xlu1 %826 }
 0x27f   :  { %v4754_v57 = vpop.permute.xlu2 %766  ;;  %v831_v25 = vsel %vm830_vm11, %v4752_v56, %v829_v55 }
 0x286   :  { %v4756_v58 = vpop.permute.xlu1 %770  ;;  %v4758_v59 = vpop.permute.xlu0 %824 }
 0x287   :  { %v4760_v60 = vpop.permute.xlu2 %850 }
 0x28e   :  { %v4762_v62 = vpop.permute.xlu1 %854  ;;  %v4764_v63 = vpop.permute.xlu0 %768 }
 0x28f   :  { %v4766_v0 = vpop.permute.xlu2 %738  ;;  %v777_v1 = vsel %vm774_vm13, %v4754_v57, %v4764_v63 }
 0x296   :  { %v4778_v5 = vpop.permute.xlu1 %744  ;;  %v853_v6 = vpop.permute.xlu0 %852 }
 0x297   :  { %v860_v7 = vsel %vm858_vm8, %v853_v6, %v4762_v62  ;;  %v861_v8 = vsel %vm858_vm8, %v4760_v60, %v853_v6  ;;  %v4786_v9 = vpop.permute.xlu2 %682  ;;  %v834_v6 = vsel %vm830_vm11, %v829_v55, %v4750_v54  ;;  %v4858_v55 = vperm.slane %v4831_v33, 0 }
 0x298   :  { %v874_v10 = vmul.f32 %v4774_v3, %v861_v8  ;;  %v875_v11 = vmul.f32 %v4776_v4, %v860_v7  ;;  %v848_v8 = vmul.f32 %v4819_v22, %v831_v25  ;;  %v4861_v25 = vperm.slane %v4831_v33, 1 }
 0x299   :  { %8109 = vst [vmem:[#allocation26_spill] sm:$0xff] %v4858_v55  ;;  %v849_v7 = vmul.f32 %v4826_v26, %v834_v6  ;;  %v4919_v4 = vperm.slane %v4892_v51, 0 }
 0x29a   :  { %3665 = vmatpush.msk.msra.mxu2 %vm962_vm9, %v874_v10  ;;  %3667 = vmatpush.msk.msra.mxu3 %vm962_vm9, %v875_v11  ;;  %v4842_v10 = vperm.slane %v3663_v16, 0  ;;  %v4844_v11 = vperm.slane %v3663_v16, 1  ;;  %8110 = vst [vmem:[#allocation27_spill] sm:$0xff] %v4861_v25  ;;  %v4864_v16 = vperm.slane %v4801_v15, 3  ;;  %v956_v6 = vrot.slane %v848_v8, 5 }
 0x29b   :  { %v833_v8 = vsel %vm830_vm11, %v4750_v54, %v4758_v59  ;;  %v957_v22 = vrot.slane %v849_v7, 5  ;;  %v832_v54 = vsel %vm830_vm11, %v4758_v59, %v4752_v56  ;;  %8117 = vst [vmem:[#allocation34_spill] sm:$0xff] %v4919_v4  ;;  %v8119_v56 = vrot.slane %v4835_v61, 2 }
 0x29c   :  { %8107 = vst [vmem:[#allocation24_spill] sm:$0xff] %v4842_v10  ;;  %v4940_v7 = vperm.slane %v4892_v51, 1 }
 0x29d   :  { %8108 = vst [vmem:[#allocation25_spill] sm:$0xff] %v4844_v11  ;;  %v992_v59 = vsel %vm7985_vm12, %v8119_v56, %v956_v6  ;;  %v750_v6 = vsel %vm8044_vm14, %v4778_v5, %v4766_v0 }
 0x29e   :  { %v4792_v12 = vpop.permute.xlu1 %688  ;;  %v4794_v13 = vpop.permute.xlu0 %740  ;;  %8111 = vst [vmem:[#allocation28_spill] sm:$0xff] %v4864_v16 }
 0x29f   :  { %v4796_v14 = vpop.permute.xlu2 %710  ;;  %8120 = vst [vmem:[#allocation36_spill] sm:$0xff] %v4940_v7 }
 0x2a6   :  { %v4811_v19 = vpop.permute.xlu1 %716  ;;  %v4813_v20 = vpop.permute.xlu0 %684 }
 0x2a7   :  { %v4821_v24 = vpop.permute.xlu2 %653 }
 0x2ae   :  { %v4880_v40 = vpop.permute.xlu0 %712  ;;  %v795_v45 = vpop.permute.xlu1 %794 }
 0x2af   :  { %v857_v44 = vpop.permute.xlu2 %856  ;;  %v806_v43 = vsel %vm802_vm10, %v4748_v53, %v795_v45 }
 0x2b0   :  { %v859_v42 = vsel %vm858_vm8, %v4762_v62, %v857_v44  ;;  %v862_v41 = vsel %vm858_vm8, %v857_v44, %v4760_v60  ;;  %v4908_v26 = vmul.f32 %v4864_v16, %v806_v43  ;;  %v790_v62 = vmul.f32 %v4858_v55, %v777_v1 }
 0x2b1   :  { %v876_v53 = vmul.f32 %v4868_v48, %v859_v42  ;;  %v877_v17 = vmul.f32 %v4870_v47, %v862_v41  ;;  %v846_v44 = vmul.f32 %v4842_v10, %v833_v8  ;;  %v776_v42 = vsel %vm774_vm13, %v4764_v63, %v4756_v58  ;;  %v5455_v10 = vld [vmem:[%s8068_s26 + $0x1b0] sm:$0xff] }
 0x2b2   :  { %v7969_v43 = vrot.slane %v4908_v26, 2  ;;  %v4928_v41 = vperm.slane %v4854_v21, 1  ;;  %v722_v60 = vsel %vm8045_vm3, %v4811_v19, %v4796_v14  ;;  %v4946_v1 = vperm.slane %v4801_v15, 0 }
 0x2b3   :  { %3669 = vmatpush.msk.msrb.mxu0 %vm962_vm9, %v876_v53  ;;  %3671 = vmatpush.msk.msrb.mxu1 %vm962_vm9, %v877_v17  ;;  %v847_v17 = vmul.f32 %v4844_v11, %v832_v54  ;;  %v721_v8 = vsel %vm8045_vm3, %v4796_v14, %v4880_v40  ;;  %v4958_v53 = vperm.slane %v4801_v15, 1  ;;  %v930_v56 = vrot.slane %v790_v62, 7  ;;  %v995_v15 = vld [vmem:[%s7937_s10] sm:$0xff] }
 0x2b4   :  { %8118 = vst [vmem:[#allocation35_spill] sm:$0xff] %v4928_v41  ;;  %v993_v63 = vsel %vm7985_vm12, %v7969_v43, %v957_v22  ;;  %v791_v22 = vmul.f32 %v4861_v25, %v776_v42  ;;  %v694_v54 = vsel %vm8026_vm15, %v4792_v12, %v4786_v9  ;;  %v749_v43 = vsel %vm8044_vm14, %v4766_v0, %v4794_v13 }
 0x2b5   :  { %8121 = vst [vmem:[#allocation37_spill] sm:$0xff] %v4946_v1  ;;  %1068 = vmatpush.msrb.mxu0 %v992_v59  ;;  %1088 = vmatpush.msrb.mxu1 %v993_v63  ;;  %v734_v42 = vmul.f32 %v4919_v4, %v722_v60  ;;  %v693_v62 = vsel %vm8026_vm15, %v4786_v9, %v4813_v20  ;;  %v954_v63 = vrot.slane %v846_v44, 5  ;;  %v955_v4 = vrot.slane %v847_v17, 5 }
 0x2b6   :  { %8122 = vst [vmem:[#allocation38_spill] sm:$0xff] %v4958_v53  ;;  %v4969_v16 = vpop.permute.xlu0 %655  ;;  %v797_v14 = vpop.permute.xlu1 %796  ;;  %998 = vperm.xlu1 %3756, %v995_v15   ;;  %v762_v25 = vmul.f32 %v4874_v50, %v750_v6  ;;  %v735_v11 = vmul.f32 %v4940_v7, %v721_v8  ;;  %v706_v47 = vmul.f32 %v4878_v46, %v694_v54  ;;  %v931_v55 = vrot.slane %v791_v22, 7  ;;  %v5363_v46 = vld [vmem:[%s8068_s26 + $0x150] sm:$0xff]  ;;  %v5429_v50 = vld [vmem:[%s8068_s26 + $0x80] sm:$0xff] }
 0x2b7   :  { %v804_v59 = vsel %vm802_vm10, %v797_v14, %v4746_v52  ;;  %v805_v0 = vsel %vm802_vm10, %v795_v45, %v797_v14  ;;  %v763_v9 = vmul.f32 %v4887_v39, %v749_v43  ;;  %v707_v52 = vmul.f32 %v4928_v41, %v693_v62  ;;  %v4994_v45 = vld [vmem:[%s7933_s6] sm:$0xf]  ;;  %v5357_v41 = vld [vmem:[%s8068_s26 + $0x98] sm:$0xff]  ;;  %v5369_v7 = vld [vmem:[%s8068_s26 + $0x1d0] sm:$0xff] }
 0x2b8   :  { %v818_v60 = vmul.f32 %v4946_v1, %v805_v0  ;;  %v819_v48 = vmul.f32 %v4958_v53, %v804_v59  ;;  %v8123_v6 = vrot.slane %v4657_v34, 4  ;;  %v894_v17 = vrot.slane %v734_v42, 6  ;;  %v5441_v53 = vld [vmem:[%s8068_s26 + $0x1b8] sm:$0xff]  ;;  %v5449_v39 = vld [vmem:[%s8068_s26 + $0x130] sm:$0xff] }
 0x2b9   :  { %v906_v43 = vrot.slane %v762_v25, 1  ;;  %v895_v14 = vrot.slane %v735_v11, 6  ;;  %v5002_v15 = vperm.slane %v4994_v45, 0  ;;  %v882_v62 = vrot.slane %v706_v47, 3 }
 0x2ba   :  { %v942_v44 = vrot.slane %v818_v60, 2  ;;  %v980_v8 = vsel %vm648_vm7, %v8123_v6, %v930_v56  ;;  %v943_v54 = vrot.slane %v819_v48, 2  ;;  %v907_v59 = vrot.slane %v763_v9, 1 }
 0x2bb   :  { %8124 = vst [vmem:[#allocation39_spill] sm:$0xff] %v5002_v15  ;;  %v5005_v0 = vperm.slane %v4994_v45, 1  ;;  %v883_v42 = vrot.slane %v707_v52, 3  ;;  %v666_v48 = vsel %vm8025_vm4, %v4821_v24, %v4969_v16  ;;  %v8126_v47 = vrot.slane %v4634_v27, 4  ;;  %v5047_v27 = vld [vmem:[%s7936_s9] sm:$0xff]  ;;  %s8141_s9 = sld [smem:[#allocation55_spill]] }
 0x2bc   :  { %v990_v22 = vsel %vm7985_vm12, %v942_v44, %v954_v63  ;;  %v991_v56 = vsel %vm7985_vm12, %v943_v54, %v955_v4  ;;  %v985_v25 = vsel %vm984_vm5, %v980_v8, %v942_v44  ;;  %v967_v9 = vsel %vm420_vm2, %v882_v62, %v894_v17 }
 0x2bd   :  { %8125 = vst [vmem:[#allocation40_spill] sm:$0xff] %v5005_v0  ;;  %1028 = vmatpush.msra.mxu2 %v990_v22  ;;  %1048 = vmatpush.msra.mxu3 %v991_v56  ;;  %v981_v63 = vsel %vm648_vm7, %v8126_v47, %v931_v55  ;;  %v8127_v44 = vrot.slane %v4657_v34, 4  ;;  %v968_v55 = vsel %vm420_vm2, %v883_v42, %v895_v14  ;;  %v5034_v17 = vperm.slane %v4849_v29, 2 }
 0x2be   :  { %v5012_v11 = vpop.permute.xlu1 %659  ;;  %v986_v60 = vsel %vm984_vm5, %v981_v63, %v943_v54  ;;  %v743_v52 = vpop.permute.xlu0 %742  ;;  %v679_v22 = vmul.f32 %v5005_v0, %v666_v48  ;;  %v972_v56 = vsel %vm971_vm1, %v967_v9, %v906_v43  ;;  %v973_v14 = vsel %vm971_vm1, %v968_v55, %v907_v59  ;;  %v5081_v9 = vld [vmem:[%s8068_s26 + $0x78] sm:$0xff] }
 0x2bf   :  { %v667_v4 = vsel %vm8025_vm4, %v5012_v11, %v4821_v24  ;;  %1029 = vmatpush.msra.mxu2 %v985_v25  ;;  %1049 = vmatpush.msra.mxu3 %v986_v60  ;;  %v976_v8 = vsel %vm332_vm0, %v906_v43, %v8127_v44  ;;  %v8128_v24 = vmov %v8126_v47  ;;  %8129 = vst [vmem:[#allocation41_spill] sm:$0xff] %v5034_v17  ;;  %v5038_v25 = vperm.slane %v4849_v29, 3  ;;  %v5095_v44 = vld [vmem:[%s8068_s26 + $0xf8] sm:$0xff] }
 0x2c0   :  { %v678_v6 = vmul.f32 %v5002_v15, %v667_v4  ;;  %v977_v54 = vsel %vm332_vm0, %v907_v59, %v8128_v24  ;;  %v748_v34 = vsel %vm8044_vm14, %v4794_v13, %v743_v52  ;;  %vm1001_vm12 = vcmask 367616   ;;  %v5345_v0 = vld [vmem:[%s8068_s26 + $0x1d8] sm:$0xff] }
 0x2c1   :  { %1030 = vmatpush.msra.mxu2 %v976_v8  ;;  %1050 = vmatpush.msra.mxu3 %v977_v54  ;;  %8130 = vst [vmem:[#allocation42_spill] sm:$0xff] %v5038_v25  ;;  %v747_v43 = vsel %vm8044_vm14, %v743_v52, %v4778_v5  ;;  %v5054_v48 = vperm.slane %v4831_v33, 2  ;;  %v5057_v13 = vperm.slane %v4831_v33, 3  ;;  %v964_v59 = vsel %vm962_vm9, %v679_v22, %v883_v42  ;;  %v715_v5 = vpop.permute.xlu2 %714  ;;  %v5351_v15 = vld [vmem:[%s8068_s26 + $0x18] sm:$0xff] }
 0x2c2   :  { %v963_v29 = vsel %vm962_vm9, %v678_v6, %v882_v62  ;;  %v5061_v47 = vmul.f32 %v5034_v17, %v748_v34  ;;  %v5066_v62 = vmul.f32 %v5038_v25, %v747_v43  ;;  %v5085_v52 = vperm.slane %v4892_v51, 2  ;;  %v5417_v17 = vld [vmem:[%s8068_s26 + $0x1c0] sm:$0xff] }
 0x2c3   :  { %1031 = vmatpush.msra.mxu2 %v972_v56  ;;  %1051 = vmatpush.msra.mxu3 %v973_v14  ;;  %8131 = vst [vmem:[#allocation43_spill] sm:$0xff] %v5054_v48  ;;  %v920_v6 = vrot.slane %v4623_v23, 4  ;;  %v720_v8 = vsel %vm8045_vm3, %v4880_v40, %v715_v5  ;;  %v5105_v23 = vld [vmem:[%s8068_s26 + $0x70] sm:$0xff]  ;;  %v5121_v34 = vperm.slane %v4854_v21, 2  ;;  %v5124_v14 = vperm.slane %v4854_v21, 3  ;;  %v5142_v21 = vld [vmem:[%s8068_s26 + $0xe8] sm:$0xff] }
 0x2c4   :  { %8132 = vst [vmem:[#allocation44_spill] sm:$0xff] %v5057_v13  ;;  %v908_v55 = vrot.slane %v5061_v47, 1  ;;  %v909_v24 = vrot.slane %v5066_v62, 1  ;;  %v5115_v40 = vld [vmem:[%s8068_s26 + $0xf0] sm:$0xff]  ;;  %v736_v43 = vmul.f32 %v5085_v52, %v720_v8  ;;  %v8138_v47 = vrot.slane %v4908_v26, 2  ;;  %v5423_v25 = vld [vmem:[%s8068_s26] sm:$0xff] }
 0x2c5   :  { %1032 = vmatpush.msra.mxu2 %v963_v29  ;;  %1052 = vmatpush.msra.mxu3 %v964_v59  ;;  %8133 = vst [vmem:[#allocation45_spill] sm:$0xff] %v5085_v52  ;;  %v8137_v29 = vrot.slane %v4835_v61, 2  ;;  %v5405_v52 = vld [vmem:[%s8068_s26 + $0x88] sm:$0xff] }
 0x2c6   :  { %v773_v63 = vpop.permute.xlu1 %772  ;;  %3666 = vmatmul.msk.f32.vlgmr.msra.gmra.mxu2 %vm1001_vm12, %v5047_v27  ;;  %3668 = vmatmul.msk.f32.vlgmr.msra.gmra.mxu3 %vm1001_vm12, %v5047_v27  ;;  %8135 = vst [vmem:[#allocation47_spill] sm:$0xff] %v5121_v34  ;;  %v658_v62 = vpop.permute.xlu0 %657  ;;  %v978_v61 = vsel %vm332_vm0, %v908_v55, %v920_v6  ;;  %v896_v8 = vrot.slane %v736_v43, 6 }
 0x2c7   :  { %v775_v33 = vsel %vm774_vm13, %v4756_v58, %v773_v63  ;;  %v778_v42 = vsel %vm774_vm13, %v773_v63, %v4754_v57  ;;  %1097 = vmatpush.msrb.mxu2 %v5081_v9  ;;  %v5088_v58 = vperm.slane %v4892_v51, 3  ;;  %v921_v57 = vrot.slane %v4619_v49, 4  ;;  %1117 = vmatpush.msrb.mxu3 %v5095_v44  ;;  %8136 = vst [vmem:[#allocation48_spill] sm:$0xff] %v5124_v14 }
 0x2c8   :  { %v792_v4 = vmul.f32 %v5054_v48, %v775_v33  ;;  %v793_v60 = vmul.f32 %v5057_v13, %v778_v42  ;;  %v719_v49 = vsel %vm8045_vm3, %v715_v5, %v4811_v19  ;;  %v5129_v19 = vld [vmem:[%s8068_s26 + $0x68] sm:$0xff]  ;;  %v5411_v48 = vld [vmem:[%s8068_s26 + $0x140] sm:$0xff]  ;;  %v5435_v13 = vld [vmem:[%s8068_s26 + $0x138] sm:$0xff] }
 0x2c9   :  { %8134 = vst [vmem:[#allocation46_spill] sm:$0xff] %v5088_v58  ;;  %1098 = vmatpush.msrb.mxu2 %v5105_v23  ;;  %1118 = vmatpush.msrb.mxu3 %v5115_v40  ;;  %v737_v5 = vmul.f32 %v5088_v58, %v719_v49  ;;  %v5180_v49 = vld [vmem:[%s8068_s26 + $0x58] sm:$0xff]  ;;  %v5399_v58 = vld [vmem:[%s8068_s26 + $0x8] sm:$0xff] }
 0x2ca   :  { %v932_v22 = vrot.slane %v792_v4, 7  ;;  %v933_v51 = vrot.slane %v793_v60, 7  ;;  %v979_v4 = vsel %vm332_vm0, %v909_v24, %v921_v57  ;;  %v5157_v60 = vld [vmem:[%s8068_s26 + $0x60] sm:$0xff] }
 0x2cb   :  { %1099 = vmatpush.msrb.mxu2 %v5129_v19  ;;  %1119 = vmatpush.msrb.mxu3 %v5142_v21 }
 0x2cc   :  { %v982_v54 = vsel %vm648_vm7, %v920_v6, %v932_v22  ;;  %v983_v56 = vsel %vm648_vm7, %v921_v57, %v933_v51  ;;  %v5163_v6 = vld [vmem:[%s8068_s26 + $0xe0] sm:$0xff]  ;;  %v5172_v22 = vperm.slane %v4994_v45, 3  ;;  %v665_v51 = vsel %vm8025_vm4, %v4969_v16, %v658_v62 }
 0x2cd   :  { %v987_v59 = vsel %vm984_vm5, %v982_v54, %v8137_v29  ;;  %v988_v63 = vsel %vm984_vm5, %v983_v56, %v8138_v47  ;;  %1100 = vmatpush.msrb.mxu2 %v5157_v60  ;;  %1120 = vmatpush.msrb.mxu3 %v5163_v6  ;;  %v5186_v54 = vld [vmem:[%s8068_s26 + $0xd8] sm:$0xff]  ;;  %v664_v56 = vsel %vm8025_vm4, %v658_v62, %v5012_v11  ;;  %v5195_v29 = vld [vmem:[%s8068_s26 + $0x50] sm:$0xff] }
 0x2ce   :  { %1069 = vmatpush.msrb.mxu0 %v987_v59  ;;  %1089 = vmatpush.msrb.mxu1 %v988_v63  ;;  %v687_v33 = vpop.permute.xlu1 %686  ;;  %8140 = vst [vmem:[#allocation50_spill] sm:$0xff] %v5172_v22  ;;  %v5201_v59 = vld [vmem:[%s8068_s26 + $0xd0] sm:$0xff] }
 0x2cf   :  { %v691_v26 = vsel %vm8026_vm15, %v687_v33, %v4792_v12  ;;  %v692_v42 = vsel %vm8026_vm15, %v4813_v20, %v687_v33  ;;  %v5167_v12 = vperm.slane %v4994_v45, 2  ;;  %1101 = vmatpush.msrb.mxu2 %v5180_v49  ;;  %1121 = vmatpush.msrb.mxu3 %v5186_v54  ;;  %v897_v45 = vrot.slane %v737_v5, 6 }
 0x2d0   :  { %v708_v20 = vmul.f32 %v5121_v34, %v692_v42  ;;  %v709_v57 = vmul.f32 %v5124_v14, %v691_v26  ;;  %1070 = vmatpush.msrb.mxu0 %v978_v61  ;;  %1090 = vmatpush.msrb.mxu1 %v979_v4  ;;  %v681_v5 = vmul.f32 %v5172_v22, %v664_v56  ;;  %v5213_v61 = vld [vmem:[%s8068_s26 + $0x48] sm:$0xff]  ;;  %v5227_v42 = vld [vmem:[%s8068_s26 + $0x40] sm:$0xff]  ;;  %v5279_v56 = vld [vmem:[%s8068_s26 + $0x30] sm:$0xff] }
 0x2d1   :  { %8139 = vst [vmem:[#allocation49_spill] sm:$0xff] %v5167_v12  ;;  %1102 = vmatpush.msrb.mxu2 %v5195_v29  ;;  %1122 = vmatpush.msrb.mxu3 %v5201_v59  ;;  %v680_v47 = vmul.f32 %v5167_v12, %v665_v51  ;;  %v5219_v26 = vld [vmem:[%s8068_s26 + $0xc8] sm:$0xff]  ;;  %v5233_v4 = vld [vmem:[%s8068_s26 + $0xc0] sm:$0xff]  ;;  %v5267_v51 = vld [vmem:[%s8068_s26 + $0x170] sm:$0xff] }
 0x2d2   :  { %v884_v16 = vrot.slane %v708_v20, 3  ;;  %v885_v43 = vrot.slane %v709_v57, 3  ;;  %v5243_v20 = vld [vmem:[%s8068_s26 + $0x178] sm:$0xff]  ;;  %v5375_v22 = vld [vmem:[%s8068_s26 + $0x10] sm:$0xff]  ;;  %v5387_v14 = vld [vmem:[%s8068_s26 + $0x148] sm:$0xff] }
 0x2d3   :  { %1103 = vmatpush.msrb.mxu2 %v5213_v61  ;;  %1123 = vmatpush.msrb.mxu3 %v5219_v26  ;;  %v5249_v57 = vld [vmem:[%s8068_s26 + $0x1f8] sm:$0xff]  ;;  %v5381_v12 = vld [vmem:[%s8068_s26 + $0x90] sm:$0xff]  ;;  %v5393_v34 = vld [vmem:[%s8068_s26 + $0x1c8] sm:$0xff] }
 0x2d4   :  { %v969_v11 = vsel %vm420_vm2, %v884_v16, %v896_v8  ;;  %v970_v63 = vsel %vm420_vm2, %v885_v43, %v897_v45  ;;  %v5255_v8 = vld [vmem:[%s8068_s26 + $0x38] sm:$0xff]  ;;  %v5273_v45 = vld [vmem:[%s8068_s26 + $0x1f0] sm:$0xff] }
 0x2d5   :  { %v974_v62 = vsel %vm971_vm1, %v969_v11, %v908_v55  ;;  %v975_v33 = vsel %vm971_vm1, %v970_v63, %v909_v24  ;;  %v965_v55 = vsel %vm962_vm9, %v680_v47, %v884_v16  ;;  %v966_v24 = vsel %vm962_vm9, %v681_v5, %v885_v43  ;;  %1104 = vmatpush.msrb.mxu2 %v5227_v42  ;;  %v5285_v16 = vld [vmem:[%s8068_s26 + $0xb0] sm:$0xff]  ;;  %v5291_v43 = vld [vmem:[%s8068_s26 + $0x168] sm:$0xff]  ;;  %v5315_v5 = vld [vmem:[%s8068_s26 + $0x160] sm:$0xff] }
 0x2d6   :  { %1071 = vmatpush.msrb.mxu0 %v974_v62  ;;  %1091 = vmatpush.msrb.mxu1 %v975_v33  ;;  %v5297_v47 = vld [vmem:[%s8068_s26 + $0x1e8] sm:$0xff]  ;;  %v5321_v62 = vld [vmem:[%s8068_s26 + $0x1e0] sm:$0xff] }
 0x2d7   :  { %1124 = vmatpush.msrb.mxu3 %v5233_v4  ;;  %1105 = vmatpush.msrb.mxu2 %v5255_v8  ;;  %v5303_v11 = vld [vmem:[%s8068_s26 + $0x28] sm:$0xff]  ;;  %v5327_v33 = vld [vmem:[%s8068_s26 + $0x20] sm:$0xff] }
 0x2d8   :  { %1072 = vmatpush.msrb.mxu0 %v965_v55  ;;  %1092 = vmatpush.msrb.mxu1 %v966_v24  ;;  %v5309_v63 = vld [vmem:[%s8068_s26 + $0xa8] sm:$0xff]  ;;  %v5333_v55 = vld [vmem:[%s8068_s26 + $0xa0] sm:$0xff]  ;;  %v5339_v24 = vld [vmem:[%s8068_s26 + $0x158] sm:$0xff] }
 0x2d9   :  { %3670 = vmatmul.msk.f32.vlgmr.msrb.gmra.mxu0 %vm1001_vm12, %v5047_v27  ;;  %3672 = vmatmul.msk.f32.vlgmr.msrb.gmra.mxu1 %vm1001_vm12, %v5047_v27  ;;  %v5261_v27 = vld [vmem:[%s8068_s26 + $0xb8] sm:$0xff]  ;;  %vm8024_vm12 = vcmask 64512  }
 0x2da   :  { %1137 = vmatpush.msra.mxu0 %v5243_v20  ;;  %1157 = vmatpush.msra.mxu1 %v5249_v57 }
 0x2db   :  { %1125 = vmatpush.msrb.mxu3 %v5261_v27  ;;  %1106 = vmatpush.msrb.mxu2 %v5279_v56 }
 0x2dc   :  { %1138 = vmatpush.msra.mxu0 %v5267_v51  ;;  %1158 = vmatpush.msra.mxu1 %v5273_v45 }
 0x2dd   :  { %1126 = vmatpush.msrb.mxu3 %v5285_v16  ;;  %1107 = vmatpush.msrb.mxu2 %v5303_v11 }
 0x2de   :  { %1139 = vmatpush.msra.mxu0 %v5291_v43  ;;  %1159 = vmatpush.msra.mxu1 %v5297_v47 }
 0x2df   :  { %1127 = vmatpush.msrb.mxu3 %v5309_v63  ;;  %1108 = vmatpush.msrb.mxu2 %v5327_v33 }
 0x2e0   :  { %1140 = vmatpush.msra.mxu0 %v5315_v5  ;;  %1160 = vmatpush.msra.mxu1 %v5321_v62 }
 0x2e1   :  { %1128 = vmatpush.msrb.mxu3 %v5333_v55  ;;  %1109 = vmatpush.msrb.mxu2 %v5351_v15 }
 0x2e2   :  { %1141 = vmatpush.msra.mxu0 %v5339_v24  ;;  %1161 = vmatpush.msra.mxu1 %v5345_v0 }
 0x2e3   :  { %1129 = vmatpush.msrb.mxu3 %v5357_v41  ;;  %1110 = vmatpush.msrb.mxu2 %v5375_v22 }
 0x2e4   :  { %1142 = vmatpush.msra.mxu0 %v5363_v46  ;;  %1162 = vmatpush.msra.mxu1 %v5369_v7 }
 0x2e5   :  { %1130 = vmatpush.msrb.mxu3 %v5381_v12  ;;  %1111 = vmatpush.msrb.mxu2 %v5399_v58 }
 0x2e6   :  { %1143 = vmatpush.msra.mxu0 %v5387_v14  ;;  %1163 = vmatpush.msra.mxu1 %v5393_v34 }
 0x2e7   :  { %1131 = vmatpush.msrb.mxu3 %v5405_v52  ;;  %1112 = vmatpush.msrb.mxu2 %v5423_v25 }
 0x2e8   :  { %1144 = vmatpush.msra.mxu0 %v5411_v48  ;;  %1164 = vmatpush.msra.mxu1 %v5417_v17 }
 0x2e9   :  { %1132 = vmatpush.msrb.mxu3 %v5429_v50  ;;  %1181 = vmatpush.msra.mxu2 %v5081_v9  ;;  %v5463_v9 = vld [vmem:[%s8068_s26 + $0x128] sm:$0xff] }
 0x2ea   :  { %1145 = vmatpush.msra.mxu0 %v5435_v13  ;;  %1165 = vmatpush.msra.mxu1 %v5441_v53 }
 0x2eb   :  { %1201 = vmatpush.msra.mxu3 %v5095_v44  ;;  %1182 = vmatpush.msra.mxu2 %v5105_v23  ;;  %v5469_v44 = vld [vmem:[%s8068_s26 + $0x1a8] sm:$0xff]  ;;  %v5477_v23 = vld [vmem:[%s8068_s26 + $0x120] sm:$0xff] }
 0x2ec   :  { %1146 = vmatpush.msra.mxu0 %v5449_v39  ;;  %1166 = vmatpush.msra.mxu1 %v5455_v10 }
 0x2ed   :  { %1202 = vmatpush.msra.mxu3 %v5115_v40  ;;  %1183 = vmatpush.msra.mxu2 %v5129_v19  ;;  %v5483_v40 = vld [vmem:[%s8068_s26 + $0x1a0] sm:$0xff]  ;;  %v5491_v19 = vld [vmem:[%s8068_s26 + $0x118] sm:$0xff] }
 0x2ee   :  { %1147 = vmatpush.msra.mxu0 %v5463_v9  ;;  %1167 = vmatpush.msra.mxu1 %v5469_v44 }
 0x2ef   :  { %1203 = vmatpush.msra.mxu3 %v5142_v21  ;;  %1184 = vmatpush.msra.mxu2 %v5157_v60  ;;  %v3823_v21 = vld [vmem:[%s8068_s26 + $0x198] sm:$0xff]  ;;  %v3824_v60 = vld [vmem:[%s8068_s26 + $0x110] sm:$0xff] }
 0x2f0   :  { %1148 = vmatpush.msra.mxu0 %v5477_v23  ;;  %1168 = vmatpush.msra.mxu1 %v5483_v40 }
 0x2f1   :  { %1204 = vmatpush.msra.mxu3 %v5163_v6  ;;  %1185 = vmatpush.msra.mxu2 %v5180_v49  ;;  %v3825_v6 = vld [vmem:[%s8068_s26 + $0x190] sm:$0xff]  ;;  %v3826_v49 = vld [vmem:[%s8068_s26 + $0x108] sm:$0xff] }
 0x2f2   :  { %1149 = vmatpush.msra.mxu0 %v5491_v19  ;;  %1169 = vmatpush.msra.mxu1 %v3823_v21 }
 0x2f3   :  { %1205 = vmatpush.msra.mxu3 %v5186_v54  ;;  %1186 = vmatpush.msra.mxu2 %v5195_v29  ;;  %v3827_v54 = vld [vmem:[%s8068_s26 + $0x188] sm:$0xff]  ;;  %v3828_v29 = vld [vmem:[%s8068_s26 + $0x100] sm:$0xff] }
 0x2f4   :  { %1150 = vmatpush.msra.mxu0 %v3824_v60  ;;  %1170 = vmatpush.msra.mxu1 %v3825_v6 }
 0x2f5   :  { %1206 = vmatpush.msra.mxu3 %v5201_v59  ;;  %1187 = vmatpush.msra.mxu2 %v5213_v61  ;;  %v3829_v59 = vld [vmem:[%s8068_s26 + $0x180] sm:$0xff] }
 0x2f6   :  { %1151 = vmatpush.msra.mxu0 %v3826_v49  ;;  %1171 = vmatpush.msra.mxu1 %v3827_v54 }
 0x2f7   :  { %1207 = vmatpush.msra.mxu3 %v5219_v26  ;;  %1188 = vmatpush.msra.mxu2 %v5227_v42 }
 0x2f8   :  { %1152 = vmatpush.msra.mxu0 %v3828_v29  ;;  %1172 = vmatpush.msra.mxu1 %v3829_v59 }
 0x2f9   :  { %1208 = vmatpush.msra.mxu3 %v5233_v4  ;;  %1189 = vmatpush.msra.mxu2 %v5255_v8 }
 0x2fa   :  { %1221 = vmatpush.msrb.mxu0 %v5243_v20  ;;  %1241 = vmatpush.msrb.mxu1 %v5249_v57 }
 0x2fb   :  { %1209 = vmatpush.msra.mxu3 %v5261_v27  ;;  %1190 = vmatpush.msra.mxu2 %v5279_v56 }
 0x2fc   :  { %1222 = vmatpush.msrb.mxu0 %v5267_v51  ;;  %1242 = vmatpush.msrb.mxu1 %v5273_v45 }
 0x2fd   :  { %1210 = vmatpush.msra.mxu3 %v5285_v16  ;;  %1191 = vmatpush.msra.mxu2 %v5303_v11 }
 0x2fe   :  { %1223 = vmatpush.msrb.mxu0 %v5291_v43  ;;  %1243 = vmatpush.msrb.mxu1 %v5297_v47 }
 0x2ff   :  { %1211 = vmatpush.msra.mxu3 %v5309_v63  ;;  %1192 = vmatpush.msra.mxu2 %v5327_v33 }
 0x300   :  { %1224 = vmatpush.msrb.mxu0 %v5315_v5  ;;  %1244 = vmatpush.msrb.mxu1 %v5321_v62 }
 0x301   :  { %1212 = vmatpush.msra.mxu3 %v5333_v55  ;;  %1193 = vmatpush.msra.mxu2 %v5351_v15 }
 0x302   :  { %1225 = vmatpush.msrb.mxu0 %v5339_v24  ;;  %1245 = vmatpush.msrb.mxu1 %v5345_v0  ;;  %v1334_v24 = vpop.permute.xlu0 %1333 }
 0x303   :  { %1213 = vmatpush.msra.mxu3 %v5357_v41  ;;  %1194 = vmatpush.msra.mxu2 %v5375_v22 }
 0x304   :  { %1226 = vmatpush.msrb.mxu0 %v5363_v46  ;;  %1246 = vmatpush.msrb.mxu1 %v5369_v7 }
 0x305   :  { %1214 = vmatpush.msra.mxu3 %v5381_v12  ;;  %1195 = vmatpush.msra.mxu2 %v5399_v58 }
 0x306   :  { %1227 = vmatpush.msrb.mxu0 %v5387_v14  ;;  %1247 = vmatpush.msrb.mxu1 %v5393_v34 }
 0x307   :  { %1215 = vmatpush.msra.mxu3 %v5405_v52  ;;  %1196 = vmatpush.msra.mxu2 %v5423_v25 }
 0x308   :  { %1228 = vmatpush.msrb.mxu0 %v5411_v48  ;;  %1248 = vmatpush.msrb.mxu1 %v5417_v17 }
 0x309   :  { %1216 = vmatpush.msra.mxu3 %v5429_v50 }
 0x30a   :  { %1229 = vmatpush.msrb.mxu0 %v5435_v13  ;;  %1249 = vmatpush.msrb.mxu1 %v5441_v53 }
 0x30c   :  { %1230 = vmatpush.msrb.mxu0 %v5449_v39  ;;  %1250 = vmatpush.msrb.mxu1 %v5455_v10 }
 0x30e   :  { %1231 = vmatpush.msrb.mxu0 %v5463_v9  ;;  %1251 = vmatpush.msrb.mxu1 %v5469_v44 }
 0x310   :  { %1232 = vmatpush.msrb.mxu0 %v5477_v23  ;;  %1252 = vmatpush.msrb.mxu1 %v5483_v40 }
 0x312   :  { %1233 = vmatpush.msrb.mxu0 %v5491_v19  ;;  %1253 = vmatpush.msrb.mxu1 %v3823_v21 }
 0x314   :  { %1234 = vmatpush.msrb.mxu0 %v3824_v60  ;;  %1254 = vmatpush.msrb.mxu1 %v3825_v6 }
 0x316   :  { %1235 = vmatpush.msrb.mxu0 %v3826_v49  ;;  %1255 = vmatpush.msrb.mxu1 %v3827_v54 }
 0x318   :  { %1236 = vmatpush.msrb.mxu0 %v3828_v29  ;;  %1256 = vmatpush.msrb.mxu1 %v3829_v59 }
 0x328   :  { %v999_v39 = vpop.permute.xlu1 %998 }
 0x349   :  { %v1034_v46 = vpop.f32.mrf.mxu2  ;;  %v1054_v50 = vpop.f32.mrf.mxu3 }
 0x34a   :  { %v5564_v10 = vadd.f32 %v1034_v46, %v999_v39  ;;  %v5566_v41 = vadd.f32 %v1054_v50, %v999_v39 }
 0x34c   :  { %1113 = vmatmul.f32.vlgmr.msrb.gmra.mxu2 %v5564_v10  ;;  %1133 = vmatmul.f32.vlgmr.msrb.gmra.mxu3 %v5566_v41  ;;  %v1177_v7 = vmul.f32 %v5564_v10, %v5564_v10  ;;  %v1178_v53 = vmul.f32 %v5566_v41, %v5566_v41 }
 0x354   :  { %1197 = vmatmul.f32.vlgmr.msra.gmra.mxu2 %v1177_v7  ;;  %1217 = vmatmul.f32.vlgmr.msra.gmra.mxu3 %v1178_v53 }
 0x356   :  { %v1074_v15 = vpop.f32.mrf.mxu0  ;;  %v1094_v0 = vpop.f32.mrf.mxu1 }
 0x357   :  { %v5574_v17 = vadd.f32 %v1074_v15, %v999_v39  ;;  %v5576_v25 = vadd.f32 %v1094_v0, %v999_v39 }
 0x359   :  { %1153 = vmatmul.f32.vlgmr.msra.gmra.mxu0 %v5574_v17  ;;  %1173 = vmatmul.f32.vlgmr.msra.gmra.mxu1 %v5576_v25  ;;  %v1179_v48 = vmul.f32 %v5574_v17, %v5574_v17  ;;  %v1180_v13 = vmul.f32 %v5576_v25, %v5576_v25 }
 0x35a   :  { %3675 = vmatpush.msk.msra.mxu0 %vm420_vm2, %v4646_v31  ;;  %3677 = vmatpush.msk.msra.mxu1 %vm420_vm2, %v4648_v32  ;;  %v1311_v31 = vld [vmem:[%s7938_s11] sm:$0xff] }
 0x35b   :  { %1325 = vperm.xlu2 %3757, %v1311_v31  }
 0x361   :  { %1237 = vmatmul.f32.vlgmr.msrb.gmra.mxu0 %v1179_v48  ;;  %1257 = vmatmul.f32.vlgmr.msrb.gmra.mxu1 %v1180_v13 }
 0x362   :  { %3683 = vmatpush.msk.msrb.mxu0 %vm420_vm2, %v4661_v35  ;;  %3685 = vmatpush.msk.msrb.mxu1 %vm420_vm2, %v4663_v36  ;;  %v1261_v35 = vld [vmem:[%s8141_s9] sm:$0xff] }
 0x3b5   :  { %v1326_v62 = vpop.permute.xlu2 %1325 }
 0x3cf   :  { %v1114_v32 = vpop.f32.mrf.mxu2  ;;  %v1134_v52 = vpop.f32.mrf.mxu3 }
 0x3d0   :  { %v1135_v58 = vadd.f32 %v1134_v52, %v1114_v32 }
 0x3d6   :  { %v1154_v34 = vpop.f32.mrf.mxu0  ;;  %v1174_v14 = vpop.f32.mrf.mxu1 }
 0x3d7   :  { %v1155_v12 = vadd.f32 %v1154_v34, %v1135_v58  ;;  %v1198_v61 = vpop.f32.mrf.mxu2  ;;  %v1218_v26 = vpop.f32.mrf.mxu3 }
 0x3d8   :  { %v1219_v36 = vadd.f32 %v1218_v26, %v1198_v61 }
 0x3d9   :  { %v1175_v22 = vadd.f32 %v1174_v14, %v1155_v12 }
 0x3db   :  { %1281 = vmatpush.msrb.mxu2 %v1175_v22 }
 0x3dc   :  { %3673 = vmatmul.msk.f32.vlgmr.msrb.gmra.mxu2 %vm8024_vm12, %v1261_v35 }
 0x3dd   :  { %3679 = vmatpush.msk.msra.mxu2 %vm420_vm2, %v4642_v28 }
 0x3de   :  { %v1238_v42 = vpop.f32.mrf.mxu0  ;;  %v1258_v20 = vpop.f32.mrf.mxu1 }
 0x3df   :  { %3687 = vmatpush.msk.msrb.mxu2 %vm420_vm2, %v4665_v37  ;;  %v1239_v4 = vadd.f32 %v1238_v42, %v1219_v36 }
 0x3e1   :  { %v1259_v57 = vadd.f32 %v1258_v20, %v1239_v4 }
 0x3e3   :  { %1302 = vmatpush.msrb.mxu3 %v1259_v57 }
 0x3e4   :  { %3674 = vmatmul.msk.f32.vlgmr.msrb.gmra.mxu3 %vm8024_vm12, %v1261_v35 }
 0x3e5   :  { %3681 = vmatpush.msk.msra.mxu3 %vm420_vm2, %v4644_v30 }
 0x3e7   :  { %3689 = vmatpush.msk.msrb.mxu3 %vm420_vm2, %v4667_v38 }
 0x45f   :  { %v1283_v28 = vpop.f32.mrf.mxu2 }
 0x460   :  { %v1286_v8 = vmul.f32 0.00390625, %v1283_v28 }
 0x462   :  { %v1308_v27 = vmul.f32 %v1286_v8, %v1286_v8 }
 0x467   :  { %v1304_v51 = vpop.f32.mrf.mxu3 }
 0x468   :  { %v1307_v45 = vmul.f32 0.00390625, %v1304_v51 }
 0x46a   :  { %v1309_v56 = vsub.f32 %v1307_v45, %v1308_v27 }
 0x46c   :  { %v1310_v37 = vmax.f32 %v1309_v56, 0.0 }
 0x46e   :  { %v1312_v16 = vadd.f32 1e-05, %v1310_v37 }
 0x470   :  { %3760 = vrsqrt.f32 %v1312_v16  ;;  %vm1319_vm4 = vweird.f32 %v1312_v16 }
 0x476   :  { %v3761_v43 = vpop.eup %3760 }
 0x477   :  { %v1314_v47 = vmul.f32 %v3761_v43, %v1312_v16  ;;  %vm1320_vm12 = vweird.f32 %v3761_v43 }
 0x478   :  { %vm1321_vm15 = vmor %vm1319_vm4, %vm1320_vm12 }
 0x479   :  { %v1315_v11 = vmul.f32 %v3761_v43, %v1314_v47 }
 0x47b   :  { %v1316_v63 = vmul.f32 0.5, %v1315_v11 }
 0x47d   :  { %v1317_v5 = vsub.f32 1.5, %v1316_v63 }
 0x47f   :  { %v1318_v30 = vmul.f32 %v3761_v43, %v1317_v5 }
 0x481   :  { %v1322_v38 = vsel %vm1321_vm15, %v3761_v43, %v1318_v30  ;;  %v8142_v30 = vld [vmem:[#allocation20_spill] sm:$0xff]  ;;  %vm8167_vm15 = vcmask 1042432  }
 0x482   :  { %v1328_v33 = vmul.f32 %v1326_v62, %v1322_v38  ;;  %vm8168_vm4 = vmmov %vm8167_vm15 }
 0x483   :  { %vm8176_vm12 = vmmov %vm8168_vm4 }
 0x484   :  { %3676 = vmatmul.msk.f32.vlgmr.msra.gmra.mxu0 %vm416_vm6, %v1328_v33  ;;  %3678 = vmatmul.msk.f32.vlgmr.msra.gmra.mxu1 %vm416_vm6, %v1328_v33  ;;  %v1330_v55 = vmul.f32 %v1328_v33, %v1286_v8 }
 0x485   :  { %3680 = vmatmul.msk.f32.vlgmr.msra.gmra.mxu2 %vm416_vm6, %v1328_v33  ;;  %3682 = vmatmul.msk.f32.vlgmr.msra.gmra.mxu3 %vm416_vm6, %v1328_v33 }
 0x486   :  { %v1336_v9 = vsub.f32 %v1334_v24, %v1330_v55 }
 0x48c   :  { %3684 = vmatmul.msk.f32.vlgmr.msrb.gmra.mxu0 %vm416_vm6, %v1336_v9  ;;  %3686 = vmatmul.msk.f32.vlgmr.msrb.gmra.mxu1 %vm416_vm6, %v1336_v9 }
 0x48d   :  { %3688 = vmatmul.msk.f32.vlgmr.msrb.gmra.mxu2 %vm416_vm6, %v1336_v9  ;;  %3690 = vmatmul.msk.f32.vlgmr.msrb.gmra.mxu3 %vm416_vm6, %v1336_v9  ;;  %v2345_v9 = vld [vmem:[%s7942_s15] sm:$0xff] }
 0x501   :  { %v1370_v44 = vpop.f32.mrf.mxu0  ;;  %v1390_v23 = vpop.f32.mrf.mxu1 }
 0x502   :  { %v1433_v40 = vmul.f32 %v1370_v44, %v5564_v10  ;;  %v1434_v19 = vmul.f32 %v1390_v23, %v5566_v41  ;;  %v2034_v44 = vld [vmem:[%s7941_s14] sm:$0xff] }
 0x508   :  { %v1410_v10 = vpop.f32.mrf.mxu2  ;;  %v1430_v15 = vpop.f32.mrf.mxu3 }
 0x509   :  { %v1470_v21 = vpop.f32.mrf.mxu0  ;;  %v1490_v60 = vpop.f32.mrf.mxu1  ;;  %v1435_v7 = vmul.f32 %v1410_v10, %v5574_v17  ;;  %v1436_v13 = vmul.f32 %v1430_v15, %v5576_v25 }
 0x50a   :  { %v1533_v6 = vadd.f32 %v1470_v21, %v1433_v40  ;;  %v1534_v49 = vadd.f32 %v1490_v60, %v1434_v19  ;;  %v2363_v60 = vld [vmem:[%s7943_s16] sm:$0xff] }
 0x50c   :  { %v1537_v54 = vmax.f32 %v1533_v6, 0.0  ;;  %v1538_v29 = vmax.f32 %v1534_v49, 0.0 }
 0x50e   :  { %v5618_v59 = vrot.slane %v1537_v54, 7  ;;  %v5620_v39 = vrot.slane %v1538_v29, 7 }
 0x510   :  { %1755 = vrot.lane.b32.xlu1 %v5620_v39, %s3987_s28  ;;  %1751 = vrot.lane.b32.xlu0 %v5618_v59, %s3987_s28  ;;  %v5631_v46 = vsel %vm648_vm7, %v4615_v18, %v5618_v59  ;;  %v5642_v50 = vsel %vm648_vm7, %v4615_v18, %v5620_v39  ;;  %v1510_v41 = vpop.f32.mrf.mxu2  ;;  %v1530_v17 = vpop.f32.mrf.mxu3 }
 0x511   :  { %1783 = vrot.lane.b32.xlu2 %v5618_v59, %s3990_s4  ;;  %v1535_v53 = vadd.f32 %v1510_v41, %v1435_v7  ;;  %v1536_v31 = vadd.f32 %v1530_v17, %v1436_v13  ;;  %v8143_v41 = vld [vmem:[#allocation24_spill] sm:$0xff]  ;;  %v8144_v17 = vld [vmem:[#allocation26_spill] sm:$0xff] }
 0x513   :  { %v1539_v0 = vmax.f32 %v1535_v53, 0.0  ;;  %v1540_v32 = vmax.f32 %v1536_v31, 0.0 }
 0x515   :  { %v5663_v48 = vrot.slane %v1539_v0, 7  ;;  %v5678_v52 = vrot.slane %v1540_v32, 7 }
 0x517   :  { %v5707_v25 = vsel %vm648_vm7, %v4615_v18, %v5663_v48  ;;  %v5720_v34 = vsel %vm648_vm7, %v4615_v18, %v5678_v52  ;;  %v8153_v18 = vld [vmem:[#allocation44_spill] sm:$0xff] }
 0x518   :  { %1719 = vrot.lane.b32.xlu0 %v5618_v59, %s3988_s29  ;;  %1781 = vrot.lane.b32.xlu1 %v5631_v46, %s3990_s4 }
 0x519   :  { %1659 = vrot.lane.b32.xlu2 %v5620_v39, %s3991_s30 }
 0x520   :  { %1687 = vrot.lane.b32.xlu0 %v5618_v59, %s3989_s0  ;;  %1657 = vrot.lane.b32.xlu1 %v5642_v50, %s3991_s30 }
 0x521   :  { %1787 = vrot.lane.b32.xlu2 %v5620_v39, %s3990_s4 }
 0x528   :  { %1627 = vrot.lane.b32.xlu0 %v5620_v39, %s3993_s22  ;;  %1785 = vrot.lane.b32.xlu1 %v5642_v50, %s3990_s4 }
 0x529   :  { %1691 = vrot.lane.b32.xlu2 %v5620_v39, %s3989_s0 }
 0x530   :  { %1595 = vrot.lane.b32.xlu0 %v5620_v39, %s3992_s5  ;;  %1689 = vrot.lane.b32.xlu1 %v5642_v50, %s3989_s0 }
 0x531   :  { %1749 = vrot.lane.b32.xlu2 %v5631_v46, %s3987_s28 }
 0x538   :  { %1723 = vrot.lane.b32.xlu0 %v5620_v39, %s3988_s29  ;;  %1791 = vrot.lane.b32.xlu1 %v5663_v48, %s3990_s4 }
 0x539   :  { %1717 = vrot.lane.b32.xlu2 %v5631_v46, %s3988_s29 }
 0x540   :  { %1563 = vrot.lane.b32.xlu0 %v5620_v39, %s3994_s23  ;;  %1759 = vrot.lane.b32.xlu1 %v5663_v48, %s3987_s28 }
 0x541   :  { %1685 = vrot.lane.b32.xlu2 %v5631_v46, %s3989_s0 }
 0x548   :  { %1655 = vrot.lane.b32.xlu0 %v5618_v59, %s3991_s30  ;;  %1731 = vrot.lane.b32.xlu1 %v5678_v52, %s3988_s29 }
 0x549   :  { %1625 = vrot.lane.b32.xlu2 %v5642_v50, %s3993_s22 }
 0x550   :  { %1753 = vrot.lane.b32.xlu0 %v5642_v50, %s3987_s28  ;;  %1699 = vrot.lane.b32.xlu1 %v5678_v52, %s3989_s0 }
 0x551   :  { %1593 = vrot.lane.b32.xlu2 %v5642_v50, %s3992_s5 }
 0x558   :  { %1763 = vrot.lane.b32.xlu0 %v5678_v52, %s3987_s28  ;;  %1663 = vrot.lane.b32.xlu1 %v5663_v48, %s3991_s30 }
 0x559   :  { %1721 = vrot.lane.b32.xlu2 %v5642_v50, %s3988_s29 }
 0x560   :  { %1603 = vrot.lane.b32.xlu0 %v5678_v52, %s3992_s5  ;;  %1667 = vrot.lane.b32.xlu1 %v5678_v52, %s3991_s30 }
 0x561   :  { %1653 = vrot.lane.b32.xlu2 %v5631_v46, %s3991_s30 }
 0x568   :  { %1757 = vrot.lane.b32.xlu0 %v5707_v25, %s3987_s28  ;;  %1635 = vrot.lane.b32.xlu1 %v5678_v52, %s3993_s22 }
 0x569   :  { %1561 = vrot.lane.b32.xlu2 %v5642_v50, %s3994_s23 }
 0x56b   :  { %v5715_v58 = vpop.permute.xlu2 %1783 }
 0x570   :  { %1729 = vrot.lane.b32.xlu0 %v5720_v34, %s3988_s29  ;;  %1567 = vrot.lane.b32.xlu1 %v5663_v48, %s3994_s23 }
 0x571   :  { %1795 = vrot.lane.b32.xlu2 %v5678_v52, %s3990_s4 }
 0x573   :  { %v5728_v14 = vpop.permute.xlu2 %1659 }
 0x578   :  { %1789 = vrot.lane.b32.xlu0 %v5707_v25, %s3990_s4  ;;  %1571 = vrot.lane.b32.xlu1 %v5678_v52, %s3994_s23 }
 0x579   :  { %1727 = vrot.lane.b32.xlu2 %v5663_v48, %s3988_s29 }
 0x57b   :  { %v1788_v12 = vpop.permute.xlu2 %1787 }
 0x57c   :  { %v1802_v22 = vsel %vm858_vm8, %v5715_v58, %v1788_v12 }
 0x57d   :  { %v1809_v61 = vmul.f32 %v1802_v22, %v4774_v3 }
 0x57f   :  { %3691 = vmatpush.msk.msra.mxu0 %vm648_vm7, %v1809_v61 }
 0x580   :  { %1697 = vrot.lane.b32.xlu0 %v5720_v34, %s3989_s0  ;;  %1725 = vrot.lane.b32.xlu1 %v5707_v25, %s3988_s29 }
 0x581   :  { %1695 = vrot.lane.b32.xlu2 %v5663_v48, %s3989_s0 }
 0x582   :  { %v5747_v26 = vpop.permute.xlu1 %1755  ;;  %v5749_v35 = vpop.permute.xlu0 %1751 }
 0x583   :  { %v5751_v36 = vpop.permute.xlu2 %1691  ;;  %v1770_v49 = vsel %vm830_vm11, %v5749_v35, %v5747_v26 }
 0x584   :  { %v1777_v7 = vmul.f32 %v1770_v49, %v8143_v41  ;;  %v1905_v49 = vrot.slane %v5618_v59, 4 }
 0x588   :  { %1661 = vrot.lane.b32.xlu0 %v5707_v25, %s3991_s30  ;;  %1793 = vrot.lane.b32.xlu1 %v5720_v34, %s3990_s4 }
 0x589   :  { %1631 = vrot.lane.b32.xlu2 %v5663_v48, %s3993_s22 }
 0x58a   :  { %v1720_v42 = vpop.permute.xlu0 %1719  ;;  %v5759_v4 = vpop.permute.xlu1 %1781 }
 0x58b   :  { %v5761_v20 = vpop.permute.xlu2 %1749 }
 0x590   :  { %1665 = vrot.lane.b32.xlu0 %v5720_v34, %s3991_s30  ;;  %1693 = vrot.lane.b32.xlu1 %v5707_v25, %s3989_s0 }
 0x591   :  { %1599 = vrot.lane.b32.xlu2 %v5663_v48, %s3992_s5 }
 0x592   :  { %v5769_v57 = vpop.permute.xlu0 %1687  ;;  %v5771_v28 = vpop.permute.xlu1 %1657 }
 0x593   :  { %v5773_v8 = vpop.permute.xlu2 %1717  ;;  %v1706_v53 = vsel %vm774_vm13, %v5769_v57, %v5751_v36 }
 0x594   :  { %v1713_v61 = vmul.f32 %v1706_v53, %v8144_v17 }
 0x598   :  { %1633 = vrot.lane.b32.xlu0 %v5720_v34, %s3993_s22  ;;  %1629 = vrot.lane.b32.xlu1 %v5707_v25, %s3993_s22 }
 0x599   :  { %1761 = vrot.lane.b32.xlu2 %v5720_v34, %s3987_s28 }
 0x59a   :  { %v5781_v27 = vpop.permute.xlu0 %1627  ;;  %v5783_v51 = vpop.permute.xlu1 %1785 }
 0x59b   :  { %v1801_v45 = vsel %vm858_vm8, %v5759_v4, %v5783_v51  ;;  %v5789_v56 = vpop.permute.xlu2 %1685 }
 0x59c   :  { %v1805_v37 = vmul.f32 %v1801_v45, %v4774_v3  ;;  %v1989_v45 = vrot.slane %v1777_v7, 1 }
 0x59e   :  { %2062 = vmatpush.msra.mxu0 %v1805_v37 }
 0x5a0   :  { %1565 = vrot.lane.b32.xlu0 %v5707_v25, %s3994_s23  ;;  %1597 = vrot.lane.b32.xlu1 %v5707_v25, %s3992_s5 }
 0x5a1   :  { %1623 = vrot.lane.b32.xlu2 %v5618_v59, %s3993_s22 }
 0x5a2   :  { %v5798_v16 = vpop.permute.xlu0 %1595  ;;  %v5800_v43 = vpop.permute.xlu1 %1689 }
 0x5a3   :  { %v5802_v47 = vpop.permute.xlu2 %1625  ;;  %v1705_v54 = vsel %vm774_vm13, %v5789_v56, %v5800_v43 }
 0x5a4   :  { %v1709_v13 = vmul.f32 %v1705_v54, %v8144_v17 }
 0x5a8   :  { %1569 = vrot.lane.b32.xlu0 %v5720_v34, %s3994_s23  ;;  %1621 = vrot.lane.b32.xlu1 %v5631_v46, %s3993_s22 }
 0x5a9   :  { %1601 = vrot.lane.b32.xlu2 %v5720_v34, %s3992_s5 }
 0x5aa   :  { %v5810_v11 = vpop.permute.xlu0 %1723  ;;  %v1792_v63 = vpop.permute.xlu1 %1791 }
 0x5ab   :  { %v1800_v5 = vsel %vm858_vm8, %v1788_v12, %v1792_v63  ;;  %v5814_v62 = vpop.permute.xlu2 %1593  ;;  %v1738_v29 = vsel %vm802_vm10, %v1720_v42, %v5810_v11 }
 0x5ac   :  { %v1810_v38 = vmul.f32 %v1800_v5, %v8142_v30  ;;  %v1745_v31 = vmul.f32 %v1738_v29, %v4946_v1  ;;  %v1929_v5 = vrot.slane %v1709_v13, 3 }
 0x5ae   :  { %3693 = vmatpush.msk.msra.mxu1 %vm648_vm7, %v1810_v38  ;;  %v1961_v38 = vrot.slane %v1745_v31, 2 }
 0x5b0   :  { %1559 = vrot.lane.b32.xlu0 %v5618_v59, %s3994_s23  ;;  %1589 = vrot.lane.b32.xlu1 %v5631_v46, %s3992_s5 }
 0x5b1   :  { %1591 = vrot.lane.b32.xlu2 %v5618_v59, %s3992_s5  ;;  %v8146_v59 = vld [vmem:[#allocation29_spill] sm:$0xff] }
 0x5b2   :  { %v5824_v33 = vpop.permute.xlu0 %1563  ;;  %v5826_v55 = vpop.permute.xlu1 %1759 }
 0x5b3   :  { %v5828_v24 = vpop.permute.xlu2 %1721 }
 0x5b4   :  { %v1737_v6 = vsel %vm802_vm10, %v5773_v8, %v5828_v24 }
 0x5b5   :  { %v1741_v10 = vmul.f32 %v1737_v6, %v4946_v1  ;;  %v8027_v6 = vrot.slane %v5631_v46, 4 }
 0x5b8   :  { %2359 = vperm.xlu0 %3755, %v2345_v9   ;;  %1557 = vrot.lane.b32.xlu1 %v5631_v46, %s3994_s23 }
 0x5b9   :  { %2037 = vperm.xlu2 %3757, %v2034_v44   ;;  %v1933_v44 = vrot.slane %v1713_v61, 3  ;;  %v1906_v61 = vsel %vm332_vm0, %v8027_v6, %v1905_v49 }
 0x5ba   :  { %v5838_v23 = vpop.permute.xlu0 %1655  ;;  %v5840_v40 = vpop.permute.xlu1 %1731 }
 0x5bb   :  { %v5845_v19 = vsel %vm802_vm10, %v5840_v40, %v1720_v42  ;;  %v5847_v21 = vpop.permute.xlu2 %1653  ;;  %v1957_v42 = vrot.slane %v1741_v10, 2  ;;  %v1934_v53 = vsel %vm962_vm9, %v1929_v5, %v1933_v44 }
 0x5bd   :  { %v2025_v31 = vsel %vm984_vm5, %v1934_v53, %v1957_v42  ;;  %v1768_v53 = vsel %vm830_vm11, %v5747_v26, %v5826_v55 }
 0x5c0   :  { %2367 = vperm.xlu1 %3756, %v2363_v60   ;;  %v1962_v60 = vsel %vm984_vm5, %v1957_v42, %v1961_v38  ;;  %v2021_v38 = vsel %vm962_vm9, %v1906_v61, %v1929_v5 }
 0x5c2   :  { %v1754_v15 = vpop.permute.xlu0 %1753  ;;  %v5873_v0 = vpop.permute.xlu1 %1699 }
 0x5c3   :  { %v1769_v32 = vsel %vm830_vm11, %v5761_v20, %v1754_v15  ;;  %v5880_v12 = vpop.permute.xlu2 %1561 }
 0x5c4   :  { %8145 = vst [vmem:[#allocation51_spill] sm:$0xff] %v5880_v12  ;;  %v1773_v22 = vmul.f32 %v1769_v32, %v8143_v41  ;;  %v8150_v41 = vld [vmem:[#allocation28_spill] sm:$0xff] }
 0x5c6   :  { %v1985_v37 = vrot.slane %v1773_v22, 1 }
 0x5c8   :  { %v1990_v9 = vsel %vm971_vm1, %v1985_v37, %v1989_v45  ;;  %v2029_v10 = vsel %vm971_vm1, %v1962_v60, %v1985_v37  ;;  %v8147_v45 = vld [vmem:[#allocation30_spill] sm:$0xff] }
 0x5c9   :  { %2063 = vmatpush.msra.mxu0 %v1990_v9 }
 0x5ca   :  { %v5888_v54 = vpop.permute.xlu0 %1763  ;;  %v5890_v29 = vpop.permute.xlu1 %1663 }
 0x5cb   :  { %v1796_v7 = vpop.permute.xlu2 %1795  ;;  %2064 = vmatpush.msra.mxu0 %v2029_v10 }
 0x5cc   :  { %v1798_v13 = vsel %vm858_vm8, %v1792_v63, %v1796_v7  ;;  %v1804_v32 = vsel %vm858_vm8, %v1796_v7, %v5715_v58 }
 0x5cd   :  { %v1811_v22 = vmul.f32 %v1798_v13, %v8146_v59  ;;  %2065 = vmatpush.msra.mxu0 %v2025_v31  ;;  %v1812_v37 = vmul.f32 %v1804_v32, %v8147_v45  ;;  %v8148_v13 = vld [vmem:[#allocation25_spill] sm:$0xff] }
 0x5ce   :  { %v1778_v32 = vmul.f32 %v1768_v53, %v8148_v13  ;;  %v1674_v53 = vsel %vm8044_vm14, %v5838_v23, %v5728_v14 }
 0x5cf   :  { %3695 = vmatpush.msk.msra.mxu2 %vm648_vm7, %v1811_v22  ;;  %2066 = vmatpush.msra.mxu0 %v2021_v38 }
 0x5d0   :  { %3697 = vmatpush.msk.msra.mxu3 %vm648_vm7, %v1812_v37  ;;  %v1991_v17 = vrot.slane %v1778_v32, 1 }
 0x5d2   :  { %v5908_v63 = vpop.permute.xlu0 %1603  ;;  %v5910_v42 = vpop.permute.xlu1 %1667 }
 0x5d3   :  { %v1728_v58 = vpop.permute.xlu2 %1727 }
 0x5da   :  { %v1758_v9 = vpop.permute.xlu0 %1757  ;;  %v5912_v44 = vpop.permute.xlu1 %1635 }
 0x5db   :  { %v5914_v60 = vpop.permute.xlu2 %1695  ;;  %v1767_v5 = vsel %vm830_vm11, %v1754_v15, %v1758_v9 }
 0x5dc   :  { %v1774_v31 = vmul.f32 %v1767_v5, %v8148_v13  ;;  %v1911_v5 = vrot.slane %v5678_v52, 4  ;;  %v1708_v52 = vsel %vm774_vm13, %v5873_v0, %v5769_v57  ;;  %v5966_v13 = vmul.f32 %v5845_v19, %v8150_v41 }
 0x5dd   :  { %v8152_v57 = vrot.slane %v5720_v34, 4  ;;  %v1716_v12 = vmul.f32 %v1708_v52, %v8153_v18 }
 0x5de   :  { %v1986_v37 = vrot.slane %v1774_v31, 1  ;;  %v1736_v31 = vsel %vm802_vm10, %v5810_v11, %v1728_v58 }
 0x5e2   :  { %v1730_v49 = vpop.permute.xlu0 %1729  ;;  %v5916_v10 = vpop.permute.xlu1 %1567 }
 0x5e3   :  { %v5918_v7 = vpop.permute.xlu2 %1631 }
 0x5ea   :  { %v5928_v22 = vpop.permute.xlu0 %1789  ;;  %v5930_v61 = vpop.permute.xlu1 %1571 }
 0x5eb   :  { %v1799_v38 = vsel %vm858_vm8, %v5783_v51, %v5928_v22  ;;  %v5936_v15 = vpop.permute.xlu2 %1599  ;;  %v1992_v51 = vsel %vm971_vm1, %v1986_v37, %v1991_v17  ;;  %v8149_v17 = vld [vmem:[#allocation33_spill] sm:$0xff] }
 0x5ec   :  { %v1806_v6 = vmul.f32 %v1799_v38, %v8142_v30  ;;  %v5962_v1 = vmul.f32 %v1674_v53, %v8149_v17  ;;  %v5974_v38 = vsel %vm332_vm0, %v8152_v57, %v1911_v5  ;;  %v1766_v5 = vsel %vm830_vm11, %v5826_v55, %v5888_v54 }
 0x5ed   :  { %v1772_v57 = vsel %vm830_vm11, %v5888_v54, %v5749_v35 }
 0x5ee   :  { %2082 = vmatpush.msra.mxu1 %v1806_v6  ;;  %v1673_v6 = vsel %vm8044_vm14, %v5847_v21, %v5771_v28 }
 0x5ef   :  { %v5977_v26 = vmul.f32 %v1673_v6, %v8149_v17 }
 0x5f0   :  { %2083 = vmatpush.msra.mxu1 %v1992_v51  ;;  %v8151_v51 = vld [vmem:[#allocation38_spill] sm:$0xff] }
 0x5f1   :  { %v1746_v32 = vmul.f32 %v1736_v31, %v8151_v51 }
 0x5f2   :  { %v5969_v30 = vpop.permute.xlu0 %1697  ;;  %v1726_v3 = vpop.permute.xlu1 %1725 }
 0x5f3   :  { %v1707_v53 = vsel %vm774_vm13, %v5969_v30, %v5789_v56  ;;  %v1733_v19 = vsel %vm802_vm10, %v1726_v3, %v1730_v49  ;;  %v1735_v31 = vsel %vm802_vm10, %v5828_v24, %v1726_v3  ;;  %v1762_v11 = vpop.permute.xlu2 %1761  ;;  %v1734_v3 = vsel %vm802_vm10, %v1728_v58, %v5840_v40  ;;  %v8155_v40 = vld [vmem:[#allocation22_spill] sm:$0xff] }
 0x5f4   :  { %v5994_v6 = vmul.f32 %v1735_v31, %v8151_v51  ;;  %v1765_v56 = vsel %vm830_vm11, %v1758_v9, %v1762_v11  ;;  %v1739_v24 = vsel %vm802_vm10, %v1730_v49, %v5773_v8  ;;  %v1771_v55 = vsel %vm830_vm11, %v1762_v11, %v5761_v20  ;;  %v8154_v31 = vld [vmem:[#allocation21_spill] sm:$0xff]  ;;  %v8156_v49 = vld [vmem:[#allocation23_spill] sm:$0xff] }
 0x5f5   :  { %v1963_v52 = vrot.slane %v1746_v32, 2  ;;  %v6012_v9 = vmul.f32 %v1707_v53, %v8153_v18  ;;  %v6015_v17 = vmul.f32 %v1733_v19, %v8154_v31  ;;  %v1676_v8 = vsel %vm8044_vm14, %v5910_v42, %v5838_v23 }
 0x5f6   :  { %v8041_v35 = vrot.slane %v5994_v6, 2  ;;  %v1775_v58 = vmul.f32 %v1765_v56, %v8155_v40  ;;  %v1776_v20 = vmul.f32 %v1771_v55, %v8156_v49  ;;  %v1939_v32 = vrot.slane %v1716_v12, 3 }
 0x5f7   :  { %v1747_v11 = vmul.f32 %v1734_v3, %v8154_v31  ;;  %v1744_v53 = vmul.f32 %v1739_v24, %v8150_v41  ;;  %v1779_v54 = vmul.f32 %v1766_v5, %v8155_v40  ;;  %v1780_v51 = vmul.f32 %v1772_v57, %v8156_v49  ;;  %v8157_v3 = vld [vmem:[#allocation31_spill] sm:$0xff]  ;;  %v8158_v41 = vld [vmem:[#allocation42_spill] sm:$0xff] }
 0x5f8   :  { %v1964_v19 = vsel %vm984_vm5, %v8041_v35, %v1963_v52  ;;  %v1672_v23 = vsel %vm8044_vm14, %v5728_v14, %v5890_v29  ;;  %v1670_v12 = vsel %vm8044_vm14, %v5890_v29, %v5910_v42  ;;  %v6042_v24 = vmul.f32 %v1676_v8, %v8157_v3 }
 0x5f9   :  { %v2030_v56 = vsel %vm971_vm1, %v1964_v19, %v1986_v37  ;;  %v1932_v55 = vrot.slane %v6012_v9, 3  ;;  %v1987_v35 = vrot.slane %v1775_v58, 1  ;;  %v1988_v18 = vrot.slane %v1776_v20, 1 }
 0x5fa   :  { %v1662_v57 = vpop.permute.xlu0 %1661  ;;  %v1794_v52 = vpop.permute.xlu1 %1793  ;;  %2084 = vmatpush.msra.mxu1 %v2030_v56  ;;  %v1965_v42 = vrot.slane %v1747_v11, 2  ;;  %v1960_v37 = vrot.slane %v1744_v53, 2  ;;  %v1993_v19 = vrot.slane %v1779_v54, 1  ;;  %v1995_v5 = vrot.slane %v1780_v51, 1 }
 0x5fb   :  { %v1797_v14 = vsel %vm858_vm8, %v5928_v22, %v1794_v52  ;;  %v1803_v29 = vsel %vm858_vm8, %v1794_v52, %v5759_v4  ;;  %v1684_v56 = vmul.f32 %v1670_v12, %v8158_v41  ;;  %v1704_v58 = vsel %vm774_vm13, %v5751_v36, %v5914_v60  ;;  %v8160_v12 = vld [vmem:[#allocation41_spill] sm:$0xff]  ;;  %v8161_v52 = vld [vmem:[#allocation27_spill] sm:$0xff] }
 0x5fc   :  { %v1807_v8 = vmul.f32 %v1797_v14, %v8146_v59  ;;  %v1808_v9 = vmul.f32 %v1803_v29, %v8147_v45  ;;  %v1967_v22 = vrot.slane %v5966_v13, 2  ;;  %v1702_v4 = vsel %vm774_vm13, %v5914_v60, %v5873_v0  ;;  %v8162_v29 = vld [vmem:[#allocation43_spill] sm:$0xff] }
 0x5fd   :  { %v1671_v20 = vsel %vm8044_vm14, %v5771_v28, %v1662_v57  ;;  %v8159_v51 = vrot.slane %v6015_v17, 2  ;;  %v1878_v11 = vrot.slane %v5977_v26, 5  ;;  %v1994_v36 = vsel %vm971_vm1, %v1987_v35, %v1993_v19  ;;  %v6280_v26 = vld [vmem:[%s8068_s26 + $0x170] sm:$0xff] }
 0x5fe   :  { %2102 = vmatpush.msra.mxu2 %v1807_v8  ;;  %2122 = vmatpush.msra.mxu3 %v1808_v9  ;;  %v1996_v13 = vsel %vm971_vm1, %v1988_v18, %v1995_v5  ;;  %v1940_v53 = vsel %vm962_vm9, %v1932_v55, %v1939_v32  ;;  %v1683_v0 = vmul.f32 %v1672_v23, %v8160_v12  ;;  %v1881_v60 = vrot.slane %v6042_v24, 5 }
 0x5ff   :  { %v1966_v54 = vsel %vm984_vm5, %v8159_v51, %v1965_v42  ;;  %v1714_v28 = vmul.f32 %v1704_v58, %v8161_v52  ;;  %v1968_v14 = vsel %vm984_vm5, %v1960_v37, %v1967_v22  ;;  %v1715_v42 = vmul.f32 %v1702_v4, %v8162_v29 }
 0x600   :  { %2103 = vmatpush.msra.mxu2 %v1994_v36  ;;  %2123 = vmatpush.msra.mxu3 %v1996_v13  ;;  %v6080_v8 = vmul.f32 %v1671_v20, %v8160_v12  ;;  %v2031_v9 = vsel %vm971_vm1, %v1966_v54, %v1987_v35  ;;  %v2032_v5 = vsel %vm971_vm1, %v1968_v14, %v1988_v18  ;;  %v1887_v32 = vrot.slane %v1684_v56, 5 }
 0x601   :  { %v1638_v23 = vsel %vm8045_vm3, %v5918_v7, %v5912_v44  ;;  %v1640_v24 = vsel %vm8045_vm3, %v5781_v27, %v5918_v7  ;;  %v2028_v22 = vsel %vm984_vm5, %v1940_v53, %v1960_v37  ;;  %v1935_v51 = vrot.slane %v1714_v28, 3 }
 0x602   :  { %v1666_v19 = vpop.permute.xlu0 %1665  ;;  %v1694_v58 = vpop.permute.xlu1 %1693  ;;  %2104 = vmatpush.msra.mxu2 %v2031_v9  ;;  %2124 = vmatpush.msra.mxu3 %v2032_v5  ;;  %v1879_v54 = vrot.slane %v6080_v8, 5  ;;  %v1885_v14 = vrot.slane %v1683_v0, 5  ;;  %v8163_v9 = vld [vmem:[#allocation45_spill] sm:$0xff]  ;;  %v8165_v28 = vrot.slane %v5620_v39, 4  ;;  %v8170_v39 = vrot.slane %v6015_v17, 2 }
 0x603   :  { %v1669_v18 = vsel %vm8044_vm14, %v1662_v57, %v1666_v19  ;;  %v1675_v35 = vsel %vm8044_vm14, %v1666_v19, %v5847_v21  ;;  %v1701_v56 = vsel %vm774_vm13, %v1694_v58, %v5969_v30  ;;  %v1703_v7 = vsel %vm774_vm13, %v5800_v43, %v1694_v58  ;;  %v8164_v19 = vld [vmem:[#allocation46_spill] sm:$0xff] }
 0x604   :  { %v6105_v4 = vmul.f32 %v1675_v35, %v8157_v3  ;;  %v1680_v37 = vmul.f32 %v1669_v18, %v8158_v41  ;;  %v1710_v20 = vmul.f32 %v1703_v7, %v8161_v52  ;;  %v1711_v57 = vmul.f32 %v1701_v56, %v8162_v29  ;;  %2125 = vmatpush.msra.mxu3 %v2028_v22  ;;  %v1624_v18 = vpop.permute.xlu2 %1623 }
 0x605   :  { %v1937_v21 = vrot.slane %v1715_v42, 3  ;;  %v2024_v30 = vsel %vm962_vm9, %v5974_v38, %v1932_v55  ;;  %v1651_v5 = vmul.f32 %v1640_v24, %v8163_v9  ;;  %v1652_v58 = vmul.f32 %v1638_v23, %v8164_v19 }
 0x606   :  { %v1877_v36 = vrot.slane %v6105_v4, 5  ;;  %v1880_v43 = vrot.slane %v1680_v37, 5  ;;  %v1930_v13 = vrot.slane %v1710_v20, 3  ;;  %v1931_v53 = vrot.slane %v1711_v57, 3  ;;  %2126 = vmatpush.msra.mxu3 %v2024_v30 }
 0x607   :  { %v8166_v42 = vrot.slane %v5642_v50, 4  ;;  %v8169_v24 = vrot.slane %v5994_v6, 2  ;;  %v8171_v56 = vrot.slane %v5720_v34, 4  ;;  %v8172_v37 = vrot.slane %v5631_v46, 4 }
 0x608   :  { %v1936_v38 = vsel %vm962_vm9, %v1930_v13, %v1935_v51  ;;  %v1938_v55 = vsel %vm962_vm9, %v1931_v53, %v1937_v21  ;;  %v1888_v22 = vsel %vm8167_vm15, %v1880_v43, %v1887_v32  ;;  %v1882_v0 = vsel %vm8168_vm4, %v1877_v36, %v1881_v60  ;;  %vm8177_vm15 = vmmov %vm8168_vm4 }
 0x609   :  { %v1908_v8 = vsel %vm332_vm0, %v8166_v42, %v8165_v28  ;;  %v2026_v23 = vsel %vm984_vm5, %v1936_v38, %v8169_v24  ;;  %v2027_v35 = vsel %vm984_vm5, %v1938_v55, %v8170_v39  ;;  %v2020_v7 = vsel %vm332_vm0, %v1888_v22, %v8171_v56 }
 0x60a   :  { %v2017_v32 = vsel %vm332_vm0, %v1882_v0, %v8172_v37  ;;  %v6139_v20 = vpop.permute.xlu0 %1633  ;;  %v1630_v57 = vpop.permute.xlu1 %1629  ;;  %2085 = vmatpush.msra.mxu1 %v2026_v23  ;;  %2105 = vmatpush.msra.mxu2 %v2027_v35  ;;  %v8173_v6 = vrot.slane %v5663_v48, 4  ;;  %v8174_v60 = vrot.slane %v5707_v25, 4  ;;  %v8175_v51 = vrot.slane %v5962_v1, 5 }
 0x60b   :  { %v1886_v46 = vsel %vm8177_vm15, %v1879_v54, %v1885_v14  ;;  %v1637_v21 = vsel %vm8045_vm3, %v1630_v57, %v6139_v20  ;;  %v1639_v48 = vsel %vm8045_vm3, %v5802_v47, %v1630_v57  ;;  %2127 = vmatpush.msra.mxu3 %v2020_v7  ;;  %2067 = vmatpush.msra.mxu0 %v2017_v32  ;;  %v1857_v14 = vrot.slane %v1651_v5, 6  ;;  %v8184_v7 = vld [vmem:[#allocation48_spill] sm:$0xff] }
 0x60c   :  { %v1910_v17 = vsel %vm332_vm0, %v8174_v60, %v8173_v6  ;;  %v1884_v34 = vsel %vm8176_vm12, %v1878_v11, %v8175_v51  ;;  %v2022_v30 = vsel %vm962_vm9, %v1908_v8, %v1930_v13  ;;  %v1647_v1 = vmul.f32 %v1639_v48, %v8163_v9  ;;  %v6179_v35 = vpop.permute.xlu2 %1601  ;;  %v6572_v9 = vld [vmem:[%s8068_s26 + $0x100] sm:$0xff] }
 0x60d   :  { %v1648_v28 = vmul.f32 %v1637_v21, %v8164_v19  ;;  %2086 = vmatpush.msra.mxu1 %v2022_v30  ;;  %v2023_v42 = vsel %vm962_vm9, %v1910_v17, %v1931_v53  ;;  %v1859_v38 = vrot.slane %v1652_v58, 6  ;;  %v8178_v55 = vrot.slane %v5642_v50, 4  ;;  %v8182_v58 = vld [vmem:[#allocation47_spill] sm:$0xff]  ;;  %v6566_v19 = vld [vmem:[%s8068_s26 + $0x188] sm:$0xff] }
 0x60e   :  { %2106 = vmatpush.msra.mxu2 %v2023_v42  ;;  %vm8179_vm4 = vcmp.lt.s32.totalorder %v4771_v2, 16  ;;  %v1851_v13 = vrot.slane %v1647_v1, 6  ;;  %v8180_v24 = vmov %v8174_v60  ;;  %v1644_v30 = vsel %vm8045_vm3, %v5912_v44, %v1624_v18  ;;  %v8188_v1 = vld [vmem:[#allocation51_spill] sm:$0xff]  ;;  %v8190_v42 = vld [vmem:[#allocation49_spill] sm:$0xff] }
 0x60f   :  { %v2018_v22 = vsel %vm332_vm0, %v1884_v34, %v8178_v55  ;;  %v1608_v0 = vsel %vm8179_vm4, %v5798_v16, %v5936_v15  ;;  %v1852_v8 = vrot.slane %v1648_v28, 6  ;;  %v2019_v23 = vsel %vm332_vm0, %v1886_v46, %v8180_v24  ;;  %vm8181_vm12 = vmmov %vm8179_vm4  ;;  %v8191_v55 = vld [vmem:[#allocation50_spill] sm:$0xff] }
 0x610   :  { %2087 = vmatpush.msra.mxu1 %v2018_v22  ;;  %v1606_v53 = vsel %vm8181_vm12, %v5936_v15, %v5908_v63  ;;  %2107 = vmatpush.msra.mxu2 %v2019_v23  ;;  %v1858_v50 = vsel %vm420_vm2, %v1851_v13, %v1857_v14  ;;  %v1619_v39 = vmul.f32 %v1608_v0, %v8182_v58  ;;  %vm8183_vm4 = vmmov %vm8177_vm15  ;;  %v8192_v0 = vld [vmem:[#allocation36_spill] sm:$0xff] }
 0x611   :  { %v1860_v5 = vsel %vm420_vm2, %v1852_v8, %v1859_v38  ;;  %v2015_v56 = vsel %vm8177_vm15, %v1858_v50, %v1879_v54  ;;  %v1620_v37 = vmul.f32 %v1606_v53, %v8184_v7  ;;  %vm8185_vm14 = vmmov %vm8181_vm12  ;;  %vm8186_vm15 = vcmp.lt.s32.totalorder %v4771_v2, 17  ;;  %v8193_v53 = vld [vmem:[#allocation34_spill] sm:$0xff] }
 0x612   :  { %v2016_v25 = vsel %vm8183_vm4, %v1860_v5, %v1880_v43  ;;  %v1566_v32 = vpop.permute.xlu0 %1565  ;;  %v1598_v57 = vpop.permute.xlu1 %1597  ;;  %2108 = vmatpush.msra.mxu2 %v2015_v56  ;;  %v1576_v43 = vsel %vm8186_vm15, %v5824_v33, %v5916_v10  ;;  %vm8187_vm4 = vmmov %vm8186_vm15  ;;  %v1829_v51 = vrot.slane %v1619_v39, 7  ;;  %v1642_v46 = vsel %vm8045_vm3, %v1624_v18, %v5781_v27 }
 0x613   :  { %2128 = vmatpush.msra.mxu3 %v2016_v25  ;;  %v1605_v15 = vsel %vm8181_vm12, %v1598_v57, %v6179_v35  ;;  %v1607_v6 = vsel %vm8185_vm14, %v5814_v62, %v1598_v57  ;;  %v1574_v17 = vsel %vm8187_vm4, %v5916_v10, %v5930_v61  ;;  %v1831_v34 = vrot.slane %v1620_v37, 7  ;;  %vm8189_vm14 = vmmov %vm8187_vm4 }
 0x614   :  { %v1615_v60 = vmul.f32 %v1607_v6, %v8182_v58  ;;  %v1616_v54 = vmul.f32 %v1605_v15, %v8184_v7  ;;  %v1575_v28 = vsel %vm8189_vm14, %v8188_v1, %v1566_v32  ;;  %v1587_v14 = vmul.f32 %v1576_v43, %v8190_v42  ;;  %v1592_v56 = vpop.permute.xlu2 %1591  ;;  %vm8194_vm12 = vmmov %vm8187_vm4  ;;  %v6554_v7 = vld [vmem:[%s8068_s26 + $0x40] sm:$0xff] }
 0x615   :  { %v1588_v22 = vmul.f32 %v1574_v17, %v8191_v55  ;;  %v1650_v27 = vmul.f32 %v1642_v46, %v8192_v0  ;;  %v1649_v44 = vmul.f32 %v1644_v30, %v8193_v53  ;;  %v1583_v18 = vmul.f32 %v1575_v28, %v8190_v42  ;;  %v8197_v46 = vld [vmem:[#allocation32_spill] sm:$0xff]  ;;  %v8200_v28 = vld [vmem:[#allocation35_spill] sm:$0xff] }
 0x616   :  { %v1823_v21 = vrot.slane %v1615_v60, 7  ;;  %v1824_v48 = vrot.slane %v1616_v54, 7  ;;  %vm2040_vm15 = vcmask 662528   ;;  %vm8195_vm4 = vcmp.lt.s32.totalorder %v4771_v2, 16  ;;  %v6548_v42 = vld [vmem:[%s8068_s26 + $0x108] sm:$0xff]  ;;  %v6560_v58 = vld [vmem:[%s8068_s26 + $0xc0] sm:$0xff] }
 0x617   :  { %v1853_v60 = vrot.slane %v1649_v44, 6  ;;  %vm8196_vm14 = vmmov %vm8195_vm4 }
 0x618   :  { %v1830_v10 = vsel %vm648_vm7, %v1823_v21, %v1829_v51  ;;  %v1832_v38 = vsel %vm648_vm7, %v1824_v48, %v1831_v34  ;;  %v2007_v39 = vsel %vm648_vm7, %v1587_v14, %v1823_v21  ;;  %v2008_v37 = vsel %vm648_vm7, %v1588_v22, %v1824_v48 }
 0x619   :  { %v2011_v24 = vsel %vm420_vm2, %v1830_v10, %v1851_v13  ;;  %v2012_v23 = vsel %vm420_vm2, %v1832_v38, %v1852_v8  ;;  %v1610_v17 = vsel %vm8196_vm14, %v1592_v56, %v5798_v16  ;;  %v6260_v16 = vld [vmem:[%s8068_s26 + $0x1f8] sm:$0xff] }
 0x61a   :  { %v6218_v50 = vpop.permute.xlu0 %1569  ;;  %v1622_v5 = vpop.permute.xlu1 %1621  ;;  %2109 = vmatpush.msra.mxu2 %v2011_v24  ;;  %2129 = vmatpush.msra.mxu3 %v2012_v23  ;;  %v1618_v14 = vmul.f32 %v1610_v17, %v8200_v28  ;;  %v6297_v24 = vld [vmem:[%s8068_s26 + $0x168] sm:$0xff] }
 0x61b   :  { %v1573_v25 = vsel %vm8194_vm12, %v1566_v32, %v6218_v50  ;;  %v1641_v13 = vsel %vm8045_vm3, %v1622_v5, %v5802_v47  ;;  %v1643_v8 = vsel %vm8045_vm3, %v6139_v20, %v1622_v5  ;;  %v6237_v32 = vld [vmem:[%s7940_s13] sm:$0xff]  ;;  %v1855_v47 = vrot.slane %v1650_v27, 6  ;;  %vm8201_vm3 = vmmov %vm8196_vm14  ;;  %v6288_v27 = vld [vmem:[%s8068_s26 + $0x1f0] sm:$0xff] }
 0x61c   :  { %v1584_v57 = vmul.f32 %v1573_v25, %v8191_v55  ;;  %v1645_v15 = vmul.f32 %v1643_v8, %v8193_v53  ;;  %v1646_v6 = vmul.f32 %v1641_v13, %v8192_v0  ;;  %2110 = vmatpush.msra.mxu2 %v2007_v39  ;;  %2130 = vmatpush.msra.mxu3 %v2008_v37  ;;  %vm8198_vm12 = vcmask 1042432   ;;  %v6306_v39 = vld [vmem:[%s8068_s26 + $0x1e8] sm:$0xff]  ;;  %v6321_v8 = vld [vmem:[%s8068_s26 + $0x1e0] sm:$0xff]  ;;  %v6542_v55 = vld [vmem:[%s8068_s26 + $0x190] sm:$0xff] }
 0x61d   :  { %v1612_v20 = vsel %vm8195_vm4, %v5908_v63, %v1592_v56  ;;  %v6254_v63 = vld [vmem:[%s8068_s26 + $0x178] sm:$0xff]  ;;  %vm8199_vm4 = vmmov %vm8198_vm12  ;;  %v1827_v23 = vrot.slane %v1618_v14, 7  ;;  %v8204_v56 = vld [vmem:[#allocation39_spill] sm:$0xff] }
 0x61e   :  { %v1849_v54 = vrot.slane %v1645_v15, 6  ;;  %v1850_v43 = vrot.slane %v1646_v6, 6  ;;  %2111 = vmatpush.msra.mxu2 %v1583_v18  ;;  %2131 = vmatpush.msra.mxu3 %v1584_v57  ;;  %v1617_v21 = vmul.f32 %v1612_v20, %v8197_v46  ;;  %v8205_v37 = vld [vmem:[#allocation40_spill] sm:$0xff]  ;;  %v6380_v14 = vld [vmem:[%s8068_s26 + $0x140] sm:$0xff]  ;;  %v6605_v0 = vld [vmem:[%s8068_s26 + $0xb0] sm:$0xff] }
 0x61f   :  { %3696 = vmatmul.msk.f32.vlgmr.msra.gmra.mxu2 %vm2040_vm15, %v6237_v32  ;;  %3698 = vmatmul.msk.f32.vlgmr.msra.gmra.mxu3 %vm2040_vm15, %v6237_v32 }
 0x620   :  { %v1854_v51 = vsel %vm420_vm2, %v1849_v54, %v1853_v60  ;;  %v1856_v34 = vsel %vm420_vm2, %v1850_v43, %v1855_v47  ;;  %2176 = vmatpush.msrb.mxu2 %v6254_v63  ;;  %2196 = vmatpush.msrb.mxu3 %v6260_v16  ;;  %v6330_v47 = vld [vmem:[%s8068_s26 + $0x158] sm:$0xff] }
 0x621   :  { %v2013_v48 = vsel %vm8198_vm12, %v1854_v51, %v1877_v36  ;;  %v2014_v30 = vsel %vm8199_vm4, %v1856_v34, %v1878_v11  ;;  %v6344_v51 = vld [vmem:[%s8068_s26 + $0x1d8] sm:$0xff]  ;;  %v6350_v34 = vld [vmem:[%s8068_s26 + $0x150] sm:$0xff] }
 0x622   :  { %v1560_v10 = vpop.permute.xlu0 %1559  ;;  %v1590_v38 = vpop.permute.xlu1 %1589  ;;  %2068 = vmatpush.msra.mxu0 %v2013_v48  ;;  %2088 = vmatpush.msra.mxu1 %v2014_v30  ;;  %v6364_v48 = vld [vmem:[%s8068_s26 + $0x148] sm:$0xff] }
 0x623   :  { %v1609_v22 = vsel %vm8196_vm14, %v1590_v38, %v5814_v62  ;;  %v1611_v4 = vsel %vm8201_vm3, %v6179_v35, %v1590_v38  ;;  %2177 = vmatpush.msrb.mxu2 %v6280_v26  ;;  %2197 = vmatpush.msrb.mxu3 %v6288_v27  ;;  %v1825_v62 = vrot.slane %v1617_v21, 7  ;;  %vm8202_vm3 = vcmp.lt.s32.totalorder %v4771_v2, 17  ;;  %v6358_v21 = vld [vmem:[%s8068_s26 + $0x1d0] sm:$0xff]  ;;  %v6374_v30 = vld [vmem:[%s8068_s26 + $0x1c8] sm:$0xff]  ;;  %v6398_v38 = vld [vmem:[%s8068_s26 + $0x1c0] sm:$0xff] }
 0x624   :  { %v1613_v11 = vmul.f32 %v1611_v4, %v8197_v46  ;;  %v1614_v36 = vmul.f32 %v1609_v22, %v8200_v28  ;;  %v1580_v35 = vsel %vm8202_vm3, %v5930_v61, %v1560_v10  ;;  %vm8203_vm12 = vmmov %vm8202_vm3  ;;  %v6312_v61 = vld [vmem:[%s8068_s26 + $0x160] sm:$0xff]  ;;  %v6404_v22 = vld [vmem:[%s8068_s26 + $0x138] sm:$0xff] }
 0x625   :  { %2178 = vmatpush.msrb.mxu2 %v6297_v24  ;;  %v1578_v44 = vsel %vm8203_vm12, %v1560_v10, %v5824_v33  ;;  %2198 = vmatpush.msrb.mxu3 %v6306_v39  ;;  %v1585_v25 = vmul.f32 %v1580_v35, %v8204_v56  ;;  %vm8206_vm4 = vmmov %vm8202_vm3  ;;  %v6386_v10 = vld [vmem:[%s8068_s26 + $0x78] sm:$0xff]  ;;  %v6410_v4 = vld [vmem:[%s8068_s26 + $0x70] sm:$0xff] }
 0x626   :  { %v1821_v18 = vrot.slane %v1613_v11, 7  ;;  %v1822_v5 = vrot.slane %v1614_v36, 7  ;;  %v1586_v57 = vmul.f32 %v1578_v44, %v8205_v37  ;;  %vm8207_vm14 = vmmov %vm8202_vm3  ;;  %v6416_v11 = vld [vmem:[%s8068_s26 + $0xf0] sm:$0xff]  ;;  %v6422_v36 = vld [vmem:[%s8068_s26 + $0x1b8] sm:$0xff]  ;;  %vm8213_vm3 = vcmask 64512  }
 0x627   :  { %2179 = vmatpush.msrb.mxu2 %v6312_v61  ;;  %2199 = vmatpush.msrb.mxu3 %v6321_v8  ;;  %v6434_v35 = vld [vmem:[%s8068_s26 + $0x68] sm:$0xff]  ;;  %v6446_v44 = vld [vmem:[%s8068_s26 + $0x1b0] sm:$0xff]  ;;  %v6591_v28 = vld [vmem:[%s8068_s26 + $0xb8] sm:$0xff] }
 0x628   :  { %v1826_v33 = vsel %vm648_vm7, %v1821_v18, %v1825_v62  ;;  %v1828_v13 = vsel %vm648_vm7, %v1822_v5, %v1827_v23  ;;  %v2005_v20 = vsel %vm648_vm7, %v1585_v25, %v1821_v18  ;;  %v6428_v62 = vld [vmem:[%s8068_s26 + $0x130] sm:$0xff]  ;;  %v6440_v23 = vld [vmem:[%s8068_s26 + $0xe8] sm:$0xff]  ;;  %v6464_v25 = vld [vmem:[%s8068_s26 + $0xe0] sm:$0xff] }
 0x629   :  { %v2009_v15 = vsel %vm420_vm2, %v1826_v33, %v1849_v54  ;;  %v2010_v6 = vsel %vm420_vm2, %v1828_v13, %v1850_v43  ;;  %2180 = vmatpush.msrb.mxu2 %v6330_v47  ;;  %v2006_v43 = vsel %vm648_vm7, %v1586_v57, %v1822_v5  ;;  %2200 = vmatpush.msrb.mxu3 %v6344_v51  ;;  %v6452_v18 = vld [vmem:[%s8068_s26 + $0x128] sm:$0xff]  ;;  %v6458_v5 = vld [vmem:[%s8068_s26 + $0x60] sm:$0xff]  ;;  %v6482_v57 = vld [vmem:[%s8068_s26 + $0x58] sm:$0xff] }
 0x62a   :  { %v1558_v60 = vpop.permute.xlu1 %1557  ;;  %2069 = vmatpush.msra.mxu0 %v2009_v15  ;;  %2089 = vmatpush.msra.mxu1 %v2010_v6  ;;  %v6470_v33 = vld [vmem:[%s8068_s26 + $0x1a8] sm:$0xff]  ;;  %v6476_v13 = vld [vmem:[%s8068_s26 + $0x120] sm:$0xff]  ;;  %v6488_v15 = vld [vmem:[%s8068_s26 + $0xd8] sm:$0xff] }
 0x62b   :  { %v1577_v17 = vsel %vm8206_vm4, %v1558_v60, %v8188_v1  ;;  %v1579_v54 = vsel %vm8207_vm14, %v6218_v50, %v1558_v60  ;;  %2181 = vmatpush.msrb.mxu2 %v6350_v34  ;;  %2201 = vmatpush.msrb.mxu3 %v6358_v21  ;;  %v6494_v6 = vld [vmem:[%s8068_s26 + $0x1a0] sm:$0xff]  ;;  %v6500_v60 = vld [vmem:[%s8068_s26 + $0x118] sm:$0xff]  ;;  %vm8215_vm12 = vmmov %vm8213_vm3 }
 0x62c   :  { %v1581_v1 = vmul.f32 %v1579_v54, %v8204_v56  ;;  %v1582_v50 = vmul.f32 %v1577_v17, %v8205_v37  ;;  %2070 = vmatpush.msra.mxu0 %v2005_v20  ;;  %2090 = vmatpush.msra.mxu1 %v2006_v43  ;;  %v6506_v20 = vld [vmem:[%s8068_s26 + $0x50] sm:$0xff]  ;;  %v6518_v54 = vld [vmem:[%s8068_s26 + $0x198] sm:$0xff]  ;;  %v6585_v56 = vld [vmem:[%s8068_s26 + $0x180] sm:$0xff] }
 0x62d   :  { %2182 = vmatpush.msrb.mxu2 %v6364_v48  ;;  %2202 = vmatpush.msrb.mxu3 %v6374_v30  ;;  %v6512_v17 = vld [vmem:[%s8068_s26 + $0xd0] sm:$0xff]  ;;  %v6579_v37 = vld [vmem:[%s8068_s26 + $0x38] sm:$0xff] }
 0x62e   :  { %2071 = vmatpush.msra.mxu0 %v1581_v1  ;;  %2091 = vmatpush.msra.mxu1 %v1582_v50  ;;  %v6524_v43 = vld [vmem:[%s8068_s26 + $0x110] sm:$0xff]  ;;  %v6530_v1 = vld [vmem:[%s8068_s26 + $0x48] sm:$0xff] }
 0x62f   :  { %3692 = vmatmul.msk.f32.vlgmr.msra.gmra.mxu0 %vm2040_vm15, %v6237_v32  ;;  %3694 = vmatmul.msk.f32.vlgmr.msra.gmra.mxu1 %vm2040_vm15, %v6237_v32  ;;  %v6392_v32 = vld [vmem:[%s8068_s26 + $0xf8] sm:$0xff]  ;;  %v6536_v50 = vld [vmem:[%s8068_s26 + $0xc8] sm:$0xff] }
 0x630   :  { %2183 = vmatpush.msrb.mxu2 %v6380_v14  ;;  %2136 = vmatpush.msrb.mxu0 %v6386_v10 }
 0x631   :  { %2156 = vmatpush.msrb.mxu1 %v6392_v32  ;;  %2203 = vmatpush.msrb.mxu3 %v6398_v38 }
 0x632   :  { %2184 = vmatpush.msrb.mxu2 %v6404_v22  ;;  %2137 = vmatpush.msrb.mxu0 %v6410_v4 }
 0x633   :  { %2157 = vmatpush.msrb.mxu1 %v6416_v11  ;;  %2204 = vmatpush.msrb.mxu3 %v6422_v36 }
 0x634   :  { %2185 = vmatpush.msrb.mxu2 %v6428_v62  ;;  %2138 = vmatpush.msrb.mxu0 %v6434_v35 }
 0x635   :  { %2158 = vmatpush.msrb.mxu1 %v6440_v23  ;;  %2205 = vmatpush.msrb.mxu3 %v6446_v44 }
 0x636   :  { %2186 = vmatpush.msrb.mxu2 %v6452_v18  ;;  %2139 = vmatpush.msrb.mxu0 %v6458_v5 }
 0x637   :  { %2159 = vmatpush.msrb.mxu1 %v6464_v25  ;;  %2206 = vmatpush.msrb.mxu3 %v6470_v33 }
 0x638   :  { %2187 = vmatpush.msrb.mxu2 %v6476_v13  ;;  %2140 = vmatpush.msrb.mxu0 %v6482_v57 }
 0x639   :  { %2160 = vmatpush.msrb.mxu1 %v6488_v15  ;;  %2207 = vmatpush.msrb.mxu3 %v6494_v6 }
 0x63a   :  { %2188 = vmatpush.msrb.mxu2 %v6500_v60  ;;  %2141 = vmatpush.msrb.mxu0 %v6506_v20 }
 0x63b   :  { %2161 = vmatpush.msrb.mxu1 %v6512_v17  ;;  %2208 = vmatpush.msrb.mxu3 %v6518_v54 }
 0x63c   :  { %2189 = vmatpush.msrb.mxu2 %v6524_v43  ;;  %2142 = vmatpush.msrb.mxu0 %v6530_v1 }
 0x63d   :  { %2162 = vmatpush.msrb.mxu1 %v6536_v50  ;;  %2209 = vmatpush.msrb.mxu3 %v6542_v55 }
 0x63e   :  { %2190 = vmatpush.msrb.mxu2 %v6548_v42  ;;  %2143 = vmatpush.msrb.mxu0 %v6554_v7 }
 0x63f   :  { %2163 = vmatpush.msrb.mxu1 %v6560_v58  ;;  %2210 = vmatpush.msrb.mxu3 %v6566_v19 }
 0x640   :  { %2191 = vmatpush.msrb.mxu2 %v6572_v9  ;;  %2144 = vmatpush.msrb.mxu0 %v6579_v37 }
 0x641   :  { %2211 = vmatpush.msrb.mxu3 %v6585_v56  ;;  %2164 = vmatpush.msrb.mxu1 %v6591_v28 }
 0x642   :  { %2260 = vmatpush.msra.mxu2 %v6254_v63  ;;  %v6599_v63 = vld [vmem:[%s8068_s26 + $0x30] sm:$0xff] }
 0x643   :  { %2280 = vmatpush.msra.mxu3 %v6260_v16  ;;  %2145 = vmatpush.msrb.mxu0 %v6599_v63  ;;  %v6613_v16 = vld [vmem:[%s8068_s26 + $0x28] sm:$0xff] }
 0x644   :  { %2261 = vmatpush.msra.mxu2 %v6280_v26  ;;  %2165 = vmatpush.msrb.mxu1 %v6605_v0  ;;  %v6619_v26 = vld [vmem:[%s8068_s26 + $0xa8] sm:$0xff] }
 0x645   :  { %2281 = vmatpush.msra.mxu3 %v6288_v27  ;;  %2146 = vmatpush.msrb.mxu0 %v6613_v16  ;;  %v6627_v27 = vld [vmem:[%s8068_s26 + $0x20] sm:$0xff] }
 0x646   :  { %2262 = vmatpush.msra.mxu2 %v6297_v24  ;;  %2166 = vmatpush.msrb.mxu1 %v6619_v26  ;;  %v6633_v24 = vld [vmem:[%s8068_s26 + $0xa0] sm:$0xff] }
 0x647   :  { %2282 = vmatpush.msra.mxu3 %v6306_v39  ;;  %2147 = vmatpush.msrb.mxu0 %v6627_v27  ;;  %v3886_v39 = vld [vmem:[%s8068_s26 + $0x18] sm:$0xff] }
 0x648   :  { %2263 = vmatpush.msra.mxu2 %v6312_v61  ;;  %2167 = vmatpush.msrb.mxu1 %v6633_v24  ;;  %v3887_v61 = vld [vmem:[%s8068_s26 + $0x98] sm:$0xff] }
 0x649   :  { %2283 = vmatpush.msra.mxu3 %v6321_v8  ;;  %2148 = vmatpush.msrb.mxu0 %v3886_v39  ;;  %v3888_v8 = vld [vmem:[%s8068_s26 + $0x10] sm:$0xff] }
 0x64a   :  { %2264 = vmatpush.msra.mxu2 %v6330_v47  ;;  %2168 = vmatpush.msrb.mxu1 %v3887_v61  ;;  %v3889_v47 = vld [vmem:[%s8068_s26 + $0x90] sm:$0xff] }
 0x64b   :  { %2284 = vmatpush.msra.mxu3 %v6344_v51  ;;  %2149 = vmatpush.msrb.mxu0 %v3888_v8  ;;  %v3890_v51 = vld [vmem:[%s8068_s26 + $0x8] sm:$0xff] }
 0x64c   :  { %2265 = vmatpush.msra.mxu2 %v6350_v34  ;;  %2169 = vmatpush.msrb.mxu1 %v3889_v47  ;;  %v3891_v34 = vld [vmem:[%s8068_s26 + $0x88] sm:$0xff] }
 0x64d   :  { %2285 = vmatpush.msra.mxu3 %v6358_v21  ;;  %2150 = vmatpush.msrb.mxu0 %v3890_v51  ;;  %v3892_v21 = vld [vmem:[%s8068_s26] sm:$0xff] }
 0x64e   :  { %2266 = vmatpush.msra.mxu2 %v6364_v48  ;;  %2170 = vmatpush.msrb.mxu1 %v3891_v34  ;;  %v3893_v48 = vld [vmem:[%s8068_s26 + $0x80] sm:$0xff] }
 0x64f   :  { %2286 = vmatpush.msra.mxu3 %v6374_v30  ;;  %2151 = vmatpush.msrb.mxu0 %v3892_v21 }
 0x650   :  { %2267 = vmatpush.msra.mxu2 %v6380_v14  ;;  %2171 = vmatpush.msrb.mxu1 %v3893_v48 }
 0x651   :  { %2287 = vmatpush.msra.mxu3 %v6398_v38  ;;  %2220 = vmatpush.msra.mxu0 %v6386_v10  ;;  %v8211_v38 = vld [vmem:[#allocation13_spill] sm:$0xff] }
 0x652   :  { %2268 = vmatpush.msra.mxu2 %v6404_v22  ;;  %2240 = vmatpush.msra.mxu1 %v6392_v32  ;;  %v8210_v32 = vld [vmem:[#allocation12_spill] sm:$0xff] }
 0x653   :  { %2288 = vmatpush.msra.mxu3 %v6422_v36  ;;  %2221 = vmatpush.msra.mxu0 %v6410_v4 }
 0x654   :  { %2269 = vmatpush.msra.mxu2 %v6428_v62  ;;  %2241 = vmatpush.msra.mxu1 %v6416_v11 }
 0x655   :  { %2289 = vmatpush.msra.mxu3 %v6446_v44  ;;  %2222 = vmatpush.msra.mxu0 %v6434_v35 }
 0x656   :  { %2270 = vmatpush.msra.mxu2 %v6452_v18  ;;  %2242 = vmatpush.msra.mxu1 %v6440_v23 }
 0x657   :  { %2290 = vmatpush.msra.mxu3 %v6470_v33  ;;  %2223 = vmatpush.msra.mxu0 %v6458_v5  ;;  %v8212_v33 = vld [vmem:[#allocation7_spill] sm:$0xff] }
 0x658   :  { %2271 = vmatpush.msra.mxu2 %v6476_v13  ;;  %2243 = vmatpush.msra.mxu1 %v6464_v25 }
 0x659   :  { %2291 = vmatpush.msra.mxu3 %v6494_v6  ;;  %2224 = vmatpush.msra.mxu0 %v6482_v57  ;;  %v3894_v57 = vld [vmem:[%s8141_s9] sm:$0xff]  ;;  %v8214_v6 = vld [vmem:[#allocation6_spill] sm:$0xff] }
 0x65a   :  { %2272 = vmatpush.msra.mxu2 %v6500_v60  ;;  %2244 = vmatpush.msra.mxu1 %v6488_v15 }
 0x65b   :  { %2292 = vmatpush.msra.mxu3 %v6518_v54  ;;  %2225 = vmatpush.msra.mxu0 %v6506_v20  ;;  %v8216_v54 = vld [vmem:[#allocation8_spill] sm:$0xff] }
 0x65c   :  { %2273 = vmatpush.msra.mxu2 %v6524_v43  ;;  %2245 = vmatpush.msra.mxu1 %v6512_v17  ;;  %v8217_v43 = vld [vmem:[#allocation14_spill] sm:$0xff] }
 0x65d   :  { %2293 = vmatpush.msra.mxu3 %v6542_v55  ;;  %2226 = vmatpush.msra.mxu0 %v6530_v1  ;;  %v8208_v55 = vld [vmem:[#allocation9_spill] sm:$0xff] }
 0x65e   :  { %2274 = vmatpush.msra.mxu2 %v6548_v42  ;;  %2246 = vmatpush.msra.mxu1 %v6536_v50 }
 0x65f   :  { %2294 = vmatpush.msra.mxu3 %v6566_v19  ;;  %2227 = vmatpush.msra.mxu0 %v6554_v7 }
 0x660   :  { %2275 = vmatpush.msra.mxu2 %v6572_v9  ;;  %2247 = vmatpush.msra.mxu1 %v6560_v58  ;;  %v2038_v9 = vpop.permute.xlu2 %2037 }
 0x661   :  { %2295 = vmatpush.msra.mxu3 %v6585_v56  ;;  %2228 = vmatpush.msra.mxu0 %v6579_v37 }
 0x662   :  { %2248 = vmatpush.msra.mxu1 %v6591_v28 }
 0x663   :  { %2229 = vmatpush.msra.mxu0 %v6599_v63 }
 0x664   :  { %2249 = vmatpush.msra.mxu1 %v6605_v0  ;;  %v8209_v0 = vld [vmem:[#allocation11_spill] sm:$0xff] }
 0x665   :  { %2230 = vmatpush.msra.mxu0 %v6613_v16 }
 0x666   :  { %2250 = vmatpush.msra.mxu1 %v6619_v26 }
 0x667   :  { %2231 = vmatpush.msra.mxu0 %v6627_v27 }
 0x668   :  { %2251 = vmatpush.msra.mxu1 %v6633_v24 }
 0x669   :  { %2232 = vmatpush.msra.mxu0 %v3886_v39 }
 0x66a   :  { %2252 = vmatpush.msra.mxu1 %v3887_v61 }
 0x66b   :  { %2233 = vmatpush.msra.mxu0 %v3888_v8 }
 0x66c   :  { %2253 = vmatpush.msra.mxu1 %v3889_v47 }
 0x66d   :  { %2234 = vmatpush.msra.mxu0 %v3890_v51 }
 0x66e   :  { %2254 = vmatpush.msra.mxu1 %v3891_v34 }
 0x66f   :  { %2235 = vmatpush.msra.mxu0 %v3892_v21 }
 0x670   :  { %2255 = vmatpush.msra.mxu1 %v3893_v48  ;;  %v2360_v48 = vpop.permute.xlu0 %2359 }
 0x6a2   :  { %v2113_v19 = vpop.f32.mrf.mxu2  ;;  %v2133_v58 = vpop.f32.mrf.mxu3 }
 0x6a3   :  { %v6709_v7 = vadd.f32 %v2113_v19, %v2038_v9  ;;  %v6711_v42 = vadd.f32 %v2133_v58, %v2038_v9 }
 0x6a5   :  { %2192 = vmatmul.f32.vlgmr.msrb.gmra.mxu2 %v6709_v7  ;;  %2212 = vmatmul.f32.vlgmr.msrb.gmra.mxu3 %v6711_v42  ;;  %v2218_v28 = vmul.f32 %v6709_v7, %v6709_v7  ;;  %v2219_v56 = vmul.f32 %v6711_v42, %v6711_v42 }
 0x6a6   :  { %3701 = vmatpush.msk.msrb.mxu2 %vm420_vm2, %v8208_v55  ;;  %3703 = vmatpush.msk.msrb.mxu3 %vm420_vm2, %v8209_v0  ;;  %v2368_v55 = vpop.permute.xlu1 %2367 }
 0x6ac   :  { %v2073_v37 = vpop.f32.mrf.mxu0  ;;  %v2093_v30 = vpop.f32.mrf.mxu1 }
 0x6ad   :  { %v6723_v14 = vadd.f32 %v2073_v37, %v2038_v9  ;;  %v6725_v10 = vadd.f32 %v2093_v30, %v2038_v9  ;;  %2276 = vmatmul.f32.vlgmr.msra.gmra.mxu2 %v2218_v28  ;;  %2296 = vmatmul.f32.vlgmr.msra.gmra.mxu3 %v2219_v56 }
 0x6ae   :  { %3709 = vmatpush.msk.msra.mxu2 %vm420_vm2, %v8210_v32  ;;  %3711 = vmatpush.msk.msra.mxu3 %vm420_vm2, %v8211_v38 }
 0x6af   :  { %2152 = vmatmul.f32.vlgmr.msrb.gmra.mxu0 %v6723_v14  ;;  %2172 = vmatmul.f32.vlgmr.msrb.gmra.mxu1 %v6725_v10  ;;  %v2216_v22 = vmul.f32 %v6723_v14, %v6723_v14  ;;  %v2217_v4 = vmul.f32 %v6725_v10, %v6725_v10 }
 0x6b7   :  { %2236 = vmatmul.f32.vlgmr.msra.gmra.mxu0 %v2216_v22  ;;  %2256 = vmatmul.f32.vlgmr.msra.gmra.mxu1 %v2217_v4 }
 0x728   :  { %v2193_v11 = vpop.f32.mrf.mxu2  ;;  %v2213_v23 = vpop.f32.mrf.mxu3 }
 0x72c   :  { %v2153_v36 = vpop.f32.mrf.mxu0  ;;  %v2173_v62 = vpop.f32.mrf.mxu1 }
 0x72d   :  { %v2174_v35 = vadd.f32 %v2173_v62, %v2153_v36 }
 0x72f   :  { %v2194_v44 = vadd.f32 %v2193_v11, %v2174_v35 }
 0x730   :  { %v2277_v15 = vpop.f32.mrf.mxu2  ;;  %v2297_v20 = vpop.f32.mrf.mxu3 }
 0x731   :  { %v2214_v18 = vadd.f32 %v2213_v23, %v2194_v44 }
 0x733   :  { %2315 = vmatpush.msrb.mxu0 %v2214_v18 }
 0x734   :  { %v2237_v5 = vpop.f32.mrf.mxu0  ;;  %v2257_v25 = vpop.f32.mrf.mxu1  ;;  %3699 = vmatmul.msk.f32.vlgmr.msrb.gmra.mxu0 %vm8213_vm3, %v3894_v57 }
 0x735   :  { %3705 = vmatpush.msk.msra.mxu0 %vm420_vm2, %v8212_v33  ;;  %v2258_v13 = vadd.f32 %v2257_v25, %v2237_v5 }
 0x737   :  { %3713 = vmatpush.msk.msrb.mxu0 %vm420_vm2, %v8214_v6  ;;  %v2278_v60 = vadd.f32 %v2277_v15, %v2258_v13 }
 0x739   :  { %v2298_v17 = vadd.f32 %v2297_v20, %v2278_v60 }
 0x73b   :  { %2336 = vmatpush.msrb.mxu1 %v2298_v17 }
 0x73c   :  { %3700 = vmatmul.msk.f32.vlgmr.msrb.gmra.mxu1 %vm8215_vm12, %v3894_v57  ;;  %vm8228_vm12 = vcmp.lt.s32.totalorder %v4771_v2, 1 }
 0x73d   :  { %3707 = vmatpush.msk.msra.mxu1 %vm420_vm2, %v8216_v54 }
 0x73f   :  { %3715 = vmatpush.msk.msrb.mxu1 %vm420_vm2, %v8217_v43 }
 0x7b1   :  { %v2317_v1 = vpop.f32.mrf.mxu0 }
 0x7b2   :  { %v2320_v50 = vmul.f32 0.00390625, %v2317_v1 }
 0x7b4   :  { %v2342_v63 = vmul.f32 %v2320_v50, %v2320_v50 }
 0x7b9   :  { %v2338_v16 = vpop.f32.mrf.mxu1 }
 0x7ba   :  { %v2341_v26 = vmul.f32 0.00390625, %v2338_v16 }
 0x7bc   :  { %v2343_v27 = vsub.f32 %v2341_v26, %v2342_v63 }
 0x7be   :  { %v2344_v24 = vmax.f32 %v2343_v27, 0.0 }
 0x7c0   :  { %v2346_v39 = vadd.f32 1e-05, %v2344_v24 }
 0x7c2   :  { %3762 = vrsqrt.f32 %v2346_v39  ;;  %vm2353_vm14 = vweird.f32 %v2346_v39 }
 0x7c8   :  { %v3763_v61 = vpop.eup %3762 }
 0x7c9   :  { %v2348_v8 = vmul.f32 %v3763_v61, %v2346_v39  ;;  %vm2354_vm4 = vweird.f32 %v3763_v61 }
 0x7ca   :  { %vm2355_vm3 = vmor %vm2353_vm14, %vm2354_vm4 }
 0x7cb   :  { %v2349_v47 = vmul.f32 %v3763_v61, %v2348_v8  ;;  %vm8229_vm4 = vmmov %vm8228_vm12 }
 0x7cc   :  { %vm8230_vm14 = vmmov %vm8229_vm4 }
 0x7cd   :  { %v2350_v51 = vmul.f32 0.5, %v2349_v47 }
 0x7cf   :  { %v2351_v34 = vsub.f32 1.5, %v2350_v51 }
 0x7d1   :  { %v2352_v21 = vmul.f32 %v3763_v61, %v2351_v34 }
 0x7d3   :  { %v2356_v9 = vsel %vm2355_vm3, %v3763_v61, %v2352_v21  ;;  %vm8231_vm3 = vmmov %vm8229_vm4 }
 0x7d4   :  { %v2362_v19 = vmul.f32 %v2360_v48, %v2356_v9 }
 0x7d6   :  { %3702 = vmatmul.msk.f32.vlgmr.msrb.gmra.mxu2 %vm416_vm6, %v2362_v19  ;;  %3704 = vmatmul.msk.f32.vlgmr.msrb.gmra.mxu3 %vm416_vm6, %v2362_v19  ;;  %v2364_v58 = vmul.f32 %v2362_v19, %v2320_v50 }
 0x7d7   :  { %3706 = vmatmul.msk.f32.vlgmr.msra.gmra.mxu0 %vm416_vm6, %v2362_v19  ;;  %3708 = vmatmul.msk.f32.vlgmr.msra.gmra.mxu1 %vm416_vm6, %v2362_v19 }
 0x7d8   :  { %v2370_v0 = vsub.f32 %v2368_v55, %v2364_v58 }
 0x7de   :  { %3710 = vmatmul.msk.f32.vlgmr.msra.gmra.mxu2 %vm416_vm6, %v2370_v0  ;;  %3712 = vmatmul.msk.f32.vlgmr.msra.gmra.mxu3 %vm416_vm6, %v2370_v0 }
 0x7df   :  { %3714 = vmatmul.msk.f32.vlgmr.msrb.gmra.mxu0 %vm416_vm6, %v2370_v0  ;;  %3716 = vmatmul.msk.f32.vlgmr.msrb.gmra.mxu1 %vm416_vm6, %v2370_v0 }
 0x854   :  { %v2444_v28 = vpop.f32.mrf.mxu0  ;;  %v2464_v56 = vpop.f32.mrf.mxu1 }
 0x855   :  { %v2469_v37 = vmul.f32 %v2444_v28, %v6709_v7  ;;  %v2470_v30 = vmul.f32 %v2464_v56, %v6711_v42  ;;  %v8218_v7 = vld [vmem:[#allocation10_spill] sm:$0xff] }
 0x859   :  { %v2404_v23 = vpop.f32.mrf.mxu2  ;;  %v2424_v44 = vpop.f32.mrf.mxu3 }
 0x85a   :  { %v2467_v5 = vmul.f32 %v2404_v23, %v6723_v14  ;;  %v2468_v15 = vmul.f32 %v2424_v44, %v6725_v10 }
 0x85c   :  { %v2544_v32 = vpop.f32.mrf.mxu0  ;;  %v2564_v38 = vpop.f32.mrf.mxu1 }
 0x85d   :  { %v2569_v22 = vadd.f32 %v2544_v32, %v2469_v37  ;;  %v2570_v4 = vadd.f32 %v2564_v38, %v2470_v30 }
 0x85f   :  { %v2573_v11 = vmax.f32 %v2569_v22, 0.0  ;;  %v2574_v36 = vmax.f32 %v2570_v4, 0.0  ;;  %v3068_v22 = vld [vmem:[%s7945_s18] sm:$0xf] }
 0x860   :  { %v3384_v4 = vld [vmem:[%s7946_s19] sm:$0xf] }
 0x861   :  { %v6760_v62 = vrot.slane %v2573_v11, 7  ;;  %v6762_v35 = vrot.slane %v2574_v36, 7  ;;  %v2504_v18 = vpop.f32.mrf.mxu2  ;;  %v2524_v57 = vpop.f32.mrf.mxu3 }
 0x862   :  { %v2567_v25 = vadd.f32 %v2504_v18, %v2467_v5  ;;  %v2568_v6 = vadd.f32 %v2524_v57, %v2468_v15 }
 0x863   :  { %2765 = vrot.lane.b32.xlu0 %v6762_v35, %s3988_s29  ;;  %2829 = vrot.lane.b32.xlu2 %v6762_v35, %s3990_s4  ;;  %v6773_v42 = vsel %vm648_vm7, %v8218_v7, %v6762_v35  ;;  %v6785_v33 = vsel %vm648_vm7, %v8218_v7, %v6760_v62 }
 0x864   :  { %2825 = vrot.lane.b32.xlu1 %v6760_v62, %s3990_s4  ;;  %v2571_v13 = vmax.f32 %v2567_v25, 0.0  ;;  %v2572_v60 = vmax.f32 %v2568_v6, 0.0 }
 0x866   :  { %v6794_v14 = vrot.slane %v2571_v13, 7  ;;  %v6802_v20 = vrot.slane %v2572_v60, 7  ;;  %v8224_v60 = vld [vmem:[#allocation19_spill] sm:$0xff] }
 0x868   :  { %v6849_v10 = vsel %vm648_vm7, %v8218_v7, %v6794_v14  ;;  %v6854_v17 = vsel %vm648_vm7, %v8218_v7, %v6802_v20  ;;  %v3402_v7 = vld [vmem:[%s7947_s20] sm:$0xf] }
 0x869   :  { %8219 = vst [vmem:[#allocation29_spill] sm:$0xff] %v6849_v10 }
 0x86a   :  { %8220 = vst [vmem:[#allocation30_spill] sm:$0xff] %v6854_v17 }
 0x86b   :  { %2733 = vrot.lane.b32.xlu0 %v6762_v35, %s3989_s0  ;;  %2763 = vrot.lane.b32.xlu2 %v6773_v42, %s3988_s29 }
 0x86c   :  { %2793 = vrot.lane.b32.xlu1 %v6760_v62, %s3987_s28 }
 0x873   :  { %2731 = vrot.lane.b32.xlu2 %v6773_v42, %s3989_s0  ;;  %2791 = vrot.lane.b32.xlu0 %v6785_v33, %s3987_s28 }
 0x874   :  { %2761 = vrot.lane.b32.xlu1 %v6760_v62, %s3988_s29 }
 0x87b   :  { %2759 = vrot.lane.b32.xlu0 %v6785_v33, %s3988_s29  ;;  %2817 = vrot.lane.b32.xlu2 %v6794_v14, %s3990_s4 }
 0x87c   :  { %2729 = vrot.lane.b32.xlu1 %v6760_v62, %s3989_s0 }
 0x883   :  { %2727 = vrot.lane.b32.xlu0 %v6785_v33, %s3989_s0  ;;  %2789 = vrot.lane.b32.xlu2 %v6802_v20, %s3987_s28 }
 0x884   :  { %2701 = vrot.lane.b32.xlu1 %v6762_v35, %s3991_s30 }
 0x88b   :  { %2699 = vrot.lane.b32.xlu0 %v6773_v42, %s3991_s30  ;;  %2757 = vrot.lane.b32.xlu2 %v6802_v20, %s3988_s29 }
 0x88c   :  { %2669 = vrot.lane.b32.xlu1 %v6762_v35, %s3993_s22 }
 0x893   :  { %2667 = vrot.lane.b32.xlu0 %v6773_v42, %s3993_s22  ;;  %2725 = vrot.lane.b32.xlu2 %v6802_v20, %s3989_s0 }
 0x894   :  { %2637 = vrot.lane.b32.xlu1 %v6762_v35, %s3992_s5 }
 0x89b   :  { %2635 = vrot.lane.b32.xlu0 %v6773_v42, %s3992_s5  ;;  %2693 = vrot.lane.b32.xlu2 %v6802_v20, %s3991_s30 }
 0x89c   :  { %2797 = vrot.lane.b32.xlu1 %v6762_v35, %s3987_s28 }
 0x8a3   :  { %2795 = vrot.lane.b32.xlu0 %v6773_v42, %s3987_s28  ;;  %2661 = vrot.lane.b32.xlu2 %v6802_v20, %s3993_s22 }
 0x8a4   :  { %2605 = vrot.lane.b32.xlu1 %v6762_v35, %s3994_s23 }
 0x8ab   :  { %2821 = vrot.lane.b32.xlu0 %v6802_v20, %s3990_s4  ;;  %2629 = vrot.lane.b32.xlu2 %v6802_v20, %s3992_s5 }
 0x8ac   :  { %2823 = vrot.lane.b32.xlu1 %v6785_v33, %s3990_s4 }
 0x8b3   :  { %2785 = vrot.lane.b32.xlu0 %v6794_v14, %s3987_s28  ;;  %2593 = vrot.lane.b32.xlu2 %v6794_v14, %s3994_s23 }
 0x8b4   :  { %2827 = vrot.lane.b32.xlu1 %v6773_v42, %s3990_s4 }
 0x8bb   :  { %2753 = vrot.lane.b32.xlu0 %v6794_v14, %s3988_s29  ;;  %2783 = vrot.lane.b32.xlu2 %v6849_v10, %s3987_s28 }
 0x8bc   :  { %2787 = vrot.lane.b32.xlu1 %v6854_v17, %s3987_s28  ;;  %s3629_s28 = sshll.u32 %s7948_s21, 4  ;;  %s3630_s28 = int_to_ptr.hbm [resolvable:$true] %s3629_s28 }
 0x8bd   :  { %v2830_v54 = vpop.permute.xlu2 %2829 }
 0x8c3   :  { %2721 = vrot.lane.b32.xlu0 %v6794_v14, %s3989_s0  ;;  %2751 = vrot.lane.b32.xlu2 %v6849_v10, %s3988_s29 }
 0x8c4   :  { %2755 = vrot.lane.b32.xlu1 %v6854_v17, %s3988_s29 }
 0x8c5   :  { %v6868_v43 = vpop.permute.xlu2 %2763 }
 0x8cb   :  { %2689 = vrot.lane.b32.xlu0 %v6794_v14, %s3991_s30  ;;  %2815 = vrot.lane.b32.xlu2 %v6849_v10, %s3990_s4 }
 0x8cc   :  { %2695 = vrot.lane.b32.xlu1 %v6785_v33, %s3991_s30 }
 0x8cd   :  { %v6876_v1 = vpop.permute.xlu2 %2731 }
 0x8d3   :  { %2657 = vrot.lane.b32.xlu0 %v6794_v14, %s3993_s22  ;;  %2697 = vrot.lane.b32.xlu2 %v6760_v62, %s3991_s30 }
 0x8d4   :  { %2723 = vrot.lane.b32.xlu1 %v6854_v17, %s3989_s0 }
 0x8d5   :  { %v6884_v50 = vpop.permute.xlu0 %2765  ;;  %v2818_v63 = vpop.permute.xlu2 %2817 }
 0x8d6   :  { %v2826_v16 = vpop.permute.xlu1 %2825  ;;  %v2838_v26 = vsel %vm858_vm8, %v2830_v54, %v2818_v63 }
 0x8d7   :  { %v2832_v27 = vsel %vm858_vm8, %v2826_v16, %v2830_v54  ;;  %v2846_v24 = vmul.f32 %v2838_v26, %v8147_v45  ;;  %v8225_v26 = vld [vmem:[#allocation20_spill] sm:$0xff] }
 0x8d8   :  { %v2845_v39 = vmul.f32 %v2832_v27, %v8146_v59 }
 0x8d9   :  { %3723 = vmatpush.msk.msra.mxu1 %vm648_vm7, %v2846_v24 }
 0x8da   :  { %3721 = vmatpush.msk.msra.mxu0 %vm648_vm7, %v2845_v39 }
 0x8db   :  { %2625 = vrot.lane.b32.xlu0 %v6794_v14, %s3992_s5  ;;  %2719 = vrot.lane.b32.xlu2 %v6849_v10, %s3989_s0 }
 0x8dc   :  { %2691 = vrot.lane.b32.xlu1 %v6854_v17, %s3991_s30 }
 0x8dd   :  { %v6900_v61 = vpop.permute.xlu0 %2733  ;;  %v6902_v8 = vpop.permute.xlu2 %2789 }
 0x8de   :  { %v6904_v47 = vpop.permute.xlu1 %2793 }
 0x8e3   :  { %2597 = vrot.lane.b32.xlu0 %v6802_v20, %s3994_s23  ;;  %2687 = vrot.lane.b32.xlu2 %v6849_v10, %s3991_s30 }
 0x8e4   :  { %2659 = vrot.lane.b32.xlu1 %v6854_v17, %s3993_s22 }
 0x8e5   :  { %v6912_v51 = vpop.permute.xlu0 %2791  ;;  %v6914_v34 = vpop.permute.xlu2 %2757 }
 0x8e6   :  { %v6916_v21 = vpop.permute.xlu1 %2761 }
 0x8eb   :  { %2819 = vrot.lane.b32.xlu0 %v6854_v17, %s3990_s4  ;;  %2655 = vrot.lane.b32.xlu2 %v6849_v10, %s3993_s22 }
 0x8ec   :  { %2627 = vrot.lane.b32.xlu1 %v6854_v17, %s3992_s5 }
 0x8ed   :  { %v6924_v48 = vpop.permute.xlu0 %2759  ;;  %v6926_v9 = vpop.permute.xlu2 %2725 }
 0x8ee   :  { %v6928_v19 = vpop.permute.xlu1 %2729  ;;  %v2767_v39 = vsel %vm802_vm10, %v6924_v48, %v6868_v43 }
 0x8f3   :  { %2603 = vrot.lane.b32.xlu0 %v6773_v42, %s3994_s23  ;;  %2623 = vrot.lane.b32.xlu2 %v6849_v10, %s3992_s5 }
 0x8f4   :  { %2591 = vrot.lane.b32.xlu1 %v6849_v10, %s3994_s23 }
 0x8f5   :  { %v6936_v58 = vpop.permute.xlu0 %2727  ;;  %v6938_v55 = vpop.permute.xlu2 %2693 }
 0x8f6   :  { %v6940_v0 = vpop.permute.xlu1 %2701 }
 0x8fb   :  { %2663 = vrot.lane.b32.xlu0 %v6785_v33, %s3993_s22  ;;  %2595 = vrot.lane.b32.xlu2 %v6854_v17, %s3994_s23 }
 0x8fc   :  { %2665 = vrot.lane.b32.xlu1 %v6760_v62, %s3993_s22 }
 0x8fd   :  { %v6948_v28 = vpop.permute.xlu0 %2699  ;;  %v6950_v56 = vpop.permute.xlu2 %2661 }
 0x8fe   :  { %v6952_v37 = vpop.permute.xlu1 %2669 }
 0x903   :  { %2633 = vrot.lane.b32.xlu0 %v6760_v62, %s3992_s5  ;;  %2631 = vrot.lane.b32.xlu2 %v6785_v33, %s3992_s5 }
 0x904   :  { %2601 = vrot.lane.b32.xlu1 %v6760_v62, %s3994_s23 }
 0x905   :  { %v6960_v30 = vpop.permute.xlu0 %2667  ;;  %v6962_v32 = vpop.permute.xlu2 %2629 }
 0x906   :  { %8221 = vst [vmem:[#allocation21_spill] sm:$0xff] %v6962_v32  ;;  %v6964_v38 = vpop.permute.xlu1 %2637 }
 0x90b   :  { %3071 = vperm.xlu0 %3755, %v3068_v22   ;;  %2599 = vrot.lane.b32.xlu2 %v6785_v33, %s3994_s23 }
 0x90c   :  { %3398 = vperm.xlu1 %3756, %v3384_v4   ;;  %v2768_v4 = vsel %vm802_vm10, %v6916_v21, %v6884_v50 }
 0x90d   :  { %v6974_v11 = vpop.permute.xlu0 %2635  ;;  %v6976_v36 = vpop.permute.xlu2 %2593 }
 0x90e   :  { %8222 = vst [vmem:[#allocation22_spill] sm:$0xff] %v6976_v36  ;;  %v2798_v23 = vpop.permute.xlu1 %2797  ;;  %v2781_v36 = vmul.f32 %v2768_v4, %v8154_v31 }
 0x913   :  { %3406 = vperm.xlu2 %3757, %v3402_v7   ;;  %v2736_v7 = vsel %vm774_vm13, %v6928_v19, %v6900_v61 }
 0x914   :  { %v2749_v17 = vmul.f32 %v2736_v7, %v8162_v29 }
 0x915   :  { %v2796_v44 = vpop.permute.xlu0 %2795  ;;  %v6981_v18 = vpop.permute.xlu2 %2783 }
 0x916   :  { %v6983_v5 = vpop.permute.xlu1 %2605  ;;  %v2799_v24 = vsel %vm830_vm11, %v6912_v51, %v2796_v44  ;;  %v2805_v22 = vsel %vm830_vm11, %v2796_v44, %v6981_v18  ;;  %v2971_v32 = vrot.slane %v2749_v17, 3  ;;  %v2943_v17 = vrot.slane %v6760_v62, 4 }
 0x917   :  { %8223 = vst [vmem:[#allocation23_spill] sm:$0xff] %v6983_v5  ;;  %v2810_v44 = vmul.f32 %v2805_v22, %v8156_v49 }
 0x919   :  { %v3022_v46 = vrot.slane %v2810_v44, 1 }
 0x91d   :  { %v2822_v25 = vpop.permute.xlu0 %2821  ;;  %v6985_v13 = vpop.permute.xlu2 %2751 }
 0x91e   :  { %v6987_v57 = vpop.permute.xlu1 %2823  ;;  %v2834_v15 = vsel %vm858_vm8, %v2822_v25, %v2826_v16  ;;  %v2836_v6 = vsel %vm858_vm8, %v2818_v63, %v2822_v25  ;;  %v2735_v16 = vsel %vm774_vm13, %v6936_v58, %v6876_v1  ;;  %v2800_v63 = vsel %vm830_vm11, %v6904_v47, %v2798_v23 }
 0x91f   :  { %v2843_v54 = vmul.f32 %v2836_v6, %v8224_v60  ;;  %v2844_v27 = vmul.f32 %v2834_v15, %v8225_v26  ;;  %v2809_v25 = vmul.f32 %v2799_v24, %v8155_v40  ;;  %v2777_v15 = vmul.f32 %v2767_v39, %v8154_v31 }
 0x920   :  { %v2745_v6 = vmul.f32 %v2735_v16, %v8162_v29 }
 0x921   :  { %3717 = vmatpush.msk.msrb.mxu2 %vm648_vm7, %v2843_v54  ;;  %3719 = vmatpush.msk.msrb.mxu3 %vm648_vm7, %v2844_v27  ;;  %v2813_v54 = vmul.f32 %v2800_v63, %v8155_v40  ;;  %v3021_v39 = vrot.slane %v2809_v25, 1  ;;  %v2993_v22 = vrot.slane %v2777_v15, 2  ;;  %v2999_v25 = vrot.slane %v2781_v36, 2 }
 0x922   :  { %v2965_v31 = vrot.slane %v2745_v6, 3  ;;  %v2937_v36 = vrot.slane %v6785_v33, 4  ;;  %v8226_v6 = vld [vmem:[#allocation28_spill] sm:$0xff] }
 0x923   :  { %v3027_v7 = vrot.slane %v2813_v54, 1 }
 0x924   :  { %v2944_v62 = vsel %vm332_vm0, %v2937_v36, %v2943_v17  ;;  %v2938_v17 = vrot.slane %v6773_v42, 4 }
 0x925   :  { %v7027_v27 = vpop.permute.xlu0 %2785  ;;  %v7029_v5 = vpop.permute.xlu2 %2815 }
 0x926   :  { %v2828_v10 = vpop.permute.xlu1 %2827  ;;  %v2806_v24 = vsel %vm830_vm11, %v2798_v23, %v7027_v27 }
 0x927   :  { %v2831_v40 = vsel %vm858_vm8, %v6987_v57, %v2828_v10  ;;  %v2814_v16 = vmul.f32 %v2806_v24, %v8156_v49  ;;  %v2837_v63 = vsel %vm858_vm8, %v2828_v10, %v7029_v5  ;;  %v2773_v49 = vsel %vm802_vm10, %v6868_v43, %v6985_v13 }
 0x928   :  { %v2841_v29 = vmul.f32 %v2831_v40, %v8146_v59  ;;  %v2842_v4 = vmul.f32 %v2837_v63, %v8147_v45  ;;  %v3028_v10 = vsel %vm971_vm1, %v3021_v39, %v3027_v7  ;;  %v3000_v59 = vsel %vm984_vm5, %v2993_v22, %v2999_v25 }
 0x929   :  { %v3029_v23 = vrot.slane %v2814_v16, 1  ;;  %v2972_v45 = vsel %vm962_vm9, %v2965_v31, %v2971_v32  ;;  %v2778_v54 = vmul.f32 %v2773_v49, %v8226_v6  ;;  %v3065_v43 = vsel %vm971_vm1, %v3000_v59, %v3021_v39 }
 0x92a   :  { %3135 = vmatpush.msra.mxu0 %v2841_v29  ;;  %3155 = vmatpush.msra.mxu1 %v2842_v4  ;;  %v3061_v63 = vsel %vm984_vm5, %v2972_v45, %v2993_v22  ;;  %v3057_v4 = vsel %vm962_vm9, %v2944_v62, %v2965_v31  ;;  %v8227_v31 = vld [vmem:[#allocation44_spill] sm:$0xff] }
 0x92b   :  { %v3030_v15 = vsel %vm971_vm1, %v3022_v46, %v3029_v23  ;;  %v2994_v39 = vrot.slane %v2778_v54, 2 }
 0x92c   :  { %3136 = vmatpush.msra.mxu0 %v3028_v10  ;;  %3156 = vmatpush.msra.mxu1 %v3030_v15 }
 0x92d   :  { %v7057_v44 = vpop.permute.xlu0 %2753  ;;  %v2698_v24 = vpop.permute.xlu2 %2697 }
 0x92e   :  { %3137 = vmatpush.msra.mxu0 %v3065_v43  ;;  %v2788_v40 = vpop.permute.xlu1 %2787  ;;  %v2774_v16 = vsel %vm802_vm10, %v6884_v50, %v7057_v44  ;;  %v2704_v54 = vsel %vm8228_vm12, %v2698_v24, %v6940_v0  ;;  %vm8232_vm12 = vcmask 1042432  }
 0x92f   :  { %v2782_v32 = vmul.f32 %v2774_v16, %v8226_v6  ;;  %v2945_v6 = vrot.slane %v6762_v35, 4 }
 0x930   :  { %3138 = vmatpush.msra.mxu0 %v3061_v63 }
 0x931   :  { %v3001_v29 = vrot.slane %v2782_v32, 2  ;;  %v2718_v32 = vmul.f32 %v2704_v54, %v8158_v41  ;;  %v2946_v62 = vsel %vm332_vm0, %v2938_v17, %v2945_v6 }
 0x932   :  { %3139 = vmatpush.msra.mxu0 %v3057_v4 }
 0x933   :  { %v3002_v7 = vsel %vm984_vm5, %v2994_v39, %v3001_v29 }
 0x934   :  { %v3066_v23 = vsel %vm971_vm1, %v3002_v7, %v3022_v46 }
 0x935   :  { %v2722_v25 = vpop.permute.xlu0 %2721  ;;  %3157 = vmatpush.msra.mxu1 %v3066_v23  ;;  %v7071_v50 = vpop.permute.xlu2 %2719 }
 0x936   :  { %v2756_v49 = vpop.permute.xlu1 %2755  ;;  %v2742_v22 = vsel %vm774_vm13, %v6900_v61, %v2722_v25  ;;  %v2741_v10 = vsel %vm774_vm13, %v6876_v1, %v7071_v50 }
 0x937   :  { %v2750_v15 = vmul.f32 %v2742_v22, %v8227_v31  ;;  %v2746_v59 = vmul.f32 %v2741_v10, %v8227_v31  ;;  %v2921_v10 = vrot.slane %v2718_v32, 5  ;;  %v2801_v32 = vsel %vm830_vm11, %v2788_v40, %v6912_v51 }
 0x938   :  { %v2804_v51 = vsel %vm830_vm11, %v7027_v27, %v6902_v8 }
 0x939   :  { %v2973_v45 = vrot.slane %v2750_v15, 3  ;;  %v2966_v46 = vrot.slane %v2746_v59, 3 }
 0x93b   :  { %v2974_v61 = vsel %vm962_vm9, %v2966_v46, %v2973_v45  ;;  %v3058_v7 = vsel %vm962_vm9, %v2946_v62, %v2966_v46 }
 0x93c   :  { %v3062_v1 = vsel %vm984_vm5, %v2974_v61, %v2994_v39  ;;  %v2802_v61 = vsel %vm830_vm11, %v6902_v8, %v6904_v47  ;;  %v2771_v47 = vsel %vm802_vm10, %v6985_v13, %v2756_v49  ;;  %v8237_v8 = vld [vmem:[#allocation37_spill] sm:$0xff] }
 0x93d   :  { %v7088_v43 = vpop.permute.xlu0 %2689  ;;  %v7091_v16 = vpop.permute.xlu2 %2687  ;;  %3158 = vmatpush.msra.mxu1 %v3062_v1  ;;  %v7175_v27 = vmul.f32 %v2771_v47, %v8237_v8 }
 0x93e   :  { %v2696_v63 = vpop.permute.xlu1 %2695  ;;  %v2710_v35 = vsel %vm8229_vm4, %v6940_v0, %v7088_v43  ;;  %v2709_v42 = vsel %vm8230_vm14, %v6948_v28, %v7091_v16  ;;  %vm8233_vm4 = vmmov %vm8232_vm12 }
 0x93f   :  { %v2703_v39 = vsel %vm8231_vm3, %v2696_v63, %v6948_v28  ;;  %v2715_v29 = vmul.f32 %v2710_v35, %v8157_v3  ;;  %v7108_v4 = vmul.f32 %v2709_v42, %v8157_v3  ;;  %3159 = vmatpush.msra.mxu1 %v3058_v7  ;;  %vm8234_vm14 = vmmov %vm8231_vm3  ;;  %v2769_v42 = vsel %vm802_vm10, %v2756_v49, %v6924_v48  ;;  %v8236_v48 = vld [vmem:[#allocation24_spill] sm:$0xff] }
 0x940   :  { %v7112_v0 = vmul.f32 %v2703_v39, %v8158_v41  ;;  %v2706_v45 = vsel %vm8234_vm14, %v6938_v55, %v2698_v24  ;;  %v2803_v24 = vsel %vm830_vm11, %v6981_v18, %v2788_v40  ;;  %v2772_v49 = vsel %vm802_vm10, %v7057_v44, %v6914_v34  ;;  %vm8239_vm11 = vmmov %vm8233_vm4 }
 0x941   :  { %v2915_v23 = vrot.slane %v2715_v29, 5  ;;  %v2911_v22 = vrot.slane %v7108_v4, 5  ;;  %v2717_v6 = vmul.f32 %v2706_v45, %v8160_v12  ;;  %v7165_v40 = vmul.f32 %v2803_v24, %v8236_v48  ;;  %v8238_v29 = vld [vmem:[#allocation38_spill] sm:$0xff] }
 0x942   :  { %v2914_v31 = vrot.slane %v7112_v0, 5  ;;  %v7178_v7 = vmul.f32 %v2769_v42, %v8238_v29  ;;  %v2991_v24 = vrot.slane %v7175_v27, 2  ;;  %vm8246_vm14 = vcmp.lt.s32.totalorder %v4771_v2, 16 }
 0x943   :  { %v7119_v28 = vsel %vm8232_vm12, %v2911_v22, %v2915_v23  ;;  %v2919_v39 = vrot.slane %v2717_v6, 5  ;;  %v3019_v6 = vrot.slane %v7165_v40, 1 }
 0x944   :  { %v2922_v3 = vsel %vm8233_vm4, %v2914_v31, %v2921_v10  ;;  %v2811_v10 = vmul.f32 %v2804_v51, %v8236_v48  ;;  %v2992_v42 = vrot.slane %v7178_v7, 2  ;;  %vm8245_vm4 = vmmov %vm8231_vm3 }
 0x945   :  { %v7124_v15 = vpop.permute.xlu0 %2657  ;;  %v3054_v41 = vsel %vm332_vm0, %v2922_v3, %v2938_v17  ;;  %v2656_v1 = vpop.permute.xlu2 %2655 }
 0x946   :  { %v2724_v59 = vpop.permute.xlu1 %2723  ;;  %3160 = vmatpush.msra.mxu1 %v3054_v41  ;;  %v2779_v41 = vmul.f32 %v2772_v49, %v8237_v8 }
 0x94d   :  { %v7130_v46 = vpop.permute.xlu0 %2625  ;;  %v2624_v51 = vpop.permute.xlu2 %2623 }
 0x94e   :  { %v2692_v54 = vpop.permute.xlu1 %2691 }
 0x94f   :  { %v2705_v17 = vsel %vm8231_vm3, %v2692_v54, %v2696_v63  ;;  %v8235_v63 = vld [vmem:[#allocation25_spill] sm:$0xff] }
 0x950   :  { %v7146_v35 = vmul.f32 %v2705_v17, %v8160_v12  ;;  %v2812_v62 = vmul.f32 %v2802_v61, %v8235_v63  ;;  %v2770_v12 = vsel %vm802_vm10, %v6914_v34, %v6916_v21  ;;  %v7168_v13 = vmul.f32 %v2801_v32, %v8235_v63  ;;  %v8240_v17 = vld [vmem:[#allocation26_spill] sm:$0xff]  ;;  %vm8241_vm10 = vmmov %vm8231_vm3 }
 0x951   :  { %v2740_v21 = vsel %vm774_vm13, %v2722_v25, %v6926_v9  ;;  %v2780_v44 = vmul.f32 %v2770_v12, %v8238_v29  ;;  %v2739_v25 = vsel %vm774_vm13, %v7071_v50, %v2724_v59  ;;  %v3023_v50 = vrot.slane %v2811_v10, 1  ;;  %vm8247_vm3 = vmmov %vm8246_vm14 }
 0x952   :  { %v2913_v18 = vrot.slane %v7146_v35, 5  ;;  %v3020_v61 = vrot.slane %v7168_v13, 1  ;;  %v2747_v32 = vmul.f32 %v2740_v21, %v8240_v17  ;;  %v3025_v33 = vrot.slane %v2812_v62, 1 }
 0x953   :  { %v2708_v47 = vsel %vm8241_vm10, %v7088_v43, %v6938_v55  ;;  %v2737_v63 = vsel %vm774_vm13, %v2724_v59, %v6936_v58  ;;  %v7216_v62 = vmul.f32 %v2739_v25, %v8240_v17  ;;  %v2941_v12 = vrot.slane %v6802_v20, 4  ;;  %v8242_v43 = vld [vmem:[#allocation33_spill] sm:$0xff]  ;;  %vm8249_vm10 = vmmov %vm8247_vm3 }
 0x954   :  { %v2920_v23 = vsel %vm8239_vm11, %v2913_v18, %v2919_v39  ;;  %v2997_v39 = vrot.slane %v2780_v44, 2  ;;  %v2967_v40 = vrot.slane %v2747_v32, 3  ;;  %v3024_v13 = vsel %vm971_vm1, %v3019_v6, %v3023_v50 }
 0x955   :  { %v7187_v3 = vpop.permute.xlu0 %2597  ;;  %v3053_v34 = vsel %vm332_vm0, %v2920_v23, %v2937_v36  ;;  %v2738_v36 = vsel %vm774_vm13, %v6926_v9, %v6928_v19  ;;  %v2995_v9 = vrot.slane %v2779_v41, 2  ;;  %v2939_v19 = vrot.slane %v6794_v14, 4 }
 0x956   :  { %v7197_v45 = vpop.permute.xlu1 %2659  ;;  %3140 = vmatpush.msra.mxu0 %v3053_v34  ;;  %v2748_v48 = vmul.f32 %v2738_v36, %v8161_v52  ;;  %v3026_v55 = vsel %vm971_vm1, %v3020_v61, %v3025_v33  ;;  %v7224_v49 = vmul.f32 %v2708_v47, %v8242_v43  ;;  %v7227_v58 = vmul.f32 %v2737_v63, %v8161_v52  ;;  %v8251_v63 = vld [vmem:[#allocation21_spill] sm:$0xff] }
 0x957   :  { %v2998_v59 = vsel %vm984_vm5, %v2992_v42, %v2997_v39  ;;  %v2996_v8 = vsel %vm984_vm5, %v2991_v24, %v2995_v9  ;;  %v2963_v29 = vrot.slane %v7216_v62, 3  ;;  %vm8243_vm13 = vcmp.lt.s32.totalorder %v4771_v2, 15  ;;  %v8253_v62 = vld [vmem:[#allocation32_spill] sm:$0xff] }
 0x958   :  { %v2678_v21 = vsel %vm8243_vm13, %v6952_v37, %v7124_v15  ;;  %vm8244_vm12 = vmmov %vm8243_vm13  ;;  %v2707_v23 = vsel %vm8245_vm4, %v7091_v16, %v2692_v54  ;;  %v2646_v34 = vsel %vm8246_vm14, %v6964_v38, %v7130_v46  ;;  %v2645_v44 = vsel %vm8247_vm3, %v6974_v11, %v2624_v51  ;;  %v8254_v39 = vld [vmem:[#allocation36_spill] sm:$0xff] }
 0x959   :  { %v2677_v52 = vsel %vm8244_vm12, %v6960_v30, %v2656_v1  ;;  %vm8248_vm11 = vmmov %vm8244_vm12  ;;  %v2964_v36 = vrot.slane %v7227_v58, 3  ;;  %v7276_v50 = vmul.f32 %v2707_v23, %v8242_v43  ;;  %v3063_v58 = vsel %vm971_vm1, %v2996_v8, %v3019_v6 }
 0x95a   :  { %v2675_v54 = vsel %vm8248_vm11, %v2656_v1, %v7197_v45  ;;  %vm8250_vm13 = vmmov %vm8248_vm11  ;;  %v2969_v1 = vrot.slane %v2748_v48, 3  ;;  %v7279_v47 = vmul.f32 %v2677_v52, %v8193_v53  ;;  %v8255_v48 = vld [vmem:[#allocation35_spill] sm:$0xff]  ;;  %v8257_v52 = vld [vmem:[#allocation30_spill] sm:$0xff]  ;;  %vm8261_vm12 = vcmp.lt.s32.totalorder %v4771_v2, 17 }
 0x95b   :  { %v2680_v9 = vmul.f32 %v2675_v54, %v8254_v39  ;;  %v2936_v23 = vrot.slane %v8257_v52, 4  ;;  %v8270_v52 = vld [vmem:[#allocation45_spill] sm:$0xff] }
 0x95d   :  { %v2820_v10 = vpop.permute.xlu0 %2819  ;;  %v2884_v54 = vrot.slane %v2680_v9, 6  ;;  %v2942_v27 = vsel %vm332_vm0, %v2936_v23, %v2941_v12 }
 0x95e   :  { %v7253_v41 = vpop.permute.xlu1 %2627  ;;  %v2833_v25 = vsel %vm858_vm8, %v2820_v10, %v6987_v57  ;;  %v2835_v16 = vsel %vm858_vm8, %v7029_v5, %v2820_v10  ;;  %v2676_v57 = vsel %vm8250_vm13, %v7124_v15, %v6950_v56  ;;  %v2683_v5 = vmul.f32 %v2678_v21, %v8193_v53  ;;  %vm8252_vm8 = vmmov %vm8247_vm3  ;;  %v7294_v53 = vpop.permute.xlu2 %2595  ;;  %v8256_v21 = vld [vmem:[#allocation29_spill] sm:$0xff] }
 0x95f   :  { %v2643_v17 = vsel %vm8249_vm10, %v2624_v51, %v7253_v41  ;;  %v2839_v32 = vmul.f32 %v2835_v16, %v8224_v60  ;;  %v2840_v33 = vmul.f32 %v2833_v25, %v8225_v26  ;;  %v2644_v60 = vsel %vm8252_vm8, %v7130_v46, %v8251_v63  ;;  %vm8269_vm10 = vmmov %vm8248_vm11 }
 0x960   :  { %v2968_v26 = vsel %vm962_vm9, %v2963_v29, %v2967_v40  ;;  %v2651_v15 = vmul.f32 %v2646_v34, %v8253_v62  ;;  %v7288_v51 = vmul.f32 %v2645_v44, %v8253_v62  ;;  %v7292_v43 = vmul.f32 %v2643_v17, %v8255_v48  ;;  %vm8272_vm13 = vmmov %vm8269_vm10 }
 0x961   :  { %3095 = vmatpush.msrb.mxu2 %v2839_v32  ;;  %3115 = vmatpush.msrb.mxu3 %v2840_v33  ;;  %v3064_v46 = vsel %vm971_vm1, %v2998_v59, %v3020_v61  ;;  %v2935_v40 = vrot.slane %v8256_v21, 4  ;;  %v2684_v10 = vmul.f32 %v2676_v57, %v8254_v39  ;;  %v2912_v34 = vrot.slane %v7276_v50, 5  ;;  %vm8273_vm8 = vmmov %vm8269_vm10 }
 0x962   :  { %v2652_v44 = vmul.f32 %v2644_v60, %v8255_v48  ;;  %v2970_v25 = vsel %vm962_vm9, %v2964_v36, %v2969_v1  ;;  %v2917_v16 = vrot.slane %v7224_v49, 5  ;;  %v3059_v6 = vsel %vm984_vm5, %v2968_v26, %v2991_v24  ;;  %v8259_v1 = vld [vmem:[#allocation22_spill] sm:$0xff]  ;;  %v8263_v26 = vld [vmem:[#allocation39_spill] sm:$0xff] }
 0x963   :  { %3096 = vmatpush.msrb.mxu2 %v3024_v13  ;;  %3116 = vmatpush.msrb.mxu3 %v3026_v55  ;;  %v2887_v13 = vrot.slane %v2683_v5, 6  ;;  %v2883_v55 = vrot.slane %v7279_v47, 6  ;;  %v2859_v59 = vrot.slane %v2651_v15, 7  ;;  %v2855_v8 = vrot.slane %v7288_v51, 7  ;;  %v8260_v47 = vld [vmem:[#allocation23_spill] sm:$0xff]  ;;  %v8265_v15 = vld [vmem:[#allocation40_spill] sm:$0xff] }
 0x964   :  { %v2856_v17 = vrot.slane %v7292_v43, 7  ;;  %v3060_v49 = vsel %vm984_vm5, %v2970_v25, %v2992_v42  ;;  %v2940_v33 = vsel %vm332_vm0, %v2935_v40, %v2939_v19  ;;  %v2889_v24 = vrot.slane %v2684_v10, 6  ;;  %vm8262_vm5 = vmmov %vm8261_vm12  ;;  %v8271_v10 = vld [vmem:[#allocation46_spill] sm:$0xff] }
 0x965   :  { %v7306_v61 = vpop.permute.xlu0 %2603  ;;  %3117 = vmatpush.msrb.mxu3 %v3064_v46  ;;  %3097 = vmatpush.msrb.mxu2 %v3063_v58  ;;  %v2861_v57 = vrot.slane %v2652_v44, 7  ;;  %v3055_v5 = vsel %vm962_vm9, %v2940_v33, %v2963_v29  ;;  %vm8258_vm1 = vcmask 1042432   ;;  %v2614_v7 = vsel %vm8261_vm12, %v8260_v47, %v8259_v1  ;;  %vm8267_vm14 = vmmov %vm8262_vm5 }
 0x966   :  { %v2592_v32 = vpop.permute.xlu1 %2591  ;;  %v2918_v50 = vsel %vm8258_vm1, %v2912_v34, %v2917_v16  ;;  %v3056_v14 = vsel %vm962_vm9, %v2942_v27, %v2964_v36  ;;  %v3051_v20 = vsel %vm332_vm0, %v7119_v28, %v2935_v40  ;;  %v2888_v42 = vsel %vm420_vm2, %v2883_v55, %v2887_v13  ;;  %vm8264_vm9 = vmmov %vm8258_vm1  ;;  %v2632_v39 = vpop.permute.xlu2 %2631 }
 0x967   :  { %3098 = vmatpush.msrb.mxu2 %v3059_v6  ;;  %3118 = vmatpush.msrb.mxu3 %v3060_v49  ;;  %v2612_v19 = vsel %vm8262_vm5, %v8259_v1, %v7187_v3  ;;  %v2890_v12 = vsel %vm420_vm2, %v2884_v54, %v2889_v24  ;;  %v2860_v29 = vsel %vm648_vm7, %v2855_v8, %v2859_v59  ;;  %vm8266_vm4 = vmmov %vm8258_vm1  ;;  %vm8274_vm1 = vcmp.lt.s32.totalorder %v4771_v2, 16  ;;  %v8276_v49 = vld [vmem:[#allocation47_spill] sm:$0xff]  ;;  %v8277_v24 = vld [vmem:[#allocation48_spill] sm:$0xff] }
 0x968   :  { %v2862_v60 = vsel %vm648_vm7, %v2856_v17, %v2861_v57  ;;  %v3052_v36 = vsel %vm332_vm0, %v2918_v50, %v2936_v23  ;;  %v2619_v62 = vmul.f32 %v2614_v7, %v8263_v26  ;;  %v3047_v28 = vsel %vm8264_vm9, %v2888_v42, %v2911_v22  ;;  %vm8268_vm3 = vmmov %vm8262_vm5  ;;  %v7408_v1 = vld [vmem:[%s8068_s26 + $0x78] sm:$0xff]  ;;  %v7478_v2 = vld [vmem:[%s8068_s26 + $0xe0] sm:$0xff] }
 0x969   :  { %3099 = vmatpush.msrb.mxu2 %v3055_v5  ;;  %3119 = vmatpush.msrb.mxu3 %v3056_v14  ;;  %v2620_v51 = vmul.f32 %v2612_v19, %v8265_v15  ;;  %v3048_v48 = vsel %vm8266_vm4, %v2890_v12, %v2912_v34  ;;  %v3043_v43 = vsel %vm420_vm2, %v2860_v29, %v2883_v55  ;;  %vm8275_vm12 = vmmov %vm8274_vm1 }
 0x96a   :  { %v3044_v46 = vsel %vm420_vm2, %v2862_v60, %v2884_v54  ;;  %v2611_v58 = vsel %vm8267_vm14, %v2592_v32, %v7294_v53  ;;  %v2613_v4 = vsel %vm8268_vm3, %v7306_v61, %v2592_v32  ;;  %v3039_v13 = vsel %vm648_vm7, %v2619_v62, %v2855_v8  ;;  %vm8278_vm5 = vmmov %vm8266_vm4  ;;  %v8283_v60 = vld [vmem:[#allocation49_spill] sm:$0xff] }
 0x96b   :  { %3100 = vmatpush.msrb.mxu2 %v3051_v20  ;;  %3120 = vmatpush.msrb.mxu3 %v3052_v36  ;;  %v2615_v55 = vmul.f32 %v2613_v4, %v8263_v26  ;;  %v2639_v59 = vsel %vm8275_vm12, %v2632_v39, %v6974_v11  ;;  %v2616_v8 = vmul.f32 %v2611_v58, %v8265_v15  ;;  %vm8279_vm9 = vmmov %vm8266_vm4  ;;  %v8284_v26 = vld [vmem:[#allocation50_spill] sm:$0xff]  ;;  %v7470_v58 = vld [vmem:[%s8068_s26 + $0x60] sm:$0xff] }
 0x96c   :  { %v2650_v57 = vmul.f32 %v2639_v59, %v8277_v24  ;;  %vm8280_vm4 = vmmov %vm8274_vm1  ;;  %v7592_v59 = vld [vmem:[%s8068_s26 + $0xb8] sm:$0xff] }
 0x96d   :  { %v2664_v9 = vpop.permute.xlu0 %2663  ;;  %3101 = vmatpush.msrb.mxu2 %v3047_v28  ;;  %3121 = vmatpush.msrb.mxu3 %v3048_v48  ;;  %vm8281_vm14 = vmmov %vm8274_vm1  ;;  %v7448_v28 = vld [vmem:[%s8068_s26 + $0x68] sm:$0xff] }
 0x96e   :  { %v2671_v22 = vsel %vm8248_vm11, %v2664_v9, %v6960_v30  ;;  %v2673_v21 = vsel %vm8269_vm10, %v7197_v45, %v2664_v9  ;;  %v2666_v40 = vpop.permute.xlu1 %2665  ;;  %v2641_v45 = vsel %vm8274_vm1, %v7253_v41, %v2632_v39  ;;  %v7385_v41 = vld [vmem:[%s7944_s17] sm:$0xf]  ;;  %vm8282_vm11 = vmmov %vm8268_vm3  ;;  %v2600_v19 = vpop.permute.xlu2 %2599  ;;  %v7456_v39 = vld [vmem:[%s8068_s26 + $0xe8] sm:$0xff] }
 0x96f   :  { %v7361_v23 = vmul.f32 %v2673_v21, %v8270_v52  ;;  %v7364_v34 = vmul.f32 %v2671_v22, %v8271_v10  ;;  %v2672_v44 = vsel %vm8272_vm13, %v2666_v40, %v6952_v37  ;;  %v2674_v30 = vsel %vm8273_vm8, %v6950_v56, %v2666_v40  ;;  %3102 = vmatpush.msrb.mxu2 %v3043_v43  ;;  %vm8285_vm10 = vmmov %vm8268_vm3  ;;  %v7492_v40 = vld [vmem:[%s8068_s26 + $0xd8] sm:$0xff] }
 0x970   :  { %v2685_v25 = vmul.f32 %v2674_v30, %v8270_v52  ;;  %v2686_v16 = vmul.f32 %v2672_v44, %v8271_v10  ;;  %3122 = vmatpush.msrb.mxu3 %v3044_v46  ;;  %v3040_v56 = vsel %vm648_vm7, %v2620_v51, %v2856_v17  ;;  %v2649_v33 = vmul.f32 %v2641_v45, %v8276_v49  ;;  %vm8286_vm13 = vmmov %vm8268_vm3  ;;  %v7498_v52 = vld [vmem:[%s8068_s26 + $0x50] sm:$0xff]  ;;  %v7514_v10 = vld [vmem:[%s8068_s26 + $0x1f8] sm:$0xff] }
 0x971   :  { %v2885_v37 = vrot.slane %v7361_v23, 6  ;;  %v2886_v6 = vrot.slane %v7364_v34, 6  ;;  %3103 = vmatpush.msrb.mxu2 %v3039_v13  ;;  %v2607_v9 = vsel %vm8285_vm10, %v2600_v19, %v7306_v61  ;;  %v2609_v48 = vsel %vm8286_vm13, %v7294_v53, %v2600_v19  ;;  %v7484_v53 = vld [vmem:[%s8068_s26 + $0x58] sm:$0xff]  ;;  %v7520_v34 = vld [vmem:[%s8068_s26 + $0xd0] sm:$0xff]  ;;  %v7526_v44 = vld [vmem:[%s8068_s26 + $0x48] sm:$0xff] }
 0x972   :  { %v2891_v54 = vrot.slane %v2685_v25, 6  ;;  %v2893_v32 = vrot.slane %v2686_v16, 6  ;;  %3123 = vmatpush.msrb.mxu3 %v3040_v56  ;;  %v2857_v42 = vrot.slane %v2649_v33, 7  ;;  %v2617_v22 = vmul.f32 %v2609_v48, %v8283_v60  ;;  %v7508_v23 = vld [vmem:[%s8068_s26 + $0x178] sm:$0xff]  ;;  %v7532_v30 = vld [vmem:[%s8068_s26 + $0x170] sm:$0xff]  ;;  %v7544_v25 = vld [vmem:[%s8068_s26 + $0xc8] sm:$0xff] }
 0x973   :  { %3104 = vmatpush.msrb.mxu2 %v2615_v55  ;;  %v2618_v21 = vmul.f32 %v2607_v9, %v8284_v26  ;;  %v7538_v45 = vld [vmem:[%s8068_s26 + $0x1f0] sm:$0xff]  ;;  %v7550_v16 = vld [vmem:[%s8068_s26 + $0x40] sm:$0xff]  ;;  %v7556_v13 = vld [vmem:[%s8068_s26 + $0x168] sm:$0xff] }
 0x974   :  { %3124 = vmatpush.msrb.mxu3 %v2616_v8  ;;  %3718 = vmatmul.msk.f32.vlgmr.msrb.gmra.mxu2 %vm2040_vm15, %v7385_v41  ;;  %v2892_v17 = vsel %vm420_vm2, %v2885_v37, %v2891_v54  ;;  %v2894_v27 = vsel %vm420_vm2, %v2886_v6, %v2893_v32  ;;  %v7562_v55 = vld [vmem:[%s8068_s26 + $0x1e8] sm:$0xff]  ;;  %v7580_v56 = vld [vmem:[%s8068_s26 + $0x160] sm:$0xff]  ;;  %v7598_v8 = vld [vmem:[%s8068_s26 + $0x30] sm:$0xff] }
 0x975   :  { %3720 = vmatmul.msk.f32.vlgmr.msrb.gmra.mxu3 %vm2040_vm15, %v7385_v41  ;;  %v2634_v11 = vpop.permute.xlu0 %2633  ;;  %v3049_v5 = vsel %vm8278_vm5, %v2892_v17, %v2913_v18  ;;  %v3050_v50 = vsel %vm8279_vm9, %v2894_v27, %v2914_v31  ;;  %3169 = vmatpush.msra.mxu2 %v7408_v1  ;;  %v7604_v54 = vld [vmem:[%s8068_s26 + $0x158] sm:$0xff]  ;;  %v7622_v33 = vld [vmem:[%s8068_s26 + $0x28] sm:$0xff]  ;;  %v7628_v17 = vld [vmem:[%s8068_s26 + $0x150] sm:$0xff] }
 0x976   :  { %v2640_v7 = vsel %vm8280_vm4, %v2634_v11, %v6964_v38  ;;  %v2642_v35 = vsel %vm8281_vm14, %v8251_v63, %v2634_v11  ;;  %v2602_v18 = vpop.permute.xlu1 %2601  ;;  %3141 = vmatpush.msra.mxu0 %v3049_v5  ;;  %3161 = vmatpush.msra.mxu1 %v3050_v50  ;;  %v7428_v38 = vld [vmem:[%s8068_s26 + $0xf8] sm:$0xff]  ;;  %v7434_v63 = vld [vmem:[%s8068_s26 + $0x70] sm:$0xff]  ;;  %v7652_v11 = vld [vmem:[%s8068_s26 + $0x148] sm:$0xff] }
 0x977   :  { %v2653_v0 = vmul.f32 %v2642_v35, %v8276_v49  ;;  %v2654_v31 = vmul.f32 %v2640_v7, %v8277_v24  ;;  %v2608_v14 = vsel %vm8268_vm3, %v2602_v18, %v8260_v47  ;;  %v2610_v20 = vsel %vm8282_vm11, %v7187_v3, %v2602_v18  ;;  %3189 = vmatpush.msra.mxu3 %v7428_v38  ;;  %v7440_v3 = vld [vmem:[%s8068_s26 + $0xf0] sm:$0xff]  ;;  %v7610_v32 = vld [vmem:[%s8068_s26 + $0x1d8] sm:$0xff]  ;;  %v7640_v24 = vld [vmem:[%s8068_s26 + $0xa8] sm:$0xff] }
 0x978   :  { %3170 = vmatpush.msra.mxu2 %v7434_v63  ;;  %v2858_v47 = vrot.slane %v2650_v57, 7  ;;  %v2621_v36 = vmul.f32 %v2610_v20, %v8283_v60  ;;  %v2622_v62 = vmul.f32 %v2608_v14, %v8284_v26  ;;  %v7616_v49 = vld [vmem:[%s8068_s26 + $0xb0] sm:$0xff]  ;;  %v7646_v57 = vld [vmem:[%s8068_s26 + $0x20] sm:$0xff]  ;;  %v7658_v5 = vld [vmem:[%s8068_s26 + $0x1c8] sm:$0xff] }
 0x979   :  { %v2863_v12 = vrot.slane %v2653_v0, 7  ;;  %v2865_v29 = vrot.slane %v2654_v31, 7  ;;  %3190 = vmatpush.msra.mxu3 %v7440_v3  ;;  %v7634_v27 = vld [vmem:[%s8068_s26 + $0x1d0] sm:$0xff]  ;;  %v7664_v50 = vld [vmem:[%s8068_s26 + $0xa0] sm:$0xff]  ;;  %v7670_v7 = vld [vmem:[%s8068_s26 + $0x18] sm:$0xff] }
 0x97a   :  { %3171 = vmatpush.msra.mxu2 %v7448_v28  ;;  %v3041_v4 = vsel %vm648_vm7, %v2621_v36, %v2857_v42  ;;  %v3042_v61 = vsel %vm648_vm7, %v2622_v62, %v2858_v47  ;;  %v7676_v35 = vld [vmem:[%s8068_s26 + $0x140] sm:$0xff]  ;;  %v7688_v0 = vld [vmem:[%s8068_s26 + $0x98] sm:$0xff]  ;;  %v7694_v31 = vld [vmem:[%s8068_s26 + $0x10] sm:$0xff] }
 0x97b   :  { %v2864_v15 = vsel %vm648_vm7, %v2857_v42, %v2863_v12  ;;  %v2866_v51 = vsel %vm648_vm7, %v2858_v47, %v2865_v29  ;;  %3191 = vmatpush.msra.mxu3 %v7456_v39  ;;  %v7682_v18 = vld [vmem:[%s8068_s26 + $0x1c0] sm:$0xff]  ;;  %v7700_v14 = vld [vmem:[%s8068_s26 + $0x138] sm:$0xff]  ;;  %v7712_v42 = vld [vmem:[%s8068_s26 + $0x90] sm:$0xff]  ;;  %vm8290_vm7 = vcmask 31744  }
 0x97c   :  { %v3045_v43 = vsel %vm420_vm2, %v2864_v15, %v2885_v37  ;;  %v3046_v46 = vsel %vm420_vm2, %v2866_v51, %v2886_v6  ;;  %3172 = vmatpush.msra.mxu2 %v7470_v58  ;;  %v7568_v37 = vld [vmem:[%s8068_s26 + $0xc0] sm:$0xff]  ;;  %v7574_v6 = vld [vmem:[%s8068_s26 + $0x38] sm:$0xff]  ;;  %v7718_v47 = vld [vmem:[%s8068_s26 + $0x8] sm:$0xff] }
 0x97d   :  { %3142 = vmatpush.msra.mxu0 %v3045_v43  ;;  %3162 = vmatpush.msra.mxu1 %v3046_v46  ;;  %v7706_v20 = vld [vmem:[%s8068_s26 + $0x1b8] sm:$0xff]  ;;  %v7724_v19 = vld [vmem:[%s8068_s26 + $0x130] sm:$0xff]  ;;  %v7736_v29 = vld [vmem:[%s8068_s26 + $0x88] sm:$0xff]  ;;  %v3072_v43 = vpop.permute.xlu0 %3071 }
 0x97e   :  { %3192 = vmatpush.msra.mxu3 %v7478_v2  ;;  %3173 = vmatpush.msra.mxu2 %v7484_v53  ;;  %v7730_v12 = vld [vmem:[%s8068_s26 + $0x1b0] sm:$0xff]  ;;  %v7742_v60 = vld [vmem:[%s8068_s26] sm:$0xff]  ;;  %v7748_v36 = vld [vmem:[%s8068_s26 + $0x128] sm:$0xff] }
 0x97f   :  { %3143 = vmatpush.msra.mxu0 %v3041_v4  ;;  %3163 = vmatpush.msra.mxu1 %v3042_v61  ;;  %v7754_v26 = vld [vmem:[%s8068_s26 + $0x1a8] sm:$0xff]  ;;  %v7760_v62 = vld [vmem:[%s8068_s26 + $0x80] sm:$0xff]  ;;  %v7787_v9 = vld [vmem:[%s8068_s26 + $0x198] sm:$0xff] }
 0x980   :  { %3193 = vmatpush.msra.mxu3 %v7492_v40  ;;  %3174 = vmatpush.msra.mxu2 %v7498_v52  ;;  %v7767_v15 = vld [vmem:[%s8068_s26 + $0x120] sm:$0xff] }
 0x981   :  { %3144 = vmatpush.msra.mxu0 %v2617_v22  ;;  %3164 = vmatpush.msra.mxu1 %v2618_v21  ;;  %v7773_v51 = vld [vmem:[%s8068_s26 + $0x1a0] sm:$0xff] }
 0x982   :  { %3722 = vmatmul.msk.f32.vlgmr.msra.gmra.mxu0 %vm2040_vm15, %v7385_v41  ;;  %3724 = vmatmul.msk.f32.vlgmr.msra.gmra.mxu1 %vm2040_vm15, %v7385_v41  ;;  %v7586_v41 = vld [vmem:[%s8068_s26 + $0x1e0] sm:$0xff]  ;;  %vm8291_vm15 = vmmov %vm8290_vm7 }
 0x983   :  { %3209 = vmatpush.msrb.mxu0 %v7508_v23  ;;  %3229 = vmatpush.msrb.mxu1 %v7514_v10  ;;  %v3958_v48 = vld [vmem:[%s8068_s26 + $0x180] sm:$0xff] }
 0x984   :  { %3194 = vmatpush.msra.mxu3 %v7520_v34  ;;  %3175 = vmatpush.msra.mxu2 %v7526_v44 }
 0x985   :  { %3210 = vmatpush.msrb.mxu0 %v7532_v30  ;;  %3230 = vmatpush.msrb.mxu1 %v7538_v45 }
 0x986   :  { %3195 = vmatpush.msra.mxu3 %v7544_v25  ;;  %3176 = vmatpush.msra.mxu2 %v7550_v16 }
 0x987   :  { %3211 = vmatpush.msrb.mxu0 %v7556_v13  ;;  %3231 = vmatpush.msrb.mxu1 %v7562_v55 }
 0x988   :  { %3196 = vmatpush.msra.mxu3 %v7568_v37  ;;  %3177 = vmatpush.msra.mxu2 %v7574_v6 }
 0x989   :  { %3212 = vmatpush.msrb.mxu0 %v7580_v56  ;;  %3232 = vmatpush.msrb.mxu1 %v7586_v41 }
 0x98a   :  { %3197 = vmatpush.msra.mxu3 %v7592_v59  ;;  %3178 = vmatpush.msra.mxu2 %v7598_v8 }
 0x98b   :  { %3213 = vmatpush.msrb.mxu0 %v7604_v54  ;;  %3233 = vmatpush.msrb.mxu1 %v7610_v32 }
 0x98c   :  { %3198 = vmatpush.msra.mxu3 %v7616_v49  ;;  %3179 = vmatpush.msra.mxu2 %v7622_v33 }
 0x98d   :  { %3214 = vmatpush.msrb.mxu0 %v7628_v17  ;;  %3234 = vmatpush.msrb.mxu1 %v7634_v27 }
 0x98e   :  { %3199 = vmatpush.msra.mxu3 %v7640_v24  ;;  %3180 = vmatpush.msra.mxu2 %v7646_v57 }
 0x98f   :  { %3215 = vmatpush.msrb.mxu0 %v7652_v11  ;;  %3235 = vmatpush.msrb.mxu1 %v7658_v5 }
 0x990   :  { %3200 = vmatpush.msra.mxu3 %v7664_v50  ;;  %3181 = vmatpush.msra.mxu2 %v7670_v7 }
 0x991   :  { %3216 = vmatpush.msrb.mxu0 %v7676_v35  ;;  %3236 = vmatpush.msrb.mxu1 %v7682_v18 }
 0x992   :  { %3201 = vmatpush.msra.mxu3 %v7688_v0  ;;  %3182 = vmatpush.msra.mxu2 %v7694_v31 }
 0x993   :  { %3217 = vmatpush.msrb.mxu0 %v7700_v14  ;;  %3237 = vmatpush.msrb.mxu1 %v7706_v20 }
 0x994   :  { %3202 = vmatpush.msra.mxu3 %v7712_v42  ;;  %3183 = vmatpush.msra.mxu2 %v7718_v47 }
 0x995   :  { %3218 = vmatpush.msrb.mxu0 %v7724_v19  ;;  %3238 = vmatpush.msrb.mxu1 %v7730_v12 }
 0x996   :  { %3203 = vmatpush.msra.mxu3 %v7736_v29  ;;  %3184 = vmatpush.msra.mxu2 %v7742_v60 }
 0x997   :  { %3219 = vmatpush.msrb.mxu0 %v7748_v36  ;;  %3239 = vmatpush.msrb.mxu1 %v7754_v26 }
 0x998   :  { %3204 = vmatpush.msra.mxu3 %v7760_v62  ;;  %3253 = vmatpush.msrb.mxu2 %v7408_v1  ;;  %v7781_v1 = vld [vmem:[%s8068_s26 + $0x118] sm:$0xff] }
 0x999   :  { %3220 = vmatpush.msrb.mxu0 %v7767_v15  ;;  %3240 = vmatpush.msrb.mxu1 %v7773_v51 }
 0x99a   :  { %3273 = vmatpush.msrb.mxu3 %v7428_v38  ;;  %3254 = vmatpush.msrb.mxu2 %v7434_v63  ;;  %v7795_v38 = vld [vmem:[%s8068_s26 + $0x110] sm:$0xff] }
 0x99b   :  { %3221 = vmatpush.msrb.mxu0 %v7781_v1  ;;  %3241 = vmatpush.msrb.mxu1 %v7787_v9  ;;  %v7801_v63 = vld [vmem:[%s8068_s26 + $0x190] sm:$0xff] }
 0x99c   :  { %3274 = vmatpush.msrb.mxu3 %v7440_v3  ;;  %3255 = vmatpush.msrb.mxu2 %v7448_v28  ;;  %v3955_v3 = vld [vmem:[%s8068_s26 + $0x108] sm:$0xff] }
 0x99d   :  { %3222 = vmatpush.msrb.mxu0 %v7795_v38  ;;  %3242 = vmatpush.msrb.mxu1 %v7801_v63  ;;  %v3956_v28 = vld [vmem:[%s8068_s26 + $0x188] sm:$0xff] }
 0x99e   :  { %3275 = vmatpush.msrb.mxu3 %v7456_v39  ;;  %3256 = vmatpush.msrb.mxu2 %v7470_v58  ;;  %v3957_v39 = vld [vmem:[%s8068_s26 + $0x100] sm:$0xff] }
 0x99f   :  { %3223 = vmatpush.msrb.mxu0 %v3955_v3  ;;  %3243 = vmatpush.msrb.mxu1 %v3956_v28 }
 0x9a0   :  { %3276 = vmatpush.msrb.mxu3 %v7478_v2  ;;  %3257 = vmatpush.msrb.mxu2 %v7484_v53 }
 0x9a1   :  { %3224 = vmatpush.msrb.mxu0 %v3957_v39  ;;  %3244 = vmatpush.msrb.mxu1 %v3958_v48 }
 0x9a2   :  { %3277 = vmatpush.msrb.mxu3 %v7492_v40  ;;  %3258 = vmatpush.msrb.mxu2 %v7498_v52 }
 0x9a3   :  { %3293 = vmatpush.msra.mxu0 %v7508_v23  ;;  %3313 = vmatpush.msra.mxu1 %v7514_v10  ;;  %v8287_v23 = vld [vmem:[#allocation17_spill] sm:$0xff]  ;;  %v8288_v10 = vld [vmem:[#allocation18_spill] sm:$0xff] }
 0x9a4   :  { %3278 = vmatpush.msrb.mxu3 %v7520_v34  ;;  %3259 = vmatpush.msrb.mxu2 %v7526_v44 }
 0x9a5   :  { %3294 = vmatpush.msra.mxu0 %v7532_v30  ;;  %3314 = vmatpush.msra.mxu1 %v7538_v45  ;;  %v3511_v30 = vld.sshfl [vmem:[#allocation1] sm:$0xff pattern:$0x73625140]  ;;  %v3512_v45 = vld.sshfl [vmem:[#allocation1 + $0x8] sm:$0xff pattern:$0x73625140] }
 0x9a6   :  { %3279 = vmatpush.msrb.mxu3 %v7544_v25  ;;  %3260 = vmatpush.msrb.mxu2 %v7550_v16 }
 0x9a7   :  { %3295 = vmatpush.msra.mxu0 %v7556_v13  ;;  %3315 = vmatpush.msra.mxu1 %v7562_v55 }
 0x9a8   :  { %3280 = vmatpush.msrb.mxu3 %v7568_v37  ;;  %3261 = vmatpush.msrb.mxu2 %v7574_v6 }
 0x9a9   :  { %3296 = vmatpush.msra.mxu0 %v7580_v56  ;;  %3316 = vmatpush.msra.mxu1 %v7586_v41 }
 0x9aa   :  { %3281 = vmatpush.msrb.mxu3 %v7592_v59  ;;  %3262 = vmatpush.msrb.mxu2 %v7598_v8  ;;  %v8289_v8 = vld [vmem:[#allocation15_spill] sm:$0xff] }
 0x9ab   :  { %3297 = vmatpush.msra.mxu0 %v7604_v54  ;;  %3317 = vmatpush.msra.mxu1 %v7610_v32  ;;  %v3959_v32 = vld [vmem:[%s8085_s1] sm:$0xf]  ;;  %s3995_s1 = smov [#allocation3]  }
 0x9ac   :  { %3282 = vmatpush.msrb.mxu3 %v7616_v49  ;;  %3263 = vmatpush.msrb.mxu2 %v7622_v33  ;;  %v3513_v49 = vld.sshfl [vmem:[#allocation1 + $0x10] sm:$0xff pattern:$0x73625140]  ;;  %s3627_s11 = sshll.u32 %s3995_s1, 4  ;;  %s3628_s11 = int_to_ptr.vmem [resolvable:$true] %s3627_s11 }
 0x9ad   :  { %3298 = vmatpush.msra.mxu0 %v7628_v17  ;;  %3318 = vmatpush.msra.mxu1 %v7634_v27 }
 0x9ae   :  { %3283 = vmatpush.msrb.mxu3 %v7640_v24  ;;  %3264 = vmatpush.msrb.mxu2 %v7646_v57  ;;  %v8292_v57 = vld [vmem:[#allocation16_spill] sm:$0xff] }
 0x9af   :  { %3299 = vmatpush.msra.mxu0 %v7652_v11  ;;  %3319 = vmatpush.msra.mxu1 %v7658_v5  ;;  %v3514_v11 = vld.sshfl [vmem:[#allocation1 + $0x18] sm:$0xff pattern:$0x73625140] }
 0x9b0   :  { %3284 = vmatpush.msrb.mxu3 %v7664_v50  ;;  %3265 = vmatpush.msrb.mxu2 %v7670_v7 }
 0x9b1   :  { %3300 = vmatpush.msra.mxu0 %v7676_v35  ;;  %3320 = vmatpush.msra.mxu1 %v7682_v18 }
 0x9b2   :  { %3285 = vmatpush.msrb.mxu3 %v7688_v0  ;;  %3266 = vmatpush.msrb.mxu2 %v7694_v31 }
 0x9b3   :  { %3301 = vmatpush.msra.mxu0 %v7700_v14  ;;  %3321 = vmatpush.msra.mxu1 %v7706_v20 }
 0x9b4   :  { %3286 = vmatpush.msrb.mxu3 %v7712_v42  ;;  %3267 = vmatpush.msrb.mxu2 %v7718_v47 }
 0x9b5   :  { %3302 = vmatpush.msra.mxu0 %v7724_v19  ;;  %3322 = vmatpush.msra.mxu1 %v7730_v12 }
 0x9b6   :  { %3287 = vmatpush.msrb.mxu3 %v7736_v29  ;;  %3268 = vmatpush.msrb.mxu2 %v7742_v60  ;;  %v3399_v60 = vpop.permute.xlu1 %3398 }
 0x9b7   :  { %3303 = vmatpush.msra.mxu0 %v7748_v36  ;;  %3323 = vmatpush.msra.mxu1 %v7754_v26 }
 0x9b8   :  { %3288 = vmatpush.msrb.mxu3 %v7760_v62 }
 0x9b9   :  { %3304 = vmatpush.msra.mxu0 %v7767_v15  ;;  %3324 = vmatpush.msra.mxu1 %v7773_v51  ;;  %v3407_v15 = vpop.permute.xlu2 %3406 }
 0x9bb   :  { %3305 = vmatpush.msra.mxu0 %v7781_v1  ;;  %3325 = vmatpush.msra.mxu1 %v7787_v9 }
 0x9bd   :  { %3306 = vmatpush.msra.mxu0 %v7795_v38  ;;  %3326 = vmatpush.msra.mxu1 %v7801_v63 }
 0x9bf   :  { %3307 = vmatpush.msra.mxu0 %v3955_v3  ;;  %3327 = vmatpush.msra.mxu1 %v3956_v28 }
 0x9c1   :  { %3308 = vmatpush.msra.mxu0 %v3957_v39  ;;  %3328 = vmatpush.msra.mxu1 %v3958_v48 }
 0x9f7   :  { %v3106_v46 = vpop.f32.mrf.mxu2 }
 0x9f8   :  { %v7871_v58 = vadd.f32 %v3106_v46, %v3072_v43  ;;  %v3126_v4 = vpop.f32.mrf.mxu3 }
 0x9f9   :  { %v7873_v61 = vadd.f32 %v3126_v4, %v3072_v43 }
 0x9fa   :  { %3185 = vmatmul.f32.vlgmr.msra.gmra.mxu2 %v7871_v58  ;;  %v3249_v40 = vmul.f32 %v7871_v58, %v7871_v58 }
 0x9fb   :  { %3205 = vmatmul.f32.vlgmr.msra.gmra.mxu3 %v7873_v61  ;;  %v3250_v52 = vmul.f32 %v7873_v61, %v7873_v61 }
 0x9ff   :  { %v3146_v2 = vpop.f32.mrf.mxu0  ;;  %v3166_v53 = vpop.f32.mrf.mxu1 }
 0xa00   :  { %v7877_v22 = vadd.f32 %v3146_v2, %v3072_v43  ;;  %v7879_v21 = vadd.f32 %v3166_v53, %v3072_v43 }
 0xa02   :  { %3225 = vmatmul.f32.vlgmr.msrb.gmra.mxu0 %v7877_v22  ;;  %3245 = vmatmul.f32.vlgmr.msrb.gmra.mxu1 %v7879_v21  ;;  %v3251_v34 = vmul.f32 %v7877_v22, %v7877_v22  ;;  %v3252_v44 = vmul.f32 %v7879_v21, %v7879_v21 }
 0xa03   :  { %3269 = vmatmul.f32.vlgmr.msrb.gmra.mxu2 %v3249_v40  ;;  %3289 = vmatmul.f32.vlgmr.msrb.gmra.mxu3 %v3250_v52 }
 0xa04   :  { %3729 = vmatpush.msk.msrb.mxu0 %vm420_vm2, %v8287_v23  ;;  %3731 = vmatpush.msk.msrb.mxu1 %vm420_vm2, %v8288_v10 }
 0xa0a   :  { %3309 = vmatmul.f32.vlgmr.msra.gmra.mxu0 %v3251_v34  ;;  %3329 = vmatmul.f32.vlgmr.msra.gmra.mxu1 %v3252_v44 }
 0xa0b   :  { %3737 = vmatpush.msk.msra.mxu0 %vm420_vm2, %v3511_v30  ;;  %3739 = vmatpush.msk.msra.mxu1 %vm420_vm2, %v3512_v45 }
 0xa7d   :  { %v3186_v25 = vpop.f32.mrf.mxu2 }
 0xa7e   :  { %v3206_v16 = vpop.f32.mrf.mxu3 }
 0xa7f   :  { %v3207_v13 = vadd.f32 %v3206_v16, %v3186_v25  ;;  %v3226_v55 = vpop.f32.mrf.mxu0  ;;  %v3246_v37 = vpop.f32.mrf.mxu1 }
 0xa81   :  { %v3227_v6 = vadd.f32 %v3226_v55, %v3207_v13 }
 0xa83   :  { %v3247_v56 = vadd.f32 %v3246_v37, %v3227_v6 }
 0xa85   :  { %3725 = vmatpush.msk.msra.mxu2 %vm332_vm0, %v3247_v56 }
 0xa86   :  { %v3270_v41 = vpop.f32.mrf.mxu2  ;;  %v3290_v59 = vpop.f32.mrf.mxu3  ;;  %3726 = vmatmul.msk.f32.vlgmr.msra.gmra.mxu2 %vm8290_vm7, %v3959_v32 }
 0xa87   :  { %3733 = vmatpush.msk.msrb.mxu2 %vm420_vm2, %v8289_v8  ;;  %v3291_v54 = vadd.f32 %v3290_v59, %v3270_v41  ;;  %v3310_v33 = vpop.f32.mrf.mxu0  ;;  %v3330_v27 = vpop.f32.mrf.mxu1 }
 0xa89   :  { %3741 = vmatpush.msk.msra.mxu2 %vm420_vm2, %v3513_v49  ;;  %v3311_v17 = vadd.f32 %v3310_v33, %v3291_v54 }
 0xa8b   :  { %v3331_v24 = vadd.f32 %v3330_v27, %v3311_v17 }
 0xa8d   :  { %3727 = vmatpush.msk.msra.mxu3 %vm332_vm0, %v3331_v24 }
 0xa8e   :  { %3728 = vmatmul.msk.f32.vlgmr.msra.gmra.mxu3 %vm8291_vm15, %v3959_v32 }
 0xa8f   :  { %3735 = vmatpush.msk.msrb.mxu3 %vm420_vm2, %v8292_v57 }
 0xa91   :  { %3743 = vmatpush.msk.msra.mxu3 %vm420_vm2, %v3514_v11 }
 0xb09   :  { %v3353_v5 = vpop.f32.mrf.mxu2 }
 0xb0a   :  { %v3356_v50 = vmul.f32 0.00390625, %v3353_v5 }
 0xb0c   :  { %v3381_v7 = vmul.f32 %v3356_v50, %v3356_v50 }
 0xb11   :  { %v3377_v35 = vpop.f32.mrf.mxu3 }
 0xb12   :  { %v3380_v18 = vmul.f32 0.00390625, %v3377_v35 }
 0xb14   :  { %v3382_v0 = vsub.f32 %v3380_v18, %v3381_v7 }
 0xb16   :  { %v3383_v31 = vmax.f32 %v3382_v0, 0.0 }
 0xb18   :  { %v3385_v14 = vadd.f32 1e-05, %v3383_v31 }
 0xb1a   :  { %3764 = vrsqrt.f32 %v3385_v14  ;;  %vm3392_vm1 = vweird.f32 %v3385_v14 }
 0xb20   :  { %v3765_v20 = vpop.eup %3764 }
 0xb21   :  { %v3387_v42 = vmul.f32 %v3765_v20, %v3385_v14  ;;  %vm3393_vm8 = vweird.f32 %v3765_v20 }
 0xb22   :  { %vm3394_vm12 = vmor %vm3392_vm1, %vm3393_vm8 }
 0xb23   :  { %v3388_v47 = vmul.f32 %v3765_v20, %v3387_v42 }
 0xb25   :  { %v3389_v19 = vmul.f32 0.5, %v3388_v47 }
 0xb27   :  { %v3390_v12 = vsub.f32 1.5, %v3389_v19 }
 0xb29   :  { %v3391_v29 = vmul.f32 %v3765_v20, %v3390_v12 }
 0xb2b   :  { %v3395_v36 = vsel %vm3394_vm12, %v3765_v20, %v3391_v29 }
 0xb2c   :  { %v3401_v26 = vmul.f32 %v3399_v60, %v3395_v36 }
 0xb2e   :  { %3730 = vmatmul.msk.f32.vlgmr.msrb.gmra.mxu0 %vm416_vm6, %v3401_v26  ;;  %3732 = vmatmul.msk.f32.vlgmr.msrb.gmra.mxu1 %vm416_vm6, %v3401_v26  ;;  %v3403_v62 = vmul.f32 %v3401_v26, %v3356_v50 }
 0xb2f   :  { %3734 = vmatmul.msk.f32.vlgmr.msrb.gmra.mxu2 %vm416_vm6, %v3401_v26  ;;  %3736 = vmatmul.msk.f32.vlgmr.msrb.gmra.mxu3 %vm416_vm6, %v3401_v26 }
 0xb30   :  { %v3409_v51 = vsub.f32 %v3407_v15, %v3403_v62 }
 0xb36   :  { %3738 = vmatmul.msk.f32.vlgmr.msra.gmra.mxu0 %vm416_vm6, %v3409_v51  ;;  %3740 = vmatmul.msk.f32.vlgmr.msra.gmra.mxu1 %vm416_vm6, %v3409_v51 }
 0xb37   :  { %3742 = vmatmul.msk.f32.vlgmr.msra.gmra.mxu2 %vm416_vm6, %v3409_v51  ;;  %3744 = vmatmul.msk.f32.vlgmr.msra.gmra.mxu3 %vm416_vm6, %v3409_v51 }
 0xbab   :  { %v3443_v1 = vpop.f32.mrf.mxu0  ;;  %v3463_v9 = vpop.f32.mrf.mxu1 }
 0xbac   :  { %v3507_v38 = vmul.f32 %v3463_v9, %v7873_v61  ;;  %v3506_v48 = vmul.f32 %v3443_v1, %v7871_v58 }
 0xbb2   :  { %v3483_v63 = vpop.f32.mrf.mxu2  ;;  %v3503_v3 = vpop.f32.mrf.mxu3 }
 0xbb3   :  { %v3543_v28 = vpop.f32.mrf.mxu0  ;;  %v3563_v39 = vpop.f32.mrf.mxu1  ;;  %v3509_v53 = vmul.f32 %v3503_v3, %v7879_v21  ;;  %v3508_v23 = vmul.f32 %v3483_v63, %v7877_v22 }
 0xbb4   :  { %v3607_v43 = vadd.f32 %v3563_v39, %v3507_v38  ;;  %v3606_v46 = vadd.f32 %v3543_v28, %v3506_v48 }
 0xbb6   :  { %v3614_v4 = vrot.slane %v3607_v43, 4 }
 0xbb8   :  { %v3616_v2 = vsel %vm332_vm0, %v3606_v46, %v3614_v4 }
 0xbb9   :  { %3620 = vst [vmem:[#allocation3] sm:$0xff] %v3616_v2 }
 0xbba   :  { %v3583_v40 = vpop.f32.mrf.mxu2  ;;  %v3603_v52 = vpop.f32.mrf.mxu3 }
 0xbbb   :  { %v3609_v10 = vadd.f32 %v3603_v52, %v3509_v53  ;;  %v3608_v58 = vadd.f32 %v3583_v40, %v3508_v23 }
 0xbbd   :  { %v3615_v61 = vrot.slane %v3609_v10, 4 }
 0xbbf   :  { %v3617_v34 = vsel %vm332_vm0, %v3608_v58, %v3615_v61 }
 0xbc0   :  { %3621 = vst [vmem:[#allocation3 + $0x8] sm:$0xff] %v3617_v34 }
 0xbc1   :  { %3632 = dma.vmem_to_hbm [thread:$0]  %s3628_s11, 256, %s3630_s28, [#allocation4]  }
 0xbc2   :  { %3984 = dma.done.wait [#allocation4], 256  }
 0xbc3   :  { %3985 = vsyncadd [#allocation4], 4294967040 }
 0xbc4   :  { %3637 = vsyncpa [#allocation4], 1 }

</bundles_post_ra>
